<compile_context>
chip_gen: v6e
topology: v6e:2x2x1
jax: 0.10.0
libtpu: 0.0.40
codegen_flags: <defaults>
</compile_context>

<pallas_src>
import jax
import jax.numpy as jnp
from jax.experimental import pallas as pl
from jax.experimental.pallas import tpu as pltpu

INPUT_SIZE = 32 * 32 * 3      # 3072
HIDDEN1 = 512
HIDDEN2 = 256
NUM_CLASSES = 10
PADDED_CLASSES = 128          # lane-dense class dimension (multiple of 128)
NEG_INF = -1e30               # pad-class bias -> exp() underflows to 0


def _round_up(n, m):
    return ((n + m - 1) // m) * m


def _pick_tile_b(B):
    """Batch-tile size: big tiles amortize ~0.35 us/step grid overhead, but keep
    >= 8 tiles for large B so both v7x TensorCores get several pipelined steps."""
    if B <= 128:
        return _round_up(B, 8)        # single tile; f32 x needs 8-row sublane packing
    for t in (1024, 512, 256, 128):
        if B >= 8 * t:
            return t
    return 128


def mlp_kernel(x_ref, w1_ref, b1_ref, w2_ref, b2_ref, w3_ref, b3_ref, o_ref):
    # x_ref: (TILE_B, 3072) f32 -> cast in-kernel (no separate HBM cast pass)
    x = x_ref[...].astype(jnp.bfloat16)

    # fc1: f32 MXU accumulation, bf16 epilogue (bias add + ReLU on packed vregs)
    h1 = jnp.dot(x, w1_ref[...], preferred_element_type=jnp.float32).astype(jnp.bfloat16)
    h1 = jnp.maximum(h1 + b1_ref[...], 0)                      # (TILE_B, 512) bf16

    # fc2: same structure
    h2 = jnp.dot(h1, w2_ref[...], preferred_element_type=jnp.float32).astype(jnp.bfloat16)
    h2 = jnp.maximum(h2 + b2_ref[...], 0)                      # (TILE_B, 256) bf16

    # fc3 (class dim padded to 128; pad columns carry a -1e30 bias), f32 logits
    logits = jnp.dot(h2, w3_ref[...], preferred_element_type=jnp.float32) + b3_ref[...]

    # log_softmax over 128 lanes; pad lanes contribute exp(-huge) == 0
    m = jnp.max(logits, axis=-1, keepdims=True)
    shifted = logits - m
    lse = jnp.log(jnp.sum(jnp.exp(shifted), axis=-1, keepdims=True))
    o_ref[...] = shifted - lse


def mlp_forward(x_nchw, kparams):
    """Forward pass. kparams are kernel-layout params from prepare_kernel_params."""
    w1, b1, w2, b2, w3p, b3p = kparams
    B = x_nchw.shape[0]
    # Contiguous NCHW flatten == nn.Flatten; free reshape, stays f32 (cast in-kernel).
    x_flat = x_nchw.reshape(B, INPUT_SIZE)

    tile_b = _pick_tile_b(B)
    b_padded = _round_up(B, tile_b)
    if b_padded != B:
        x_flat = jnp.pad(x_flat, ((0, b_padded - B), (0, 0)))

    grid = (b_padded // tile_b,)

    def resident(shape):
        # Constant index_map: block is DMA'd once and stays resident across grid
        # steps; single-buffered to avoid wasting VMEM on an unused second copy.
        nd = len(shape)
        return pl.BlockSpec(shape, lambda i: (0,) * nd, pipeline_mode=pl.Buffered(1))

    flops = 2 * b_padded * (INPUT_SIZE * HIDDEN1
                            + HIDDEN1 * HIDDEN2
                            + HIDDEN2 * PADDED_CLASSES)
    bytes_accessed = (b_padded * INPUT_SIZE * 4                         # f32 x (read once)
                      + (w1.size + w2.size + w3p.size) * 2              # bf16 weights
                      + (b1.size + b2.size) * 2 + b3p.size * 4          # biases
                      + b_padded * PADDED_CLASSES * 4)                  # f32 out
    cost = pl.CostEstimate(flops=flops,
                           transcendentals=b_padded * (PADDED_CLASSES + 1),
                           bytes_accessed=bytes_accessed)

    out = pl.pallas_call(
        mlp_kernel,
        out_shape=jax.ShapeDtypeStruct((b_padded, PADDED_CLASSES), jnp.float32),
        grid=grid,
        in_specs=[
            pl.BlockSpec((tile_b, INPUT_SIZE), lambda i: (i, 0)),   # x tile: pipelined
            resident((INPUT_SIZE, HIDDEN1)),                        # w1 (bf16) resident
            resident((1, HIDDEN1)),                                 # b1 (bf16)
            resident((HIDDEN1, HIDDEN2)),                           # w2 (bf16)
            resident((1, HIDDEN2)),                                 # b2 (bf16)
            resident((HIDDEN2, PADDED_CLASSES)),                    # w3 (bf16, padded)
            resident((1, PADDED_CLASSES)),                          # b3 (f32, padded)
        ],
        out_specs=pl.BlockSpec((tile_b, PADDED_CLASSES), lambda i: (i, 0)),
        compiler_params=pltpu.CompilerParams(
            dimension_semantics=("parallel",),       # shard batch tiles across TCs (v7x)
            vmem_limit_bytes=48 << 20,               # headroom on 64 MiB v7x / 128 MiB v6e
        ),
        cost_estimate=cost,
    )(x_flat, w1, b1, w2, b2, w3p, b3p)

    return out[:B, :NUM_CLASSES]


def init_params(key):
    """Deterministic init mirroring nn.Linear (stored transposed: (in, out)), f32."""
    ks = jax.random.split(key, 6)

    def linear(kw, kb, fan_in, fan_out):
        bound = 1.0 / jnp.sqrt(fan_in)
        w = jax.random.uniform(kw, (fan_in, fan_out), jnp.float32, -bound, bound)
        b = jax.random.uniform(kb, (1, fan_out), jnp.float32, -bound, bound)
        return w, b

    w1, b1 = linear(ks[0], ks[1], INPUT_SIZE, HIDDEN1)
    w2, b2 = linear(ks[2], ks[3], HIDDEN1, HIDDEN2)
    w3, b3 = linear(ks[4], ks[5], HIDDEN2, NUM_CLASSES)
    return (w1, b1, w2, b2, w3, b3)


def prepare_kernel_params(params):
    """f32 (in,out) params -> kernel layout: bf16 weights + bf16 fc1/fc2 biases,
    f32 fc3 bias, class dim padded 10 -> 128 (pad cols: zero weight, -1e30 bias)."""
    w1, b1, w2, b2, w3, b3 = params
    w3p = jnp.zeros((HIDDEN2, PADDED_CLASSES), jnp.float32).at[:, :NUM_CLASSES].set(w3)
    b3p = jnp.full((1, PADDED_CLASSES), NEG_INF, jnp.float32).at[:, :NUM_CLASSES].set(b3)
    return (w1.astype(jnp.bfloat16), b1.astype(jnp.bfloat16),
            w2.astype(jnp.bfloat16), b2.astype(jnp.bfloat16),
            w3p.astype(jnp.bfloat16), b3p.astype(jnp.float32))


def mlp_reference(x_nchw, params):
    """Pure-JAX full-f32 reference of the PyTorch forward."""
    w1, b1, w2, b2, w3, b3 = params
    x = x_nchw.reshape(x_nchw.shape[0], -1).astype(jnp.float32)
    h1 = jnp.maximum(x @ w1 + b1, 0.0)
    h2 = jnp.maximum(h1 @ w2 + b2, 0.0)
    logits = h2 @ w3 + b3
    return jax.nn.log_softmax(logits, axis=1)


def mlp_reference_matched(x_nchw, kparams):
    """Pure-JAX reference matching the kernel's precision exactly
    (bf16 inputs/weights, f32 MXU accumulation, bf16 bias-add/ReLU epilogues)."""
    w1, b1, w2, b2, w3p, b3p = kparams
    x = x_nchw.reshape(x_nchw.shape[0], -1).astype(jnp.bfloat16)
    h1 = jnp.dot(x, w1, preferred_element_type=jnp.float32).astype(jnp.bfloat16)
    h1 = jnp.maximum(h1 + b1, 0)
    h2 = jnp.dot(h1, w2, preferred_element_type=jnp.float32).astype(jnp.bfloat16)
    h2 = jnp.maximum(h2 + b2, 0)
    logits = jnp.dot(h2, w3p, preferred_element_type=jnp.float32) + b3p
    return jax.nn.log_softmax(logits, axis=1)[:, :NUM_CLASSES]


if __name__ == "__main__":
    key = jax.random.PRNGKey(0)
    k_params, k_x = jax.random.split(key)

    params = init_params(k_params)
    kparams = prepare_kernel_params(params)
    x = jax.random.normal(k_x, (2, 3, 32, 32), dtype=jnp.float32)  # NCHW, batch=2

    out = jax.jit(mlp_forward)(x, kparams)
    out = jax.block_until_ready(out)
    assert out.shape == (2, NUM_CLASSES)

    # Tight check vs. matched-precision reference (identical op/precision recipe).
    ref_bf16 = mlp_reference_matched(x, kparams)
    assert jnp.allclose(out, ref_bf16, atol=2e-3, rtol=2e-3), "mismatch vs bf16 reference"

    # Loose check vs. the original full-f32 PyTorch-equivalent forward.
    ref_f32 = mlp_reference(x, params)
    assert jnp.allclose(out, ref_f32, atol=3e-2, rtol=3e-2), "mismatch vs f32 reference"

    print("KERNEL_OK")
</pallas_src>

<mosaic_0001>
module attributes {stable_mosaic.version = 11 : i64} {
  func.func @mlp_kernel(%arg0: i32, %arg1: memref<8x3072xf32, #tpu.memory_space<vmem>>, %arg2: memref<3072x512xbf16, #tpu.memory_space<vmem>>, %arg3: memref<1x512xbf16, #tpu.memory_space<vmem>>, %arg4: memref<512x256xbf16, #tpu.memory_space<vmem>>, %arg5: memref<1x256xbf16, #tpu.memory_space<vmem>>, %arg6: memref<256x128xbf16, #tpu.memory_space<vmem>>, %arg7: memref<1x128xf32, #tpu.memory_space<vmem>>, %arg8: memref<8x128xf32, #tpu.memory_space<vmem>>) attributes {dimension_semantics = [#tpu.dimension_semantics<parallel>], iteration_bounds = array<i64: 1>, scalar_prefetch = 0 : i64, scratch_operands = 0 : i64, tpu.core_type = #tpu.core_type<tc>, window_params = [{transform_indices = @transform_0, window_bounds = array<i64: 8, 3072>}, {pipeline_mode = #tpu.pipeline_mode<synchronous>, transform_indices = @transform_1, window_bounds = array<i64: 3072, 512>}, {pipeline_mode = #tpu.pipeline_mode<synchronous>, transform_indices = @transform_2, window_bounds = array<i64: 1, 512>}, {pipeline_mode = #tpu.pipeline_mode<synchronous>, transform_indices = @transform_3, window_bounds = array<i64: 512, 256>}, {pipeline_mode = #tpu.pipeline_mode<synchronous>, transform_indices = @transform_4, window_bounds = array<i64: 1, 256>}, {pipeline_mode = #tpu.pipeline_mode<synchronous>, transform_indices = @transform_5, window_bounds = array<i64: 256, 128>}, {pipeline_mode = #tpu.pipeline_mode<synchronous>, transform_indices = @transform_6, window_bounds = array<i64: 1, 128>}, {transform_indices = @transform_7, window_bounds = array<i64: 8, 128>}]} {
    %c0 = arith.constant 0 : index
    %c0_0 = arith.constant 0 : index
    %0 = vector.load %arg1[%c0, %c0_0] : memref<8x3072xf32, #tpu.memory_space<vmem>>, vector<8x3072xf32>
    %1 = arith.truncf %0 : vector<8x3072xf32> to vector<8x3072xbf16>
    %c0_1 = arith.constant 0 : index
    %c0_2 = arith.constant 0 : index
    %2 = vector.load %arg2[%c0_1, %c0_2] : memref<3072x512xbf16, #tpu.memory_space<vmem>>, vector<3072x512xbf16>
    %cst = arith.constant dense<0.000000e+00> : vector<8x512xf32>
    %3 = tpu.matmul %1, %2, %cst {dimension_numbers = #tpu.dot_dimension_numbers<[1], [0], [0], [1], [0, 0, 1, 1], [], []>} : vector<8x3072xbf16>, vector<3072x512xbf16>, vector<8x512xf32> -> vector<8x512xf32>
    %4 = arith.truncf %3 : vector<8x512xf32> to vector<8x512xbf16>
    %c0_3 = arith.constant 0 : index
    %c0_4 = arith.constant 0 : index
    %5 = vector.load %arg3[%c0_3, %c0_4] : memref<1x512xbf16, #tpu.memory_space<vmem>>, vector<1x512xbf16>
    %6 = vector.broadcast %5 : vector<1x512xbf16> to vector<8x512xbf16>
    %7 = arith.addf %4, %6 : vector<8x512xbf16>
    %cst_5 = arith.constant 0.000000e+00 : bf16
    %8 = vector.broadcast %cst_5 : bf16 to vector<8x512xbf16>
    %9 = arith.maximumf %7, %8 : vector<8x512xbf16>
    %c0_6 = arith.constant 0 : index
    %c0_7 = arith.constant 0 : index
    %10 = vector.load %arg4[%c0_6, %c0_7] : memref<512x256xbf16, #tpu.memory_space<vmem>>, vector<512x256xbf16>
    %cst_8 = arith.constant dense<0.000000e+00> : vector<8x256xf32>
    %11 = tpu.matmul %9, %10, %cst_8 {dimension_numbers = #tpu.dot_dimension_numbers<[1], [0], [0], [1], [0, 0, 1, 1], [], []>} : vector<8x512xbf16>, vector<512x256xbf16>, vector<8x256xf32> -> vector<8x256xf32>
    %12 = arith.truncf %11 : vector<8x256xf32> to vector<8x256xbf16>
    %c0_9 = arith.constant 0 : index
    %c0_10 = arith.constant 0 : index
    %13 = vector.load %arg5[%c0_9, %c0_10] : memref<1x256xbf16, #tpu.memory_space<vmem>>, vector<1x256xbf16>
    %14 = vector.broadcast %13 : vector<1x256xbf16> to vector<8x256xbf16>
    %15 = arith.addf %12, %14 : vector<8x256xbf16>
    %cst_11 = arith.constant 0.000000e+00 : bf16
    %16 = vector.broadcast %cst_11 : bf16 to vector<8x256xbf16>
    %17 = arith.maximumf %15, %16 : vector<8x256xbf16>
    %c0_12 = arith.constant 0 : index
    %c0_13 = arith.constant 0 : index
    %18 = vector.load %arg6[%c0_12, %c0_13] : memref<256x128xbf16, #tpu.memory_space<vmem>>, vector<256x128xbf16>
    %cst_14 = arith.constant dense<0.000000e+00> : vector<8x128xf32>
    %19 = tpu.matmul %17, %18, %cst_14 {dimension_numbers = #tpu.dot_dimension_numbers<[1], [0], [0], [1], [0, 0, 1, 1], [], []>} : vector<8x256xbf16>, vector<256x128xbf16>, vector<8x128xf32> -> vector<8x128xf32>
    %c0_15 = arith.constant 0 : index
    %c0_16 = arith.constant 0 : index
    %20 = vector.load %arg7[%c0_15, %c0_16] : memref<1x128xf32, #tpu.memory_space<vmem>>, vector<1x128xf32>
    %21 = vector.broadcast %20 : vector<1x128xf32> to vector<8x128xf32>
    %22 = arith.addf %19, %21 : vector<8x128xf32>
    %cst_17 = arith.constant dense<0xFF800000> : vector<8xf32>
    %23 = vector.multi_reduction <maximumf>, %22, %cst_17 [1] : vector<8x128xf32> to vector<8xf32>
    %24 = vector.shape_cast %23 : vector<8xf32> to vector<8x1xf32>
    %25 = vector.broadcast %24 : vector<8x1xf32> to vector<8x128xf32>
    %26 = arith.subf %22, %25 : vector<8x128xf32>
    %27 = math.exp %26 : vector<8x128xf32>
    %cst_18 = arith.constant dense<0.000000e+00> : vector<8xf32>
    %28 = vector.multi_reduction <add>, %27, %cst_18 [1] : vector<8x128xf32> to vector<8xf32>
    %29 = vector.shape_cast %28 : vector<8xf32> to vector<8x1xf32>
    %30 = math.log %29 : vector<8x1xf32>
    %31 = vector.broadcast %30 : vector<8x1xf32> to vector<8x128xf32>
    %32 = arith.subf %26, %31 : vector<8x128xf32>
    %c0_19 = arith.constant 0 : index
    %c0_20 = arith.constant 0 : index
    %33 = vector.load %arg8[%c0_19, %c0_20] : memref<8x128xf32, #tpu.memory_space<vmem>>, vector<8x128xf32>
    tpu.vector_store %arg8[%c0_19, %c0_20], %32 {strides = array<i32>} : memref<8x128xf32, #tpu.memory_space<vmem>>, vector<8x128xf32>,
    return
  }
  func.func @transform_0(%arg0: i32) -> (i32, i32) {
    %c0_i32 = arith.constant 0 : i32
    %c0_i32_0 = arith.constant 0 : i32
    return %arg0, %c0_i32 : i32, i32
  }
  func.func @transform_1(%arg0: i32) -> (i32, i32) {
    %c0_i32 = arith.constant 0 : i32
    %c0_i32_0 = arith.constant 0 : i32
    %c0_i32_1 = arith.constant 0 : i32
    return %c0_i32, %c0_i32_0 : i32, i32
  }
  func.func @transform_2(%arg0: i32) -> (i32, i32) {
    %c0_i32 = arith.constant 0 : i32
    %c0_i32_0 = arith.constant 0 : i32
    %c0_i32_1 = arith.constant 0 : i32
    return %c0_i32, %c0_i32_0 : i32, i32
  }
  func.func @transform_3(%arg0: i32) -> (i32, i32) {
    %c0_i32 = arith.constant 0 : i32
    %c0_i32_0 = arith.constant 0 : i32
    %c0_i32_1 = arith.constant 0 : i32
    return %c0_i32, %c0_i32_0 : i32, i32
  }
  func.func @transform_4(%arg0: i32) -> (i32, i32) {
    %c0_i32 = arith.constant 0 : i32
    %c0_i32_0 = arith.constant 0 : i32
    %c0_i32_1 = arith.constant 0 : i32
    return %c0_i32, %c0_i32_0 : i32, i32
  }
  func.func @transform_5(%arg0: i32) -> (i32, i32) {
    %c0_i32 = arith.constant 0 : i32
    %c0_i32_0 = arith.constant 0 : i32
    %c0_i32_1 = arith.constant 0 : i32
    return %c0_i32, %c0_i32_0 : i32, i32
  }
  func.func @transform_6(%arg0: i32) -> (i32, i32) {
    %c0_i32 = arith.constant 0 : i32
    %c0_i32_0 = arith.constant 0 : i32
    %c0_i32_1 = arith.constant 0 : i32
    return %c0_i32, %c0_i32_0 : i32, i32
  }
  func.func @transform_7(%arg0: i32) -> (i32, i32) {
    %c0_i32 = arith.constant 0 : i32
    %c0_i32_0 = arith.constant 0 : i32
    return %arg0, %c0_i32 : i32, i32
  }
}

</mosaic_0001>

<bundles_post_ra>
// kernel: mlp_forward.1
= control target key start
LH: loop header
LB: loop body
LE: loop exit
PB: predicated region body
PF: predicated region fallthrough
CT: control target
= control target key end

     0   :  { %12 = vsyncpa [#allocation3], 0  ;;  %s9132_s0 = inlined_call_operand.vmem [shape: f32[8,3072], index: 0, kind: input, shape index: {}]   ;;  %s9133_s1 = inlined_call_operand.hbm [shape: bf16[3072,512], index: 1, kind: input, shape index: {}]   ;;  %s9134_s2 = inlined_call_operand.hbm [shape: bf16[1,512], index: 2, kind: input, shape index: {}]   ;;  %s9135_s3 = inlined_call_operand.hbm [shape: bf16[512,256], index: 3, kind: input, shape index: {}]   ;;  %s9136_s4 = inlined_call_operand.hbm [shape: bf16[1,256], index: 4, kind: input, shape index: {}]   ;;  %s9137_s5 = inlined_call_operand.hbm [shape: bf16[256,128], index: 5, kind: input, shape index: {}]   ;;  %s9138_s6 = inlined_call_operand.hbm [shape: f32[1,128], index: 6, kind: input, shape index: {}]   ;;  %s9139_s7 = inlined_call_operand.vmem [shape: f32[8,128], index: 7, kind: output, shape index: {}]  }
   0x1   :  { %13 = vsyncpa [#allocation5], 0 }
   0x2   :  { %14 = vsyncpa [#allocation8], 0 }
   0x3   :  { %15 = vsyncpa [#allocation11], 0  ;;  %s8796_s24 = smov [#allocation4]   ;;  %s8797_s26 = smov [#allocation7]  }
   0x4   :  { %s36_s25 = sshll.u32 %s8796_s24, 4  ;;  %s58_s27 = sshll.u32 %s8797_s26, 4  ;;  %s37_s25 = int_to_ptr.vmem [resolvable:$true] %s36_s25  ;;  %s59_s27 = int_to_ptr.vmem [resolvable:$true] %s58_s27 }
   0x5   :  { %s8676_s28 = scalar_lea.vmem %s37_s25, 64  ;;  %p8681_p1 = scmp.lt.s32.totalorder %s37_s25, %s37_s25 }
   0x6   :  { %p8677_p0 = scmp.ne.s32.totalorder %s37_s25, %s8676_s28  ;;  %p8682_p2 = scmp.lt.s32.totalorder %s8676_s28, %s8676_s28 }
   0x8   :  { %p8683_p3 = por %p8682_p2, %p8681_p1 }
   0xa   :  { %p8684_p4 = pnand %p8683_p3, %p8677_p0 }
   0xc   :  { %8687 = shalt.err (!%p8684_p4)
}
   0xd   :  { %39 = dma.hbm_to_vmem [thread:$0]  %s9134_s2, 64, %s37_s25, [#allocation5]  }
   0xe   :  { %s8696_s8 = scalar_lea.vmem %s59_s27, 32  ;;  %p8701_p6 = scmp.lt.s32.totalorder %s59_s27, %s59_s27 }
   0xf   :  { %p8697_p5 = scmp.ne.s32.totalorder %s59_s27, %s8696_s8  ;;  %p8702_p7 = scmp.lt.s32.totalorder %s8696_s8, %s8696_s8 }
  0x11   :  { %p8703_p8 = por %p8702_p7, %p8701_p6 }
  0x13   :  { %p8704_p9 = pnand %p8703_p8, %p8697_p5 }
  0x15   :  { %8707 = shalt.err (!%p8704_p9)
}
  0x16   :  { %61 = dma.hbm_to_vmem [thread:$0]  %s9136_s4, 32, %s59_s27, [#allocation8]  }
  0x17   :  { %s8798_s11 = smov [#allocation2]  }
  0x18   :  { %s23_s12 = sshll.u32 %s8798_s11, 4  ;;  %s24_s12 = int_to_ptr.vmem [resolvable:$true] %s23_s12 }
  0x19   :  { %s8716_s13 = scalar_lea.vmem %s24_s12, 98304  ;;  %p8721_p11 = scmp.lt.s32.totalorder %s24_s12, %s24_s12 }
  0x1a   :  { %p8717_p10 = scmp.ne.s32.totalorder %s24_s12, %s8716_s13  ;;  %p8722_p12 = scmp.lt.s32.totalorder %s8716_s13, %s8716_s13 }
  0x1c   :  { %p8723_p13 = por %p8722_p12, %p8721_p11 }
  0x1e   :  { %p8724_p0 = pnand %p8723_p13, %p8717_p10 }
  0x20   :  { %8727 = shalt.err (!%p8724_p0)
}
  0x21   :  { %s8799_s2 = smov 256   ;;  %s8800_s14 = smov 16  }
  0x22   :  { %29 = dma.hbm_to_vmem [thread:$0]  %s9133_s1, 98304, %s24_s12, [#allocation3], %s8799_s2, %s8799_s2, %s8800_s14  }
  0x23   :  { %s8801_s17 = smov [#allocation6]  }
  0x24   :  { %s45_s18 = sshll.u32 %s8801_s17, 4  ;;  %s46_s18 = int_to_ptr.vmem [resolvable:$true] %s45_s18 }
  0x25   :  { %s8736_s4 = scalar_lea.vmem %s46_s18, 8192  ;;  %p8741_p2 = scmp.lt.s32.totalorder %s46_s18, %s46_s18 }
  0x26   :  { %p8737_p1 = scmp.ne.s32.totalorder %s46_s18, %s8736_s4  ;;  %p8742_p3 = scmp.lt.s32.totalorder %s8736_s4, %s8736_s4 }
  0x28   :  { %p8743_p4 = por %p8742_p3, %p8741_p2 }
  0x2a   :  { %p8744_p5 = pnand %p8743_p4, %p8737_p1 }
  0x2c   :  { %8747 = shalt.err (!%p8744_p5)
}
  0x2d   :  { %s8802_s19 = smov 128   ;;  %s8803_s20 = smov 8  }
  0x2e   :  { %51 = dma.hbm_to_vmem [thread:$0]  %s9135_s3, 8192, %s46_s18, [#allocation5], %s8802_s19, %s8802_s19, %s8803_s20  }
  0x2f   :  { %s8804_s23 = smov [#allocation9]  }
  0x30   :  { %s67_s24 = sshll.u32 %s8804_s23, 4  ;;  %s68_s24 = int_to_ptr.vmem [resolvable:$true] %s67_s24 }
  0x31   :  { %s8756_s1 = scalar_lea.vmem %s68_s24, 2048  ;;  %p8761_p7 = scmp.lt.s32.totalorder %s68_s24, %s68_s24 }
  0x32   :  { %p8757_p6 = scmp.ne.s32.totalorder %s68_s24, %s8756_s1  ;;  %p8762_p8 = scmp.lt.s32.totalorder %s8756_s1, %s8756_s1 }
  0x34   :  { %p8763_p9 = por %p8762_p8, %p8761_p7 }
  0x36   :  { %p8764_p10 = pnand %p8763_p9, %p8757_p6 }
  0x38   :  { %8767 = shalt.err (!%p8764_p10)
}
  0x39   :  { %s8805_s25 = smov 64   ;;  %s8806_s26 = smov 4  }
  0x3a   :  { %73 = dma.hbm_to_vmem [thread:$0]  %s9137_s5, 2048, %s68_s24, [#allocation8], %s8805_s25, %s8805_s25, %s8806_s26  }
  0x3b   :  { %s8807_s29 = smov [#allocation10]  }
  0x3c   :  { %s80_s30 = sshll.u32 %s8807_s29, 4  ;;  %s81_s30 = int_to_ptr.vmem [resolvable:$true] %s80_s30 }
  0x3d   :  { %s8776_s3 = scalar_lea.vmem %s81_s30, 16  ;;  %s8780_s8 = scalar_lea.vmem %s81_s30, 32 }
  0x3e   :  { %p8777_p11 = scmp.ne.s32.totalorder %s81_s30, %s8776_s3  ;;  %p8781_p12 = scmp.lt.s32.totalorder %s81_s30, %s81_s30 }
  0x3f   :  { %p8782_p13 = scmp.lt.s32.totalorder %s8780_s8, %s8776_s3 }
  0x41   :  { %p8783_p0 = por %p8782_p13, %p8781_p12 }
  0x43   :  { %p8784_p1 = pnand %p8783_p0, %p8777_p11 }
  0x45   :  { %8787 = shalt.err (!%p8784_p1)
}
  0x46   :  { %83 = dma.hbm_to_vmem [thread:$0]  %s9138_s6, 16, %s81_s30, [#allocation11]  }
  0x47   :  { %8788 = dma.done.wait [#allocation3], 98304  }
  0x48   :  { %8789 = vsyncadd [#allocation3], 4294868992 }
  0x49   :  { %8790 = dma.done.wait [#allocation5], 8256  }
  0x4a   :  { %8791 = vsyncadd [#allocation5], 4294959040 }
  0x4b   :  { %8792 = dma.done.wait [#allocation8], 2080  }
  0x4c   :  { %8793 = vsyncadd [#allocation8], 4294965216 }
  0x4d   :  { %8794 = dma.done.wait [#allocation11], 16  }
  0x4e   :  { %8795 = vsyncadd [#allocation11], 4294967280  ;;  %v7400_v0 = vld [vmem:[#allocation2 + $0xe4] ss:$16 sps:$4 sm:$0xff]   ;;  %v7404_v2 = vld [vmem:[#allocation2 + $0xe0] ss:$16 sps:$4 sm:$0xff]  }
  0x4f   :  { %v7402_v1 = vld [vmem:[#allocation2 + $0x2e4] ss:$16 sps:$4 sm:$0xff]   ;;  %4759 = vmatprep.subr.bf16.mxu0 %v7400_v0  ;;  %v7405_v3 = vld [vmem:[#allocation2 + $0x2e0] ss:$16 sps:$4 sm:$0xff]   ;;  %v104_v46 = vld [vmem:[%s9132_s0 + $0x8] sm:$0xff] }
  0x50   :  { %4800 = vmatprep.subr.bf16.mxu1 %v7402_v1  ;;  %v7406_v4 = vld [vmem:[#allocation2 + $0xc4] ss:$16 sps:$4 sm:$0xff]   ;;  %4760 = vmatpush1.bf16.msra.mxu0 %v7404_v2  ;;  %v7410_v6 = vld [vmem:[#allocation2 + $0xc0] ss:$16 sps:$4 sm:$0xff]   ;;  %v8871_v49 = vpack.c.bf16 %v104_v46, %v104_v46  ;;  %v106_v50 = vld [vmem:[%s9132_s0 + $0x18] sm:$0xff] }
  0x51   :  { %4801 = vmatpush1.bf16.msra.mxu1 %v7405_v3  ;;  %v7408_v5 = vld [vmem:[#allocation2 + $0x2c4] ss:$16 sps:$4 sm:$0xff]   ;;  %4761 = vmatprep.subr.bf16.mxu0 %v7406_v4  ;;  %v7411_v7 = vld [vmem:[#allocation2 + $0x2c0] ss:$16 sps:$4 sm:$0xff]   ;;  %v8876_v52 = vpack.c.bf16 %v106_v50, %v106_v50 }
  0x52   :  { %4802 = vmatprep.subr.bf16.mxu1 %v7408_v5  ;;  %v7412_v8 = vld [vmem:[#allocation2 + $0xa4] ss:$16 sps:$4 sm:$0xff]   ;;  %v7416_v10 = vld [vmem:[#allocation2 + $0xa0] ss:$16 sps:$4 sm:$0xff]   ;;  %4791 = vmatprep.mubr.bf16.mxu0 %v8871_v49 }
  0x53   :  { %v7414_v9 = vld [vmem:[#allocation2 + $0x2a4] ss:$16 sps:$4 sm:$0xff]   ;;  %v7417_v11 = vld [vmem:[#allocation2 + $0x2a0] ss:$16 sps:$4 sm:$0xff]   ;;  %4832 = vmatprep.mubr.bf16.mxu1 %v8876_v52 }
  0x54   :  { %4762 = vmatpush1.bf16.msra.mxu0 %v7410_v6  ;;  %v7418_v12 = vld [vmem:[#allocation2 + $0x84] ss:$16 sps:$4 sm:$0xff]   ;;  %v7422_v14 = vld [vmem:[#allocation2 + $0x80] ss:$16 sps:$4 sm:$0xff]  }
  0x55   :  { %4803 = vmatpush1.bf16.msra.mxu1 %v7411_v7  ;;  %4763 = vmatprep.subr.bf16.mxu0 %v7412_v8  ;;  %v7420_v13 = vld [vmem:[#allocation2 + $0x284] ss:$16 sps:$4 sm:$0xff]   ;;  %v7423_v15 = vld [vmem:[#allocation2 + $0x280] ss:$16 sps:$4 sm:$0xff]  }
  0x56   :  { %4804 = vmatprep.subr.bf16.mxu1 %v7414_v9  ;;  %v7424_v16 = vld [vmem:[#allocation2 + $0x64] ss:$16 sps:$4 sm:$0xff]   ;;  %v7428_v18 = vld [vmem:[#allocation2 + $0x60] ss:$16 sps:$4 sm:$0xff]  }
  0x57   :  { %v7426_v17 = vld [vmem:[#allocation2 + $0x264] ss:$16 sps:$4 sm:$0xff]   ;;  %v7429_v19 = vld [vmem:[#allocation2 + $0x260] ss:$16 sps:$4 sm:$0xff]  }
  0x58   :  { %4764 = vmatpush1.bf16.msra.mxu0 %v7416_v10  ;;  %v7430_v20 = vld [vmem:[#allocation2 + $0x44] ss:$16 sps:$4 sm:$0xff]   ;;  %v7434_v22 = vld [vmem:[#allocation2 + $0x40] ss:$16 sps:$4 sm:$0xff]  }
  0x59   :  { %4805 = vmatpush1.bf16.msra.mxu1 %v7417_v11  ;;  %4765 = vmatprep.subr.bf16.mxu0 %v7418_v12  ;;  %v7432_v21 = vld [vmem:[#allocation2 + $0x244] ss:$16 sps:$4 sm:$0xff]   ;;  %v7435_v23 = vld [vmem:[#allocation2 + $0x240] ss:$16 sps:$4 sm:$0xff]  }
  0x5a   :  { %4806 = vmatprep.subr.bf16.mxu1 %v7420_v13  ;;  %v7436_v24 = vld [vmem:[#allocation2 + $0x24] ss:$16 sps:$4 sm:$0xff]   ;;  %v7440_v26 = vld [vmem:[#allocation2 + $0x20] ss:$16 sps:$4 sm:$0xff]  }
  0x5b   :  { %v7438_v25 = vld [vmem:[#allocation2 + $0x224] ss:$16 sps:$4 sm:$0xff]   ;;  %v7441_v27 = vld [vmem:[#allocation2 + $0x220] ss:$16 sps:$4 sm:$0xff]  }
  0x5c   :  { %4766 = vmatpush1.bf16.msra.mxu0 %v7422_v14  ;;  %v7442_v28 = vld [vmem:[#allocation2 + $0x4] ss:$16 sps:$4 sm:$0xff]   ;;  %v7446_v30 = vld [vmem:[#allocation2] ss:$16 sps:$4 sm:$0xff]  }
  0x5d   :  { %4807 = vmatpush1.bf16.msra.mxu1 %v7423_v15  ;;  %4767 = vmatprep.subr.bf16.mxu0 %v7424_v16  ;;  %v7444_v29 = vld [vmem:[#allocation2 + $0x204] ss:$16 sps:$4 sm:$0xff]   ;;  %v7447_v31 = vld [vmem:[#allocation2 + $0x200] ss:$16 sps:$4 sm:$0xff]  }
  0x5e   :  { %4808 = vmatprep.subr.bf16.mxu1 %v7426_v17  ;;  %v7448_v32 = vld [vmem:[#allocation2 + $0x1e4] ss:$16 sps:$4 sm:$0xff]   ;;  %v7452_v34 = vld [vmem:[#allocation2 + $0x1e0] ss:$16 sps:$4 sm:$0xff]  }
  0x5f   :  { %v7450_v33 = vld [vmem:[#allocation2 + $0x3e4] ss:$16 sps:$4 sm:$0xff]   ;;  %v7453_v35 = vld [vmem:[#allocation2 + $0x3e0] ss:$16 sps:$4 sm:$0xff]  }
  0x60   :  { %4768 = vmatpush1.bf16.msra.mxu0 %v7428_v18  ;;  %v7454_v36 = vld [vmem:[#allocation2 + $0x1c4] ss:$16 sps:$4 sm:$0xff]   ;;  %v7458_v38 = vld [vmem:[#allocation2 + $0x1c0] ss:$16 sps:$4 sm:$0xff]  }
  0x61   :  { %4809 = vmatpush1.bf16.msra.mxu1 %v7429_v19  ;;  %4769 = vmatprep.subr.bf16.mxu0 %v7430_v20  ;;  %v7456_v37 = vld [vmem:[#allocation2 + $0x3c4] ss:$16 sps:$4 sm:$0xff]   ;;  %v7459_v39 = vld [vmem:[#allocation2 + $0x3c0] ss:$16 sps:$4 sm:$0xff]  }
  0x62   :  { %4810 = vmatprep.subr.bf16.mxu1 %v7432_v21  ;;  %v7460_v40 = vld [vmem:[#allocation2 + $0x1a4] ss:$16 sps:$4 sm:$0xff]   ;;  %v7464_v42 = vld [vmem:[#allocation2 + $0x1a0] ss:$16 sps:$4 sm:$0xff]  }
  0x63   :  { %v7462_v41 = vld [vmem:[#allocation2 + $0x3a4] ss:$16 sps:$4 sm:$0xff]   ;;  %v7465_v43 = vld [vmem:[#allocation2 + $0x3a0] ss:$16 sps:$4 sm:$0xff]  }
  0x64   :  { %4770 = vmatpush1.bf16.msra.mxu0 %v7434_v22  ;;  %v7466_v44 = vld [vmem:[#allocation2 + $0x184] ss:$16 sps:$4 sm:$0xff]   ;;  %v7470_v47 = vld [vmem:[#allocation2 + $0x180] ss:$16 sps:$4 sm:$0xff]  }
  0x65   :  { %4811 = vmatpush1.bf16.msra.mxu1 %v7435_v23  ;;  %4771 = vmatprep.subr.bf16.mxu0 %v7436_v24  ;;  %v7468_v45 = vld [vmem:[#allocation2 + $0x384] ss:$16 sps:$4 sm:$0xff]   ;;  %v7471_v48 = vld [vmem:[#allocation2 + $0x380] ss:$16 sps:$4 sm:$0xff]  }
  0x66   :  { %4812 = vmatprep.subr.bf16.mxu1 %v7438_v25  ;;  %v7472_v51 = vld [vmem:[#allocation2 + $0x164] ss:$16 sps:$4 sm:$0xff]   ;;  %v7476_v54 = vld [vmem:[#allocation2 + $0x160] ss:$16 sps:$4 sm:$0xff]  }
  0x67   :  { %v7474_v53 = vld [vmem:[#allocation2 + $0x364] ss:$16 sps:$4 sm:$0xff]   ;;  %v7477_v55 = vld [vmem:[#allocation2 + $0x360] ss:$16 sps:$4 sm:$0xff]  }
  0x68   :  { %4772 = vmatpush1.bf16.msra.mxu0 %v7440_v26  ;;  %v7478_v56 = vld [vmem:[#allocation2 + $0x144] ss:$16 sps:$4 sm:$0xff]   ;;  %v7482_v58 = vld [vmem:[#allocation2 + $0x140] ss:$16 sps:$4 sm:$0xff]  }
  0x69   :  { %4813 = vmatpush1.bf16.msra.mxu1 %v7441_v27  ;;  %4773 = vmatprep.subr.bf16.mxu0 %v7442_v28  ;;  %v7480_v57 = vld [vmem:[#allocation2 + $0x344] ss:$16 sps:$4 sm:$0xff]   ;;  %v7483_v59 = vld [vmem:[#allocation2 + $0x340] ss:$16 sps:$4 sm:$0xff]  }
  0x6a   :  { %4814 = vmatprep.subr.bf16.mxu1 %v7444_v29  ;;  %v7484_v60 = vld [vmem:[#allocation2 + $0x124] ss:$16 sps:$4 sm:$0xff]   ;;  %v7488_v62 = vld [vmem:[#allocation2 + $0x120] ss:$16 sps:$4 sm:$0xff]  }
  0x6b   :  { %v7486_v61 = vld [vmem:[#allocation2 + $0x324] ss:$16 sps:$4 sm:$0xff]   ;;  %v7489_v63 = vld [vmem:[#allocation2 + $0x320] ss:$16 sps:$4 sm:$0xff]  }
  0x6c   :  { %4774 = vmatpush1.bf16.msra.mxu0 %v7446_v30  ;;  %v7490_v0 = vld [vmem:[#allocation2 + $0x104] ss:$16 sps:$4 sm:$0xff]   ;;  %v7494_v2 = vld [vmem:[#allocation2 + $0x100] ss:$16 sps:$4 sm:$0xff]  }
  0x6d   :  { %4815 = vmatpush1.bf16.msra.mxu1 %v7447_v31  ;;  %4775 = vmatprep.subr.bf16.mxu0 %v7448_v32  ;;  %v7492_v1 = vld [vmem:[#allocation2 + $0x304] ss:$16 sps:$4 sm:$0xff]   ;;  %v7495_v3 = vld [vmem:[#allocation2 + $0x300] ss:$16 sps:$4 sm:$0xff]  }
  0x6e   :  { %4816 = vmatprep.subr.bf16.mxu1 %v7450_v33  ;;  %v103_v4 = vld [vmem:[%s9132_s0] sm:$0xff]  ;;  %v105_v5 = vld [vmem:[%s9132_s0 + $0x10] sm:$0xff] }
  0x6f   :  { %v7498_v6 = vld [vmem:[#allocation2 + $0x4e4] ss:$16 sps:$4 sm:$0xff]   ;;  %v8886_v8 = vpack.c.bf16 %v103_v4, %v103_v4  ;;  %v8888_v9 = vpack.c.bf16 %v105_v5, %v105_v5  ;;  %v7496_v10 = vld [vmem:[#allocation2 + $0x4e0] ss:$16 sps:$4 sm:$0xff]  }
  0x70   :  { %4776 = vmatpush2.bf16.msra.mxu0 %v7452_v34  ;;  %v7501_v7 = vld [vmem:[#allocation2 + $0x6e4] ss:$16 sps:$4 sm:$0xff]   ;;  %v7499_v11 = vld [vmem:[#allocation2 + $0x6e0] ss:$16 sps:$4 sm:$0xff]   ;;  %v108_v34 = vld [vmem:[%s9132_s0 + $0x28] sm:$0xff] }
  0x71   :  { %4817 = vmatpush2.bf16.msra.mxu1 %v7453_v35  ;;  %4777 = vmatprep.subr.bf16.mxu0 %v7454_v36  ;;  %v7504_v12 = vld [vmem:[#allocation2 + $0x4c4] ss:$16 sps:$4 sm:$0xff]   ;;  %v7502_v14 = vld [vmem:[#allocation2 + $0x4c0] ss:$16 sps:$4 sm:$0xff]  }
  0x72   :  { %4818 = vmatprep.subr.bf16.mxu1 %v7456_v37  ;;  %v7507_v13 = vld [vmem:[#allocation2 + $0x6c4] ss:$16 sps:$4 sm:$0xff]   ;;  %v7505_v15 = vld [vmem:[#allocation2 + $0x6c0] ss:$16 sps:$4 sm:$0xff]   ;;  %v8895_v37 = vpack.c.bf16 %v108_v34, %v108_v34 }
  0x73   :  { %v7510_v16 = vld [vmem:[#allocation2 + $0x4a4] ss:$16 sps:$4 sm:$0xff]   ;;  %v7508_v18 = vld [vmem:[#allocation2 + $0x4a0] ss:$16 sps:$4 sm:$0xff]  }
  0x74   :  { %4778 = vmatpush2.bf16.msra.mxu0 %v7458_v38  ;;  %v7513_v17 = vld [vmem:[#allocation2 + $0x6a4] ss:$16 sps:$4 sm:$0xff]   ;;  %v7511_v19 = vld [vmem:[#allocation2 + $0x6a0] ss:$16 sps:$4 sm:$0xff]   ;;  %v110_v38 = vld [vmem:[%s9132_s0 + $0x38] sm:$0xff] }
  0x75   :  { %4819 = vmatpush2.bf16.msra.mxu1 %v7459_v39  ;;  %4779 = vmatprep.subr.bf16.mxu0 %v7460_v40  ;;  %v7516_v20 = vld [vmem:[#allocation2 + $0x484] ss:$16 sps:$4 sm:$0xff]   ;;  %v7514_v22 = vld [vmem:[#allocation2 + $0x480] ss:$16 sps:$4 sm:$0xff]   ;;  %v8900_v40 = vpack.c.bf16 %v110_v38, %v110_v38 }
  0x76   :  { %4820 = vmatprep.subr.bf16.mxu1 %v7462_v41  ;;  %v7519_v21 = vld [vmem:[#allocation2 + $0x684] ss:$16 sps:$4 sm:$0xff]   ;;  %v7517_v23 = vld [vmem:[#allocation2 + $0x680] ss:$16 sps:$4 sm:$0xff]  }
  0x77   :  { %v7522_v24 = vld [vmem:[#allocation2 + $0x464] ss:$16 sps:$4 sm:$0xff]   ;;  %v7520_v26 = vld [vmem:[#allocation2 + $0x460] ss:$16 sps:$4 sm:$0xff]  }
  0x78   :  { %4780 = vmatpush2.bf16.msra.mxu0 %v7464_v42  ;;  %v7525_v25 = vld [vmem:[#allocation2 + $0x664] ss:$16 sps:$4 sm:$0xff]   ;;  %v7523_v27 = vld [vmem:[#allocation2 + $0x660] ss:$16 sps:$4 sm:$0xff]  }
  0x79   :  { %4821 = vmatpush2.bf16.msra.mxu1 %v7465_v43  ;;  %4781 = vmatprep.subr.bf16.mxu0 %v7466_v44  ;;  %v7528_v28 = vld [vmem:[#allocation2 + $0x444] ss:$16 sps:$4 sm:$0xff]   ;;  %v7526_v30 = vld [vmem:[#allocation2 + $0x440] ss:$16 sps:$4 sm:$0xff]  }
  0x7a   :  { %4822 = vmatprep.subr.bf16.mxu1 %v7468_v45  ;;  %v7531_v29 = vld [vmem:[#allocation2 + $0x644] ss:$16 sps:$4 sm:$0xff]   ;;  %v7529_v31 = vld [vmem:[#allocation2 + $0x640] ss:$16 sps:$4 sm:$0xff]  }
  0x7b   :  { %v7534_v32 = vld [vmem:[#allocation2 + $0x424] ss:$16 sps:$4 sm:$0xff]   ;;  %v7532_v35 = vld [vmem:[#allocation2 + $0x420] ss:$16 sps:$4 sm:$0xff]  }
  0x7c   :  { %4782 = vmatpush2.bf16.msra.mxu0 %v7470_v47  ;;  %v7537_v33 = vld [vmem:[#allocation2 + $0x624] ss:$16 sps:$4 sm:$0xff]   ;;  %v7535_v36 = vld [vmem:[#allocation2 + $0x620] ss:$16 sps:$4 sm:$0xff]  }
  0x7d   :  { %4823 = vmatpush2.bf16.msra.mxu1 %v7471_v48  ;;  %4783 = vmatprep.subr.bf16.mxu0 %v7472_v51  ;;  %v7540_v39 = vld [vmem:[#allocation2 + $0x404] ss:$16 sps:$4 sm:$0xff]   ;;  %v7538_v42 = vld [vmem:[#allocation2 + $0x400] ss:$16 sps:$4 sm:$0xff]  }
  0x7e   :  { %4824 = vmatprep.subr.bf16.mxu1 %v7474_v53  ;;  %v7543_v41 = vld [vmem:[#allocation2 + $0x604] ss:$16 sps:$4 sm:$0xff]   ;;  %v7541_v43 = vld [vmem:[#allocation2 + $0x600] ss:$16 sps:$4 sm:$0xff]  }
  0x7f   :  { %v7546_v44 = vld [vmem:[#allocation2 + $0x5e4] ss:$16 sps:$4 sm:$0xff]   ;;  %v7544_v46 = vld [vmem:[#allocation2 + $0x5e0] ss:$16 sps:$4 sm:$0xff]  }
  0x80   :  { %4784 = vmatpush2.bf16.msra.mxu0 %v7476_v54  ;;  %v7549_v45 = vld [vmem:[#allocation2 + $0x7e4] ss:$16 sps:$4 sm:$0xff]   ;;  %v7547_v47 = vld [vmem:[#allocation2 + $0x7e0] ss:$16 sps:$4 sm:$0xff]  }
  0x81   :  { %4825 = vmatpush2.bf16.msra.mxu1 %v7477_v55  ;;  %4785 = vmatprep.subr.bf16.mxu0 %v7478_v56  ;;  %v7552_v48 = vld [vmem:[#allocation2 + $0x5c4] ss:$16 sps:$4 sm:$0xff]   ;;  %v7550_v51 = vld [vmem:[#allocation2 + $0x5c0] ss:$16 sps:$4 sm:$0xff]  }
  0x82   :  { %4826 = vmatprep.subr.bf16.mxu1 %v7480_v57  ;;  %v7555_v50 = vld [vmem:[#allocation2 + $0x7c4] ss:$16 sps:$4 sm:$0xff]   ;;  %v7553_v53 = vld [vmem:[#allocation2 + $0x7c0] ss:$16 sps:$4 sm:$0xff]  }
  0x83   :  { %v7558_v54 = vld [vmem:[#allocation2 + $0x5a4] ss:$16 sps:$4 sm:$0xff]   ;;  %v7556_v56 = vld [vmem:[#allocation2 + $0x5a0] ss:$16 sps:$4 sm:$0xff]  }
  0x84   :  { %4786 = vmatpush2.bf16.msra.mxu0 %v7482_v58  ;;  %v7561_v55 = vld [vmem:[#allocation2 + $0x7a4] ss:$16 sps:$4 sm:$0xff]   ;;  %v7559_v57 = vld [vmem:[#allocation2 + $0x7a0] ss:$16 sps:$4 sm:$0xff]  }
  0x85   :  { %4827 = vmatpush2.bf16.msra.mxu1 %v7483_v59  ;;  %4787 = vmatprep.subr.bf16.mxu0 %v7484_v60  ;;  %v7564_v58 = vld [vmem:[#allocation2 + $0x584] ss:$16 sps:$4 sm:$0xff]   ;;  %v7562_v60 = vld [vmem:[#allocation2 + $0x580] ss:$16 sps:$4 sm:$0xff]  }
  0x86   :  { %4828 = vmatprep.subr.bf16.mxu1 %v7486_v61  ;;  %v7567_v59 = vld [vmem:[#allocation2 + $0x784] ss:$16 sps:$4 sm:$0xff]   ;;  %v7565_v61 = vld [vmem:[#allocation2 + $0x780] ss:$16 sps:$4 sm:$0xff]  }
  0x87   :  { %v7574_v4 = vld [vmem:[#allocation2 + $0x540] ss:$16 sps:$4 sm:$0xff]   ;;  %v7615_v38 = vld [vmem:[#allocation2 + $0xa84] ss:$16 sps:$4 sm:$0xff]  }
  0x88   :  { %4788 = vmatpush2.bf16.msra.mxu0 %v7488_v62  ;;  %v7570_v62 = vld [vmem:[#allocation2 + $0x564] ss:$16 sps:$4 sm:$0xff]   ;;  %v7577_v5 = vld [vmem:[#allocation2 + $0x740] ss:$16 sps:$4 sm:$0xff]  }
  0x89   :  { %4829 = vmatpush2.bf16.msra.mxu1 %v7489_v63  ;;  %4789 = vmatprep.subr.bf16.mxu0 %v7490_v0  ;;  %v7573_v63 = vld [vmem:[#allocation2 + $0x764] ss:$16 sps:$4 sm:$0xff]   ;;  %v7568_v0 = vld [vmem:[#allocation2 + $0x560] ss:$16 sps:$4 sm:$0xff]  }
  0x8a   :  { %4830 = vmatprep.subr.bf16.mxu1 %v7492_v1  ;;  %v7571_v1 = vld [vmem:[#allocation2 + $0x760] ss:$16 sps:$4 sm:$0xff]  }
  0x8b   :  { %v7604_v34 = vld [vmem:[#allocation2 + $0x8a0] ss:$16 sps:$4 sm:$0xff]  }
  0x8c   :  { %4790 = vmatpush2.bf16.msra.mxu0 %v7494_v2  ;;  %v7576_v2 = vld [vmem:[#allocation2 + $0x544] ss:$16 sps:$4 sm:$0xff]  }
  0x8d   :  { %4831 = vmatpush2.bf16.msra.mxu1 %v7495_v3  ;;  %4841 = vmatprep.subr.bf16.mxu0 %v7498_v6  ;;  %v7579_v3 = vld [vmem:[#allocation2 + $0x744] ss:$16 sps:$4 sm:$0xff]  }
  0x8e   :  { %4882 = vmatprep.subr.bf16.mxu1 %v7501_v7  ;;  %v7582_v6 = vld [vmem:[#allocation2 + $0x524] ss:$16 sps:$4 sm:$0xff]  }
  0x8f   :  { %4792 = vmatmul.mubr.bf16.vlgmr.msra.gmra.mxu0 %v8886_v8  ;;  %v7585_v7 = vld [vmem:[#allocation2 + $0x724] ss:$16 sps:$4 sm:$0xff]  }
  0x90   :  { %4833 = vmatmul.mubr.bf16.vlgmr.msra.gmra.mxu1 %v8888_v9  ;;  %4842 = vmatpush1.bf16.msra.mxu0 %v7496_v10  ;;  %v7580_v10 = vld [vmem:[#allocation2 + $0x520] ss:$16 sps:$4 sm:$0xff]  }
  0x91   :  { %4883 = vmatpush1.bf16.msra.mxu1 %v7499_v11  ;;  %4843 = vmatprep.subr.bf16.mxu0 %v7504_v12  ;;  %v7583_v11 = vld [vmem:[#allocation2 + $0x720] ss:$16 sps:$4 sm:$0xff]   ;;  %v7588_v12 = vld [vmem:[#allocation2 + $0x504] ss:$16 sps:$4 sm:$0xff]  }
  0x92   :  { %4884 = vmatprep.subr.bf16.mxu1 %v7507_v13  ;;  %4873 = vmatprep.mubr.bf16.mxu0 %v8895_v37  ;;  %v7591_v13 = vld [vmem:[#allocation2 + $0x704] ss:$16 sps:$4 sm:$0xff]  }
  0x93   :  { %4914 = vmatprep.mubr.bf16.mxu1 %v8900_v40 }
  0x94   :  { %4844 = vmatpush1.bf16.msra.mxu0 %v7502_v14  ;;  %v7586_v14 = vld [vmem:[#allocation2 + $0x500] ss:$16 sps:$4 sm:$0xff]  }
  0x95   :  { %4885 = vmatpush1.bf16.msra.mxu1 %v7505_v15  ;;  %4845 = vmatprep.subr.bf16.mxu0 %v7510_v16  ;;  %v7589_v15 = vld [vmem:[#allocation2 + $0x700] ss:$16 sps:$4 sm:$0xff]  }
  0x96   :  { %4886 = vmatprep.subr.bf16.mxu1 %v7513_v17  ;;  %v107_v16 = vld [vmem:[%s9132_s0 + $0x20] sm:$0xff]  ;;  %v109_v17 = vld [vmem:[%s9132_s0 + $0x30] sm:$0xff] }
  0x98   :  { %4846 = vmatpush1.bf16.msra.mxu0 %v7508_v18  ;;  %v7594_v18 = vld [vmem:[#allocation2 + $0x8e4] ss:$16 sps:$4 sm:$0xff]  }
  0x99   :  { %4887 = vmatpush1.bf16.msra.mxu1 %v7511_v19  ;;  %4847 = vmatprep.subr.bf16.mxu0 %v7516_v20  ;;  %v7597_v19 = vld [vmem:[#allocation2 + $0xae4] ss:$16 sps:$4 sm:$0xff]   ;;  %v8910_v20 = vpack.c.bf16 %v107_v16, %v107_v16  ;;  %v7664_v16 = vld [vmem:[#allocation2 + $0x960] ss:$16 sps:$4 sm:$0xff]  }
  0x9a   :  { %4888 = vmatprep.subr.bf16.mxu1 %v7519_v21  ;;  %v8912_v21 = vpack.c.bf16 %v109_v17, %v109_v17  ;;  %v7667_v17 = vld [vmem:[#allocation2 + $0xb60] ss:$16 sps:$4 sm:$0xff]  }
  0x9c   :  { %4848 = vmatpush1.bf16.msra.mxu0 %v7514_v22  ;;  %v7592_v22 = vld [vmem:[#allocation2 + $0x8e0] ss:$16 sps:$4 sm:$0xff]  }
  0x9d   :  { %4889 = vmatpush1.bf16.msra.mxu1 %v7517_v23  ;;  %4849 = vmatprep.subr.bf16.mxu0 %v7522_v24  ;;  %v7595_v23 = vld [vmem:[#allocation2 + $0xae0] ss:$16 sps:$4 sm:$0xff]   ;;  %v7600_v24 = vld [vmem:[#allocation2 + $0x8c4] ss:$16 sps:$4 sm:$0xff]  }
  0x9e   :  { %4890 = vmatprep.subr.bf16.mxu1 %v7525_v25  ;;  %v7603_v25 = vld [vmem:[#allocation2 + $0xac4] ss:$16 sps:$4 sm:$0xff]  }
  0xa0   :  { %4850 = vmatpush1.bf16.msra.mxu0 %v7520_v26  ;;  %v112_v26 = vld [vmem:[%s9132_s0 + $0x48] sm:$0xff] }
  0xa1   :  { %4891 = vmatpush1.bf16.msra.mxu1 %v7523_v27  ;;  %4851 = vmatprep.subr.bf16.mxu0 %v7528_v28  ;;  %v7598_v27 = vld [vmem:[#allocation2 + $0x8c0] ss:$16 sps:$4 sm:$0xff]  }
  0xa2   :  { %4892 = vmatprep.subr.bf16.mxu1 %v7531_v29  ;;  %v7601_v28 = vld [vmem:[#allocation2 + $0xac0] ss:$16 sps:$4 sm:$0xff]   ;;  %v8919_v29 = vpack.c.bf16 %v112_v26, %v112_v26 }
  0xa3   :  { %v7676_v26 = vld [vmem:[#allocation2 + $0x920] ss:$16 sps:$4 sm:$0xff]  }
  0xa4   :  { %4852 = vmatpush1.bf16.msra.mxu0 %v7526_v30  ;;  %v114_v30 = vld [vmem:[%s9132_s0 + $0x58] sm:$0xff] }
  0xa5   :  { %4893 = vmatpush1.bf16.msra.mxu1 %v7529_v31  ;;  %4853 = vmatprep.subr.bf16.mxu0 %v7534_v32  ;;  %v7606_v31 = vld [vmem:[#allocation2 + $0x8a4] ss:$16 sps:$4 sm:$0xff]   ;;  %v8924_v32 = vpack.c.bf16 %v114_v30, %v114_v30 }
  0xa6   :  { %4894 = vmatprep.subr.bf16.mxu1 %v7537_v33  ;;  %v7609_v33 = vld [vmem:[#allocation2 + $0xaa4] ss:$16 sps:$4 sm:$0xff]  }
  0xa7   :  { %v7687_v30 = vld [vmem:[#allocation2 + $0xb04] ss:$16 sps:$4 sm:$0xff]  }
  0xa8   :  { %4854 = vmatpush1.bf16.msra.mxu0 %v7532_v35  ;;  %v7607_v35 = vld [vmem:[#allocation2 + $0xaa0] ss:$16 sps:$4 sm:$0xff]  }
  0xa9   :  { %4895 = vmatpush1.bf16.msra.mxu1 %v7535_v36  ;;  %4855 = vmatprep.subr.bf16.mxu0 %v7540_v39  ;;  %v7612_v36 = vld [vmem:[#allocation2 + $0x884] ss:$16 sps:$4 sm:$0xff]   ;;  %v7610_v39 = vld [vmem:[#allocation2 + $0x880] ss:$16 sps:$4 sm:$0xff]  }
  0xaa   :  { %4896 = vmatprep.subr.bf16.mxu1 %v7543_v41  ;;  %v7613_v41 = vld [vmem:[#allocation2 + $0xa80] ss:$16 sps:$4 sm:$0xff]  }
  0xac   :  { %4856 = vmatpush1.bf16.msra.mxu0 %v7538_v42  ;;  %v7618_v42 = vld [vmem:[#allocation2 + $0x864] ss:$16 sps:$4 sm:$0xff]  }
  0xad   :  { %4897 = vmatpush1.bf16.msra.mxu1 %v7541_v43  ;;  %4857 = vmatprep.subr.bf16.mxu0 %v7546_v44  ;;  %v7621_v43 = vld [vmem:[#allocation2 + $0xa64] ss:$16 sps:$4 sm:$0xff]   ;;  %v7616_v44 = vld [vmem:[#allocation2 + $0x860] ss:$16 sps:$4 sm:$0xff]  }
  0xae   :  { %4898 = vmatprep.subr.bf16.mxu1 %v7549_v45  ;;  %v7619_v45 = vld [vmem:[#allocation2 + $0xa60] ss:$16 sps:$4 sm:$0xff]  }
  0xb0   :  { %4858 = vmatpush2.bf16.msra.mxu0 %v7544_v46  ;;  %v7624_v46 = vld [vmem:[#allocation2 + $0x844] ss:$16 sps:$4 sm:$0xff]  }
  0xb1   :  { %4899 = vmatpush2.bf16.msra.mxu1 %v7547_v47  ;;  %4859 = vmatprep.subr.bf16.mxu0 %v7552_v48  ;;  %v7627_v47 = vld [vmem:[#allocation2 + $0xa44] ss:$16 sps:$4 sm:$0xff]   ;;  %v7622_v48 = vld [vmem:[#allocation2 + $0x840] ss:$16 sps:$4 sm:$0xff]  }
  0xb2   :  { %4900 = vmatprep.subr.bf16.mxu1 %v7555_v50  ;;  %v7625_v50 = vld [vmem:[#allocation2 + $0xa40] ss:$16 sps:$4 sm:$0xff]  }
  0xb4   :  { %4860 = vmatpush2.bf16.msra.mxu0 %v7550_v51  ;;  %v7630_v51 = vld [vmem:[#allocation2 + $0x824] ss:$16 sps:$4 sm:$0xff]  }
  0xb5   :  { %4901 = vmatpush2.bf16.msra.mxu1 %v7553_v53  ;;  %4861 = vmatprep.subr.bf16.mxu0 %v7558_v54  ;;  %v7633_v53 = vld [vmem:[#allocation2 + $0xa24] ss:$16 sps:$4 sm:$0xff]   ;;  %v7628_v54 = vld [vmem:[#allocation2 + $0x820] ss:$16 sps:$4 sm:$0xff]  }
  0xb6   :  { %4902 = vmatprep.subr.bf16.mxu1 %v7561_v55  ;;  %v7631_v55 = vld [vmem:[#allocation2 + $0xa20] ss:$16 sps:$4 sm:$0xff]  }
  0xb8   :  { %4862 = vmatpush2.bf16.msra.mxu0 %v7556_v56  ;;  %v7636_v56 = vld [vmem:[#allocation2 + $0x804] ss:$16 sps:$4 sm:$0xff]  }
  0xb9   :  { %4903 = vmatpush2.bf16.msra.mxu1 %v7559_v57  ;;  %4863 = vmatprep.subr.bf16.mxu0 %v7564_v58  ;;  %v7639_v57 = vld [vmem:[#allocation2 + $0xa04] ss:$16 sps:$4 sm:$0xff]   ;;  %v7634_v58 = vld [vmem:[#allocation2 + $0x800] ss:$16 sps:$4 sm:$0xff]  }
  0xba   :  { %4904 = vmatprep.subr.bf16.mxu1 %v7567_v59  ;;  %v7637_v59 = vld [vmem:[#allocation2 + $0xa00] ss:$16 sps:$4 sm:$0xff]  }
  0xbc   :  { %4864 = vmatpush2.bf16.msra.mxu0 %v7562_v60  ;;  %v7642_v60 = vld [vmem:[#allocation2 + $0x9e4] ss:$16 sps:$4 sm:$0xff]  }
  0xbd   :  { %4905 = vmatpush2.bf16.msra.mxu1 %v7565_v61  ;;  %4865 = vmatprep.subr.bf16.mxu0 %v7570_v62  ;;  %v7645_v61 = vld [vmem:[#allocation2 + $0xbe4] ss:$16 sps:$4 sm:$0xff]   ;;  %v7640_v62 = vld [vmem:[#allocation2 + $0x9e0] ss:$16 sps:$4 sm:$0xff]  }
  0xbe   :  { %4906 = vmatprep.subr.bf16.mxu1 %v7573_v63  ;;  %v7643_v63 = vld [vmem:[#allocation2 + $0xbe0] ss:$16 sps:$4 sm:$0xff]  }
  0xc0   :  { %4866 = vmatpush2.bf16.msra.mxu0 %v7568_v0  ;;  %v7648_v0 = vld [vmem:[#allocation2 + $0x9c4] ss:$16 sps:$4 sm:$0xff]  }
  0xc1   :  { %4907 = vmatpush2.bf16.msra.mxu1 %v7571_v1  ;;  %4867 = vmatprep.subr.bf16.mxu0 %v7576_v2  ;;  %v7651_v1 = vld [vmem:[#allocation2 + $0xbc4] ss:$16 sps:$4 sm:$0xff]   ;;  %v7646_v2 = vld [vmem:[#allocation2 + $0x9c0] ss:$16 sps:$4 sm:$0xff]  }
  0xc2   :  { %4908 = vmatprep.subr.bf16.mxu1 %v7579_v3  ;;  %v7649_v3 = vld [vmem:[#allocation2 + $0xbc0] ss:$16 sps:$4 sm:$0xff]  }
  0xc4   :  { %4868 = vmatpush2.bf16.msra.mxu0 %v7574_v4  ;;  %v7654_v4 = vld [vmem:[#allocation2 + $0x9a4] ss:$16 sps:$4 sm:$0xff]  }
  0xc5   :  { %4909 = vmatpush2.bf16.msra.mxu1 %v7577_v5  ;;  %4869 = vmatprep.subr.bf16.mxu0 %v7582_v6  ;;  %v7657_v5 = vld [vmem:[#allocation2 + $0xba4] ss:$16 sps:$4 sm:$0xff]   ;;  %v7652_v6 = vld [vmem:[#allocation2 + $0x9a0] ss:$16 sps:$4 sm:$0xff]  }
  0xc6   :  { %4910 = vmatprep.subr.bf16.mxu1 %v7585_v7  ;;  %v7655_v7 = vld [vmem:[#allocation2 + $0xba0] ss:$16 sps:$4 sm:$0xff]  }
  0xc8   :  { %4870 = vmatpush2.bf16.msra.mxu0 %v7580_v10  ;;  %v7660_v10 = vld [vmem:[#allocation2 + $0x984] ss:$16 sps:$4 sm:$0xff]  }
  0xc9   :  { %4911 = vmatpush2.bf16.msra.mxu1 %v7583_v11  ;;  %4871 = vmatprep.subr.bf16.mxu0 %v7588_v12  ;;  %v7663_v11 = vld [vmem:[#allocation2 + $0xb84] ss:$16 sps:$4 sm:$0xff]   ;;  %v7658_v12 = vld [vmem:[#allocation2 + $0x980] ss:$16 sps:$4 sm:$0xff]  }
  0xca   :  { %4912 = vmatprep.subr.bf16.mxu1 %v7591_v13  ;;  %v7661_v13 = vld [vmem:[#allocation2 + $0xb80] ss:$16 sps:$4 sm:$0xff]  }
  0xcc   :  { %4872 = vmatpush2.bf16.msra.mxu0 %v7586_v14  ;;  %v7666_v14 = vld [vmem:[#allocation2 + $0x964] ss:$16 sps:$4 sm:$0xff]  }
  0xcd   :  { %4913 = vmatpush2.bf16.msra.mxu1 %v7589_v15  ;;  %4923 = vmatprep.subr.bf16.mxu0 %v7594_v18  ;;  %v7669_v15 = vld [vmem:[#allocation2 + $0xb64] ss:$16 sps:$4 sm:$0xff]  }
  0xce   :  { %4964 = vmatprep.subr.bf16.mxu1 %v7597_v19  ;;  %v7672_v18 = vld [vmem:[#allocation2 + $0x944] ss:$16 sps:$4 sm:$0xff]  }
  0xcf   :  { %4874 = vmatmul.mubr.bf16.vlgmr.msra.gmra.mxu0 %v8910_v20  ;;  %v7675_v19 = vld [vmem:[#allocation2 + $0xb44] ss:$16 sps:$4 sm:$0xff]  }
  0xd0   :  { %4915 = vmatmul.mubr.bf16.vlgmr.msra.gmra.mxu1 %v8912_v21  ;;  %4924 = vmatpush1.bf16.msra.mxu0 %v7592_v22  ;;  %v7670_v22 = vld [vmem:[#allocation2 + $0x940] ss:$16 sps:$4 sm:$0xff]  }
  0xd1   :  { %4965 = vmatpush1.bf16.msra.mxu1 %v7595_v23  ;;  %4925 = vmatprep.subr.bf16.mxu0 %v7600_v24  ;;  %v7673_v23 = vld [vmem:[#allocation2 + $0xb40] ss:$16 sps:$4 sm:$0xff]   ;;  %v7678_v24 = vld [vmem:[#allocation2 + $0x924] ss:$16 sps:$4 sm:$0xff]  }
  0xd2   :  { %4966 = vmatprep.subr.bf16.mxu1 %v7603_v25  ;;  %4955 = vmatprep.mubr.bf16.mxu0 %v8919_v29  ;;  %v7681_v25 = vld [vmem:[#allocation2 + $0xb24] ss:$16 sps:$4 sm:$0xff]  }
  0xd3   :  { %4996 = vmatprep.mubr.bf16.mxu1 %v8924_v32 }
  0xd4   :  { %4926 = vmatpush1.bf16.msra.mxu0 %v7598_v27  ;;  %v7679_v27 = vld [vmem:[#allocation2 + $0xb20] ss:$16 sps:$4 sm:$0xff]  }
  0xd5   :  { %4967 = vmatpush1.bf16.msra.mxu1 %v7601_v28  ;;  %4927 = vmatprep.subr.bf16.mxu0 %v7606_v31  ;;  %v7684_v28 = vld [vmem:[#allocation2 + $0x904] ss:$16 sps:$4 sm:$0xff]   ;;  %v7682_v31 = vld [vmem:[#allocation2 + $0x900] ss:$16 sps:$4 sm:$0xff]  }
  0xd6   :  { %4968 = vmatprep.subr.bf16.mxu1 %v7609_v33  ;;  %v7685_v33 = vld [vmem:[#allocation2 + $0xb00] ss:$16 sps:$4 sm:$0xff]  }
  0xd8   :  { %4928 = vmatpush1.bf16.msra.mxu0 %v7604_v34  ;;  %v111_v34 = vld [vmem:[%s9132_s0 + $0x40] sm:$0xff] }
  0xd9   :  { %4969 = vmatpush1.bf16.msra.mxu1 %v7607_v35  ;;  %4929 = vmatprep.subr.bf16.mxu0 %v7612_v36  ;;  %v113_v35 = vld [vmem:[%s9132_s0 + $0x50] sm:$0xff] }
  0xda   :  { %4970 = vmatprep.subr.bf16.mxu1 %v7615_v38  ;;  %v7690_v36 = vld [vmem:[#allocation2 + $0xce4] ss:$16 sps:$4 sm:$0xff]  }
  0xdb   :  { %v7693_v38 = vld [vmem:[#allocation2 + $0xee4] ss:$16 sps:$4 sm:$0xff]  }
  0xdc   :  { %4930 = vmatpush1.bf16.msra.mxu0 %v7610_v39  ;;  %v7688_v39 = vld [vmem:[#allocation2 + $0xce0] ss:$16 sps:$4 sm:$0xff]  }
  0xdd   :  { %4971 = vmatpush1.bf16.msra.mxu1 %v7613_v41  ;;  %4931 = vmatprep.subr.bf16.mxu0 %v7618_v42  ;;  %v7691_v41 = vld [vmem:[#allocation2 + $0xee0] ss:$16 sps:$4 sm:$0xff]   ;;  %v8934_v42 = vpack.c.bf16 %v111_v34, %v111_v34 }
  0xde   :  { %4972 = vmatprep.subr.bf16.mxu1 %v7621_v43  ;;  %v8936_v43 = vpack.c.bf16 %v113_v35, %v113_v35  ;;  %v7754_v34 = vld [vmem:[#allocation2 + $0xd80] ss:$16 sps:$4 sm:$0xff]  }
  0xdf   :  { %v7757_v35 = vld [vmem:[#allocation2 + $0xf80] ss:$16 sps:$4 sm:$0xff]  }
  0xe0   :  { %4932 = vmatpush1.bf16.msra.mxu0 %v7616_v44  ;;  %v116_v44 = vld [vmem:[%s9132_s0 + $0x68] sm:$0xff] }
  0xe1   :  { %4973 = vmatpush1.bf16.msra.mxu1 %v7619_v45  ;;  %4933 = vmatprep.subr.bf16.mxu0 %v7624_v46  ;;  %v118_v45 = vld [vmem:[%s9132_s0 + $0x78] sm:$0xff]  ;;  %v7696_v46 = vld [vmem:[#allocation2 + $0xcc4] ss:$16 sps:$4 sm:$0xff]  }
  0xe2   :  { %4974 = vmatprep.subr.bf16.mxu1 %v7627_v47  ;;  %v7699_v47 = vld [vmem:[#allocation2 + $0xec4] ss:$16 sps:$4 sm:$0xff]  }
  0xe4   :  { %4934 = vmatpush1.bf16.msra.mxu0 %v7622_v48  ;;  %v8944_v48 = vpack.c.bf16 %v116_v44, %v116_v44  ;;  %v7768_v44 = vld [vmem:[#allocation2 + $0xd44] ss:$16 sps:$4 sm:$0xff]  }
  0xe5   :  { %4975 = vmatpush1.bf16.msra.mxu1 %v7625_v50  ;;  %4935 = vmatprep.subr.bf16.mxu0 %v7630_v51  ;;  %v8946_v50 = vpack.c.bf16 %v118_v45, %v118_v45  ;;  %v7694_v51 = vld [vmem:[#allocation2 + $0xcc0] ss:$16 sps:$4 sm:$0xff]   ;;  %v7771_v45 = vld [vmem:[#allocation2 + $0xf44] ss:$16 sps:$4 sm:$0xff]  }
  0xe6   :  { %4976 = vmatprep.subr.bf16.mxu1 %v7633_v53  ;;  %v7697_v53 = vld [vmem:[#allocation2 + $0xec0] ss:$16 sps:$4 sm:$0xff]  }
  0xe8   :  { %4936 = vmatpush1.bf16.msra.mxu0 %v7628_v54  ;;  %v7702_v54 = vld [vmem:[#allocation2 + $0xca4] ss:$16 sps:$4 sm:$0xff]  }
  0xe9   :  { %4977 = vmatpush1.bf16.msra.mxu1 %v7631_v55  ;;  %4937 = vmatprep.subr.bf16.mxu0 %v7636_v56  ;;  %v7705_v55 = vld [vmem:[#allocation2 + $0xea4] ss:$16 sps:$4 sm:$0xff]   ;;  %v7700_v56 = vld [vmem:[#allocation2 + $0xca0] ss:$16 sps:$4 sm:$0xff]  }
  0xea   :  { %4978 = vmatprep.subr.bf16.mxu1 %v7639_v57  ;;  %v7703_v57 = vld [vmem:[#allocation2 + $0xea0] ss:$16 sps:$4 sm:$0xff]  }
  0xec   :  { %4938 = vmatpush1.bf16.msra.mxu0 %v7634_v58  ;;  %v7708_v58 = vld [vmem:[#allocation2 + $0xc84] ss:$16 sps:$4 sm:$0xff]  }
  0xed   :  { %4979 = vmatpush1.bf16.msra.mxu1 %v7637_v59  ;;  %4939 = vmatprep.subr.bf16.mxu0 %v7642_v60  ;;  %v7711_v59 = vld [vmem:[#allocation2 + $0xe84] ss:$16 sps:$4 sm:$0xff]   ;;  %v7706_v60 = vld [vmem:[#allocation2 + $0xc80] ss:$16 sps:$4 sm:$0xff]  }
  0xee   :  { %4980 = vmatprep.subr.bf16.mxu1 %v7645_v61  ;;  %v7709_v61 = vld [vmem:[#allocation2 + $0xe80] ss:$16 sps:$4 sm:$0xff]  }
  0xf0   :  { %4940 = vmatpush2.bf16.msra.mxu0 %v7640_v62  ;;  %v7714_v62 = vld [vmem:[#allocation2 + $0xc64] ss:$16 sps:$4 sm:$0xff]  }
  0xf1   :  { %4981 = vmatpush2.bf16.msra.mxu1 %v7643_v63  ;;  %4941 = vmatprep.subr.bf16.mxu0 %v7648_v0  ;;  %v7717_v63 = vld [vmem:[#allocation2 + $0xe64] ss:$16 sps:$4 sm:$0xff]   ;;  %v7712_v0 = vld [vmem:[#allocation2 + $0xc60] ss:$16 sps:$4 sm:$0xff]  }
  0xf2   :  { %4982 = vmatprep.subr.bf16.mxu1 %v7651_v1  ;;  %v7715_v1 = vld [vmem:[#allocation2 + $0xe60] ss:$16 sps:$4 sm:$0xff]  }
  0xf4   :  { %4942 = vmatpush2.bf16.msra.mxu0 %v7646_v2  ;;  %v7720_v2 = vld [vmem:[#allocation2 + $0xc44] ss:$16 sps:$4 sm:$0xff]  }
  0xf5   :  { %4983 = vmatpush2.bf16.msra.mxu1 %v7649_v3  ;;  %4943 = vmatprep.subr.bf16.mxu0 %v7654_v4  ;;  %v7723_v3 = vld [vmem:[#allocation2 + $0xe44] ss:$16 sps:$4 sm:$0xff]   ;;  %v7718_v4 = vld [vmem:[#allocation2 + $0xc40] ss:$16 sps:$4 sm:$0xff]  }
  0xf6   :  { %4984 = vmatprep.subr.bf16.mxu1 %v7657_v5  ;;  %v7721_v5 = vld [vmem:[#allocation2 + $0xe40] ss:$16 sps:$4 sm:$0xff]  }
  0xf8   :  { %4944 = vmatpush2.bf16.msra.mxu0 %v7652_v6  ;;  %v7726_v6 = vld [vmem:[#allocation2 + $0xc24] ss:$16 sps:$4 sm:$0xff]  }
  0xf9   :  { %4985 = vmatpush2.bf16.msra.mxu1 %v7655_v7  ;;  %4945 = vmatprep.subr.bf16.mxu0 %v7660_v10  ;;  %v7729_v7 = vld [vmem:[#allocation2 + $0xe24] ss:$16 sps:$4 sm:$0xff]   ;;  %v7724_v10 = vld [vmem:[#allocation2 + $0xc20] ss:$16 sps:$4 sm:$0xff]  }
  0xfa   :  { %4986 = vmatprep.subr.bf16.mxu1 %v7663_v11  ;;  %v7727_v11 = vld [vmem:[#allocation2 + $0xe20] ss:$16 sps:$4 sm:$0xff]  }
  0xfc   :  { %4946 = vmatpush2.bf16.msra.mxu0 %v7658_v12  ;;  %v7732_v12 = vld [vmem:[#allocation2 + $0xc04] ss:$16 sps:$4 sm:$0xff]  }
  0xfd   :  { %4987 = vmatpush2.bf16.msra.mxu1 %v7661_v13  ;;  %4947 = vmatprep.subr.bf16.mxu0 %v7666_v14  ;;  %v7735_v13 = vld [vmem:[#allocation2 + $0xe04] ss:$16 sps:$4 sm:$0xff]   ;;  %v7730_v14 = vld [vmem:[#allocation2 + $0xc00] ss:$16 sps:$4 sm:$0xff]  }
  0xfe   :  { %4988 = vmatprep.subr.bf16.mxu1 %v7669_v15  ;;  %v7733_v15 = vld [vmem:[#allocation2 + $0xe00] ss:$16 sps:$4 sm:$0xff]  }
 0x100   :  { %4948 = vmatpush2.bf16.msra.mxu0 %v7664_v16  ;;  %v7738_v16 = vld [vmem:[#allocation2 + $0xde4] ss:$16 sps:$4 sm:$0xff]  }
 0x101   :  { %4989 = vmatpush2.bf16.msra.mxu1 %v7667_v17  ;;  %4949 = vmatprep.subr.bf16.mxu0 %v7672_v18  ;;  %v7741_v17 = vld [vmem:[#allocation2 + $0xfe4] ss:$16 sps:$4 sm:$0xff]   ;;  %v7736_v18 = vld [vmem:[#allocation2 + $0xde0] ss:$16 sps:$4 sm:$0xff]  }
 0x102   :  { %4990 = vmatprep.subr.bf16.mxu1 %v7675_v19  ;;  %v7739_v19 = vld [vmem:[#allocation2 + $0xfe0] ss:$16 sps:$4 sm:$0xff]  }
 0x104   :  { %4950 = vmatpush2.bf16.msra.mxu0 %v7670_v22  ;;  %v7744_v22 = vld [vmem:[#allocation2 + $0xdc4] ss:$16 sps:$4 sm:$0xff]  }
 0x105   :  { %4991 = vmatpush2.bf16.msra.mxu1 %v7673_v23  ;;  %4951 = vmatprep.subr.bf16.mxu0 %v7678_v24  ;;  %v7747_v23 = vld [vmem:[#allocation2 + $0xfc4] ss:$16 sps:$4 sm:$0xff]   ;;  %v7742_v24 = vld [vmem:[#allocation2 + $0xdc0] ss:$16 sps:$4 sm:$0xff]  }
 0x106   :  { %4992 = vmatprep.subr.bf16.mxu1 %v7681_v25  ;;  %v7745_v25 = vld [vmem:[#allocation2 + $0xfc0] ss:$16 sps:$4 sm:$0xff]  }
 0x108   :  { %4952 = vmatpush2.bf16.msra.mxu0 %v7676_v26  ;;  %v7750_v26 = vld [vmem:[#allocation2 + $0xda4] ss:$16 sps:$4 sm:$0xff]  }
 0x109   :  { %4993 = vmatpush2.bf16.msra.mxu1 %v7679_v27  ;;  %4953 = vmatprep.subr.bf16.mxu0 %v7684_v28  ;;  %v7753_v27 = vld [vmem:[#allocation2 + $0xfa4] ss:$16 sps:$4 sm:$0xff]   ;;  %v7748_v28 = vld [vmem:[#allocation2 + $0xda0] ss:$16 sps:$4 sm:$0xff]  }
 0x10a   :  { %4994 = vmatprep.subr.bf16.mxu1 %v7687_v30  ;;  %v7751_v30 = vld [vmem:[#allocation2 + $0xfa0] ss:$16 sps:$4 sm:$0xff]  }
 0x10c   :  { %4954 = vmatpush2.bf16.msra.mxu0 %v7682_v31  ;;  %v7756_v31 = vld [vmem:[#allocation2 + $0xd84] ss:$16 sps:$4 sm:$0xff]  }
 0x10d   :  { %4995 = vmatpush2.bf16.msra.mxu1 %v7685_v33  ;;  %5005 = vmatprep.subr.bf16.mxu0 %v7690_v36  ;;  %v7759_v33 = vld [vmem:[#allocation2 + $0xf84] ss:$16 sps:$4 sm:$0xff]  }
 0x10e   :  { %5046 = vmatprep.subr.bf16.mxu1 %v7693_v38  ;;  %v7762_v36 = vld [vmem:[#allocation2 + $0xd64] ss:$16 sps:$4 sm:$0xff]  }
 0x10f   :  { %4956 = vmatmul.mubr.bf16.vlgmr.msra.gmra.mxu0 %v8934_v42  ;;  %v7765_v38 = vld [vmem:[#allocation2 + $0xf64] ss:$16 sps:$4 sm:$0xff]  }
 0x110   :  { %4997 = vmatmul.mubr.bf16.vlgmr.msra.gmra.mxu1 %v8936_v43  ;;  %5006 = vmatpush1.bf16.msra.mxu0 %v7688_v39  ;;  %v7760_v39 = vld [vmem:[#allocation2 + $0xd60] ss:$16 sps:$4 sm:$0xff]  }
 0x111   :  { %5047 = vmatpush1.bf16.msra.mxu1 %v7691_v41  ;;  %5007 = vmatprep.subr.bf16.mxu0 %v7696_v46  ;;  %v7763_v41 = vld [vmem:[#allocation2 + $0xf60] ss:$16 sps:$4 sm:$0xff]  }
 0x112   :  { %5048 = vmatprep.subr.bf16.mxu1 %v7699_v47  ;;  %5037 = vmatprep.mubr.bf16.mxu0 %v8944_v48  ;;  %v7766_v46 = vld [vmem:[#allocation2 + $0xd40] ss:$16 sps:$4 sm:$0xff]  }
 0x113   :  { %5078 = vmatprep.mubr.bf16.mxu1 %v8946_v50  ;;  %v7769_v47 = vld [vmem:[#allocation2 + $0xf40] ss:$16 sps:$4 sm:$0xff]  }
 0x114   :  { %5008 = vmatpush1.bf16.msra.mxu0 %v7694_v51  ;;  %v7774_v51 = vld [vmem:[#allocation2 + $0xd24] ss:$16 sps:$4 sm:$0xff]  }
 0x115   :  { %5049 = vmatpush1.bf16.msra.mxu1 %v7697_v53  ;;  %5009 = vmatprep.subr.bf16.mxu0 %v7702_v54  ;;  %v7777_v53 = vld [vmem:[#allocation2 + $0xf24] ss:$16 sps:$4 sm:$0xff]   ;;  %v7772_v54 = vld [vmem:[#allocation2 + $0xd20] ss:$16 sps:$4 sm:$0xff]  }
 0x116   :  { %5050 = vmatprep.subr.bf16.mxu1 %v7705_v55  ;;  %v7775_v55 = vld [vmem:[#allocation2 + $0xf20] ss:$16 sps:$4 sm:$0xff]  }
 0x118   :  { %5010 = vmatpush1.bf16.msra.mxu0 %v7700_v56  ;;  %v7780_v56 = vld [vmem:[#allocation2 + $0xd04] ss:$16 sps:$4 sm:$0xff]  }
 0x119   :  { %5051 = vmatpush1.bf16.msra.mxu1 %v7703_v57  ;;  %5011 = vmatprep.subr.bf16.mxu0 %v7708_v58  ;;  %v7783_v57 = vld [vmem:[#allocation2 + $0xf04] ss:$16 sps:$4 sm:$0xff]   ;;  %v7778_v58 = vld [vmem:[#allocation2 + $0xd00] ss:$16 sps:$4 sm:$0xff]  }
 0x11a   :  { %5052 = vmatprep.subr.bf16.mxu1 %v7711_v59  ;;  %v7781_v59 = vld [vmem:[#allocation2 + $0xf00] ss:$16 sps:$4 sm:$0xff]  }
 0x11c   :  { %5012 = vmatpush1.bf16.msra.mxu0 %v7706_v60  ;;  %v115_v60 = vld [vmem:[%s9132_s0 + $0x60] sm:$0xff] }
 0x11d   :  { %5053 = vmatpush1.bf16.msra.mxu1 %v7709_v61  ;;  %5013 = vmatprep.subr.bf16.mxu0 %v7714_v62  ;;  %v117_v61 = vld [vmem:[%s9132_s0 + $0x70] sm:$0xff] }
 0x11e   :  { %5054 = vmatprep.subr.bf16.mxu1 %v7717_v63  ;;  %v7786_v62 = vld [vmem:[#allocation2 + $0x10e4] ss:$16 sps:$4 sm:$0xff]  }
 0x11f   :  { %v7789_v63 = vld [vmem:[#allocation2 + $0x12e4] ss:$16 sps:$4 sm:$0xff]  }
 0x120   :  { %5014 = vmatpush1.bf16.msra.mxu0 %v7712_v0  ;;  %v7784_v0 = vld [vmem:[#allocation2 + $0x10e0] ss:$16 sps:$4 sm:$0xff]  }
 0x121   :  { %5055 = vmatpush1.bf16.msra.mxu1 %v7715_v1  ;;  %5015 = vmatprep.subr.bf16.mxu0 %v7720_v2  ;;  %v7787_v1 = vld [vmem:[#allocation2 + $0x12e0] ss:$16 sps:$4 sm:$0xff]   ;;  %v8958_v2 = vpack.c.bf16 %v115_v60, %v115_v60  ;;  %v7834_v60 = vld [vmem:[#allocation2 + $0x11e4] ss:$16 sps:$4 sm:$0xff]  }
 0x122   :  { %5056 = vmatprep.subr.bf16.mxu1 %v7723_v3  ;;  %v8960_v3 = vpack.c.bf16 %v117_v61, %v117_v61  ;;  %v7837_v61 = vld [vmem:[#allocation2 + $0x13e4] ss:$16 sps:$4 sm:$0xff]  }
 0x124   :  { %5016 = vmatpush1.bf16.msra.mxu0 %v7718_v4  ;;  %v120_v4 = vld [vmem:[%s9132_s0 + $0x88] sm:$0xff] }
 0x125   :  { %5057 = vmatpush1.bf16.msra.mxu1 %v7721_v5  ;;  %5017 = vmatprep.subr.bf16.mxu0 %v7726_v6  ;;  %v122_v5 = vld [vmem:[%s9132_s0 + $0x98] sm:$0xff]  ;;  %v7792_v6 = vld [vmem:[#allocation2 + $0x10c4] ss:$16 sps:$4 sm:$0xff]  }
 0x126   :  { %5058 = vmatprep.subr.bf16.mxu1 %v7729_v7  ;;  %v7795_v7 = vld [vmem:[#allocation2 + $0x12c4] ss:$16 sps:$4 sm:$0xff]  }
 0x128   :  { %5018 = vmatpush1.bf16.msra.mxu0 %v7724_v10  ;;  %v8968_v10 = vpack.c.bf16 %v120_v4, %v120_v4  ;;  %v7838_v4 = vld [vmem:[#allocation2 + $0x11c0] ss:$16 sps:$4 sm:$0xff]  }
 0x129   :  { %5059 = vmatpush1.bf16.msra.mxu1 %v7727_v11  ;;  %5019 = vmatprep.subr.bf16.mxu0 %v7732_v12  ;;  %v8970_v11 = vpack.c.bf16 %v122_v5, %v122_v5  ;;  %v7841_v5 = vld [vmem:[#allocation2 + $0x13c0] ss:$16 sps:$4 sm:$0xff]  }
 0x12a   :  { %5060 = vmatprep.subr.bf16.mxu1 %v7735_v13 }
 0x12c   :  { %5020 = vmatpush1.bf16.msra.mxu0 %v7730_v14  ;;  %v7790_v14 = vld [vmem:[#allocation2 + $0x10c0] ss:$16 sps:$4 sm:$0xff]  }
 0x12d   :  { %5061 = vmatpush1.bf16.msra.mxu1 %v7733_v15  ;;  %5021 = vmatprep.subr.bf16.mxu0 %v7738_v16  ;;  %v7793_v15 = vld [vmem:[#allocation2 + $0x12c0] ss:$16 sps:$4 sm:$0xff]  }
 0x12e   :  { %5062 = vmatprep.subr.bf16.mxu1 %v7741_v17  ;;  %v7798_v17 = vld [vmem:[#allocation2 + $0x10a4] ss:$16 sps:$4 sm:$0xff]  }
 0x130   :  { %5022 = vmatpush2.bf16.msra.mxu0 %v7736_v18 }
 0x131   :  { %5063 = vmatpush2.bf16.msra.mxu1 %v7739_v19  ;;  %5023 = vmatprep.subr.bf16.mxu0 %v7744_v22  ;;  %v7801_v22 = vld [vmem:[#allocation2 + $0x12a4] ss:$16 sps:$4 sm:$0xff]  }
 0x132   :  { %5064 = vmatprep.subr.bf16.mxu1 %v7747_v23 }
 0x134   :  { %5024 = vmatpush2.bf16.msra.mxu0 %v7742_v24 }
 0x135   :  { %5065 = vmatpush2.bf16.msra.mxu1 %v7745_v25  ;;  %5025 = vmatprep.subr.bf16.mxu0 %v7750_v26  ;;  %v7796_v26 = vld [vmem:[#allocation2 + $0x10a0] ss:$16 sps:$4 sm:$0xff]  }
 0x136   :  { %5066 = vmatprep.subr.bf16.mxu1 %v7753_v27  ;;  %v7799_v27 = vld [vmem:[#allocation2 + $0x12a0] ss:$16 sps:$4 sm:$0xff]  }
 0x138   :  { %5026 = vmatpush2.bf16.msra.mxu0 %v7748_v28  ;;  %v7804_v28 = vld [vmem:[#allocation2 + $0x1084] ss:$16 sps:$4 sm:$0xff]  }
 0x139   :  { %5067 = vmatpush2.bf16.msra.mxu1 %v7751_v30  ;;  %5027 = vmatprep.subr.bf16.mxu0 %v7756_v31 }
 0x13a   :  { %5068 = vmatprep.subr.bf16.mxu1 %v7759_v33  ;;  %v7807_v33 = vld [vmem:[#allocation2 + $0x1284] ss:$16 sps:$4 sm:$0xff]  }
 0x13c   :  { %5028 = vmatpush2.bf16.msra.mxu0 %v7754_v34  ;;  %v7802_v34 = vld [vmem:[#allocation2 + $0x1080] ss:$16 sps:$4 sm:$0xff]  }
 0x13d   :  { %5069 = vmatpush2.bf16.msra.mxu1 %v7757_v35  ;;  %5029 = vmatprep.subr.bf16.mxu0 %v7762_v36  ;;  %v7805_v35 = vld [vmem:[#allocation2 + $0x1280] ss:$16 sps:$4 sm:$0xff]   ;;  %v7810_v36 = vld [vmem:[#allocation2 + $0x1064] ss:$16 sps:$4 sm:$0xff]  }
 0x13e   :  { %5070 = vmatprep.subr.bf16.mxu1 %v7765_v38  ;;  %v7813_v38 = vld [vmem:[#allocation2 + $0x1264] ss:$16 sps:$4 sm:$0xff]  }
 0x140   :  { %5030 = vmatpush2.bf16.msra.mxu0 %v7760_v39  ;;  %v7808_v39 = vld [vmem:[#allocation2 + $0x1060] ss:$16 sps:$4 sm:$0xff]  }
 0x141   :  { %5071 = vmatpush2.bf16.msra.mxu1 %v7763_v41  ;;  %5031 = vmatprep.subr.bf16.mxu0 %v7768_v44  ;;  %v7811_v41 = vld [vmem:[#allocation2 + $0x1260] ss:$16 sps:$4 sm:$0xff]   ;;  %v7816_v44 = vld [vmem:[#allocation2 + $0x1044] ss:$16 sps:$4 sm:$0xff]  }
 0x142   :  { %5072 = vmatprep.subr.bf16.mxu1 %v7771_v45  ;;  %v7819_v45 = vld [vmem:[#allocation2 + $0x1244] ss:$16 sps:$4 sm:$0xff]  }
 0x144   :  { %5032 = vmatpush2.bf16.msra.mxu0 %v7766_v46  ;;  %v7814_v46 = vld [vmem:[#allocation2 + $0x1040] ss:$16 sps:$4 sm:$0xff]  }
 0x145   :  { %5073 = vmatpush2.bf16.msra.mxu1 %v7769_v47  ;;  %5033 = vmatprep.subr.bf16.mxu0 %v7774_v51  ;;  %v7817_v47 = vld [vmem:[#allocation2 + $0x1240] ss:$16 sps:$4 sm:$0xff]   ;;  %v7822_v51 = vld [vmem:[#allocation2 + $0x1024] ss:$16 sps:$4 sm:$0xff]  }
 0x146   :  { %5074 = vmatprep.subr.bf16.mxu1 %v7777_v53  ;;  %v7825_v53 = vld [vmem:[#allocation2 + $0x1224] ss:$16 sps:$4 sm:$0xff]  }
 0x148   :  { %5034 = vmatpush2.bf16.msra.mxu0 %v7772_v54  ;;  %v7820_v54 = vld [vmem:[#allocation2 + $0x1020] ss:$16 sps:$4 sm:$0xff]  }
 0x149   :  { %5075 = vmatpush2.bf16.msra.mxu1 %v7775_v55  ;;  %5035 = vmatprep.subr.bf16.mxu0 %v7780_v56  ;;  %v7823_v55 = vld [vmem:[#allocation2 + $0x1220] ss:$16 sps:$4 sm:$0xff]   ;;  %v7828_v56 = vld [vmem:[#allocation2 + $0x1004] ss:$16 sps:$4 sm:$0xff]  }
 0x14a   :  { %5076 = vmatprep.subr.bf16.mxu1 %v7783_v57  ;;  %v7831_v57 = vld [vmem:[#allocation2 + $0x1204] ss:$16 sps:$4 sm:$0xff]  }
 0x14c   :  { %5036 = vmatpush2.bf16.msra.mxu0 %v7778_v58  ;;  %v7826_v58 = vld [vmem:[#allocation2 + $0x1000] ss:$16 sps:$4 sm:$0xff]  }
 0x14d   :  { %5077 = vmatpush2.bf16.msra.mxu1 %v7781_v59  ;;  %5087 = vmatprep.subr.bf16.mxu0 %v7786_v62  ;;  %v7829_v59 = vld [vmem:[#allocation2 + $0x1200] ss:$16 sps:$4 sm:$0xff]  }
 0x14e   :  { %5128 = vmatprep.subr.bf16.mxu1 %v7789_v63  ;;  %v7832_v62 = vld [vmem:[#allocation2 + $0x11e0] ss:$16 sps:$4 sm:$0xff]  }
 0x14f   :  { %v4793_v12 = vpop.f32.mrf.mxu0  ;;  %5038 = vmatmul.mubr.bf16.vlgmr.msra.gmra.mxu0 %v8958_v2  ;;  %v7835_v63 = vld [vmem:[#allocation2 + $0x13e0] ss:$16 sps:$4 sm:$0xff]  }
 0x150   :  { %v4834_v13 = vpop.f32.mrf.mxu1  ;;  %5079 = vmatmul.mubr.bf16.vlgmr.msra.gmra.mxu1 %v8960_v3  ;;  %5088 = vmatpush1.bf16.msra.mxu0 %v7784_v0  ;;  %v7840_v0 = vld [vmem:[#allocation2 + $0x11c4] ss:$16 sps:$4 sm:$0xff]  }
 0x151   :  { %v8974_v16 = vadd.f32 %v4834_v13, %v4793_v12  ;;  %5129 = vmatpush1.bf16.msra.mxu1 %v7787_v1  ;;  %v4795_v18 = vpop.f32.mrf.mxu0  ;;  %5089 = vmatprep.subr.bf16.mxu0 %v7792_v6  ;;  %v7843_v1 = vld [vmem:[#allocation2 + $0x13c4] ss:$16 sps:$4 sm:$0xff]   ;;  %v7844_v12 = vld [vmem:[#allocation2 + $0x11a0] ss:$16 sps:$4 sm:$0xff]  }
 0x152   :  { %v4836_v19 = vpop.f32.mrf.mxu1  ;;  %5130 = vmatprep.subr.bf16.mxu1 %v7795_v7  ;;  %5119 = vmatprep.mubr.bf16.mxu0 %v8968_v10  ;;  %v7846_v6 = vld [vmem:[#allocation2 + $0x11a4] ss:$16 sps:$4 sm:$0xff]   ;;  %v7847_v13 = vld [vmem:[#allocation2 + $0x13a0] ss:$16 sps:$4 sm:$0xff]  }
 0x153   :  { %v8976_v23 = vadd.f32 %v4836_v19, %v4795_v18  ;;  %5160 = vmatprep.mubr.bf16.mxu1 %v8970_v11  ;;  %v4797_v24 = vpop.f32.mrf.mxu0  ;;  %v7849_v7 = vld [vmem:[#allocation2 + $0x13a4] ss:$16 sps:$4 sm:$0xff]   ;;  %v7853_v18 = vld [vmem:[#allocation2 + $0x1380] ss:$16 sps:$4 sm:$0xff]  }
 0x154   :  { %v4838_v25 = vpop.f32.mrf.mxu1  ;;  %5090 = vmatpush1.bf16.msra.mxu0 %v7790_v14  ;;  %v7852_v14 = vld [vmem:[#allocation2 + $0x1184] ss:$16 sps:$4 sm:$0xff]   ;;  %v7856_v24 = vld [vmem:[#allocation2 + $0x1160] ss:$16 sps:$4 sm:$0xff]  }
 0x155   :  { %5131 = vmatpush1.bf16.msra.mxu1 %v7793_v15  ;;  %v4798_v30 = vpop.f32.mrf.mxu0  ;;  %5091 = vmatprep.subr.bf16.mxu0 %v7798_v17  ;;  %v7855_v15 = vld [vmem:[#allocation2 + $0x1384] ss:$16 sps:$4 sm:$0xff]   ;;  %v7850_v17 = vld [vmem:[#allocation2 + $0x1180] ss:$16 sps:$4 sm:$0xff]  }
 0x156   :  { %v4839_v31 = vpop.f32.mrf.mxu1  ;;  %5132 = vmatprep.subr.bf16.mxu1 %v7801_v22  ;;  %v7858_v19 = vld [vmem:[#allocation2 + $0x1164] ss:$16 sps:$4 sm:$0xff]   ;;  %v7859_v25 = vld [vmem:[#allocation2 + $0x1360] ss:$16 sps:$4 sm:$0xff]  }
 0x157   :  { %v7861_v22 = vld [vmem:[#allocation2 + $0x1364] ss:$16 sps:$4 sm:$0xff]   ;;  %v7865_v30 = vld [vmem:[#allocation2 + $0x1340] ss:$16 sps:$4 sm:$0xff]  }
 0x158   :  { %5092 = vmatpush1.bf16.msra.mxu0 %v7796_v26  ;;  %v7864_v26 = vld [vmem:[#allocation2 + $0x1144] ss:$16 sps:$4 sm:$0xff]  }
 0x159   :  { %5133 = vmatpush1.bf16.msra.mxu1 %v7799_v27  ;;  %5093 = vmatprep.subr.bf16.mxu0 %v7804_v28  ;;  %v7867_v27 = vld [vmem:[#allocation2 + $0x1344] ss:$16 sps:$4 sm:$0xff]   ;;  %v7862_v28 = vld [vmem:[#allocation2 + $0x1140] ss:$16 sps:$4 sm:$0xff]  }
 0x15a   :  { %5134 = vmatprep.subr.bf16.mxu1 %v7807_v33  ;;  %v7870_v31 = vld [vmem:[#allocation2 + $0x1124] ss:$16 sps:$4 sm:$0xff]  }
 0x15b   :  { %v7873_v33 = vld [vmem:[#allocation2 + $0x1324] ss:$16 sps:$4 sm:$0xff]  }
 0x15c   :  { %5094 = vmatpush1.bf16.msra.mxu0 %v7802_v34  ;;  %v7868_v34 = vld [vmem:[#allocation2 + $0x1120] ss:$16 sps:$4 sm:$0xff]  }
 0x15d   :  { %5135 = vmatpush1.bf16.msra.mxu1 %v7805_v35  ;;  %5095 = vmatprep.subr.bf16.mxu0 %v7810_v36  ;;  %v7871_v35 = vld [vmem:[#allocation2 + $0x1320] ss:$16 sps:$4 sm:$0xff]   ;;  %v7876_v36 = vld [vmem:[#allocation2 + $0x1104] ss:$16 sps:$4 sm:$0xff]  }
 0x15e   :  { %5136 = vmatprep.subr.bf16.mxu1 %v7813_v38  ;;  %v7879_v38 = vld [vmem:[#allocation2 + $0x1304] ss:$16 sps:$4 sm:$0xff]  }
 0x160   :  { %5096 = vmatpush1.bf16.msra.mxu0 %v7808_v39  ;;  %v7874_v39 = vld [vmem:[#allocation2 + $0x1100] ss:$16 sps:$4 sm:$0xff]  }
 0x161   :  { %5137 = vmatpush1.bf16.msra.mxu1 %v7811_v41  ;;  %5097 = vmatprep.subr.bf16.mxu0 %v7816_v44  ;;  %v7877_v41 = vld [vmem:[#allocation2 + $0x1300] ss:$16 sps:$4 sm:$0xff]  }
 0x162   :  { %5138 = vmatprep.subr.bf16.mxu1 %v7819_v45  ;;  %v119_v44 = vld [vmem:[%s9132_s0 + $0x80] sm:$0xff]  ;;  %v121_v45 = vld [vmem:[%s9132_s0 + $0x90] sm:$0xff] }
 0x164   :  { %5098 = vmatpush1.bf16.msra.mxu0 %v7814_v46  ;;  %v7882_v46 = vld [vmem:[#allocation2 + $0x14e4] ss:$16 sps:$4 sm:$0xff]  }
 0x165   :  { %5139 = vmatpush1.bf16.msra.mxu1 %v7817_v47  ;;  %5099 = vmatprep.subr.bf16.mxu0 %v7822_v51  ;;  %v7885_v47 = vld [vmem:[#allocation2 + $0x16e4] ss:$16 sps:$4 sm:$0xff]   ;;  %v124_v51 = vld [vmem:[%s9132_s0 + $0xa8] sm:$0xff] }
 0x166   :  { %5140 = vmatprep.subr.bf16.mxu1 %v7825_v53  ;;  %v126_v53 = vld [vmem:[%s9132_s0 + $0xb8] sm:$0xff] }
 0x168   :  { %5100 = vmatpush1.bf16.msra.mxu0 %v7820_v54  ;;  %v7880_v54 = vld [vmem:[#allocation2 + $0x14e0] ss:$16 sps:$4 sm:$0xff]  }
 0x169   :  { %5141 = vmatpush1.bf16.msra.mxu1 %v7823_v55  ;;  %5101 = vmatprep.subr.bf16.mxu0 %v7828_v56  ;;  %v7883_v55 = vld [vmem:[#allocation2 + $0x16e0] ss:$16 sps:$4 sm:$0xff]   ;;  %v8992_v56 = vpack.c.bf16 %v119_v44, %v119_v44 }
 0x16a   :  { %5142 = vmatprep.subr.bf16.mxu1 %v7831_v57  ;;  %v8994_v57 = vpack.c.bf16 %v121_v45, %v121_v45  ;;  %v7916_v44 = vld [vmem:[#allocation2 + $0x1420] ss:$16 sps:$4 sm:$0xff]  }
 0x16b   :  { %v7919_v45 = vld [vmem:[#allocation2 + $0x1620] ss:$16 sps:$4 sm:$0xff]  }
 0x16c   :  { %5102 = vmatpush1.bf16.msra.mxu0 %v7826_v58  ;;  %v7888_v58 = vld [vmem:[#allocation2 + $0x14c4] ss:$16 sps:$4 sm:$0xff]  }
 0x16d   :  { %5143 = vmatpush1.bf16.msra.mxu1 %v7829_v59  ;;  %5103 = vmatprep.subr.bf16.mxu0 %v7834_v60  ;;  %v7891_v59 = vld [vmem:[#allocation2 + $0x16c4] ss:$16 sps:$4 sm:$0xff]   ;;  %v7886_v60 = vld [vmem:[#allocation2 + $0x14c0] ss:$16 sps:$4 sm:$0xff]  }
 0x16e   :  { %5144 = vmatprep.subr.bf16.mxu1 %v7837_v61  ;;  %v7889_v61 = vld [vmem:[#allocation2 + $0x16c0] ss:$16 sps:$4 sm:$0xff]  }
 0x170   :  { %5104 = vmatpush2.bf16.msra.mxu0 %v7832_v62  ;;  %v8996_v62 = vpack.c.bf16 %v124_v51, %v124_v51  ;;  %v7922_v51 = vld [vmem:[#allocation2 + $0x1400] ss:$16 sps:$4 sm:$0xff]  }
 0x171   :  { %5145 = vmatpush2.bf16.msra.mxu1 %v7835_v63  ;;  %5105 = vmatprep.subr.bf16.mxu0 %v7840_v0  ;;  %v8998_v63 = vpack.c.bf16 %v126_v53, %v126_v53  ;;  %v7925_v53 = vld [vmem:[#allocation2 + $0x1600] ss:$16 sps:$4 sm:$0xff]  }
 0x172   :  { %5146 = vmatprep.subr.bf16.mxu1 %v7843_v1 }
 0x174   :  { %5106 = vmatpush2.bf16.msra.mxu0 %v7838_v4 }
 0x175   :  { %5147 = vmatpush2.bf16.msra.mxu1 %v7841_v5  ;;  %5107 = vmatprep.subr.bf16.mxu0 %v7846_v6 }
 0x176   :  { %5148 = vmatprep.subr.bf16.mxu1 %v7849_v7  ;;  %v7894_v7 = vld [vmem:[#allocation2 + $0x14a4] ss:$16 sps:$4 sm:$0xff]  }
 0x178   :  { %5108 = vmatpush2.bf16.msra.mxu0 %v7844_v12  ;;  %v7897_v12 = vld [vmem:[#allocation2 + $0x16a4] ss:$16 sps:$4 sm:$0xff]  }
 0x179   :  { %5149 = vmatpush2.bf16.msra.mxu1 %v7847_v13  ;;  %5109 = vmatprep.subr.bf16.mxu0 %v7852_v14 }
 0x17a   :  { %5150 = vmatprep.subr.bf16.mxu1 %v7855_v15  ;;  %v7892_v15 = vld [vmem:[#allocation2 + $0x14a0] ss:$16 sps:$4 sm:$0xff]  }
 0x17c   :  { %5110 = vmatpush2.bf16.msra.mxu0 %v7850_v17  ;;  %v7895_v17 = vld [vmem:[#allocation2 + $0x16a0] ss:$16 sps:$4 sm:$0xff]  }
 0x17d   :  { %5151 = vmatpush2.bf16.msra.mxu1 %v7853_v18  ;;  %5111 = vmatprep.subr.bf16.mxu0 %v7858_v19 }
 0x17e   :  { %5152 = vmatprep.subr.bf16.mxu1 %v7861_v22 }
 0x180   :  { %5112 = vmatpush2.bf16.msra.mxu0 %v7856_v24 }
 0x181   :  { %5153 = vmatpush2.bf16.msra.mxu1 %v7859_v25  ;;  %5113 = vmatprep.subr.bf16.mxu0 %v7864_v26  ;;  %v7900_v25 = vld [vmem:[#allocation2 + $0x1484] ss:$16 sps:$4 sm:$0xff]  }
 0x182   :  { %5154 = vmatprep.subr.bf16.mxu1 %v7867_v27  ;;  %v7903_v26 = vld [vmem:[#allocation2 + $0x1684] ss:$16 sps:$4 sm:$0xff]   ;;  %v7901_v27 = vld [vmem:[#allocation2 + $0x1680] ss:$16 sps:$4 sm:$0xff]  }
 0x184   :  { %5114 = vmatpush2.bf16.msra.mxu0 %v7862_v28  ;;  %v7906_v28 = vld [vmem:[#allocation2 + $0x1464] ss:$16 sps:$4 sm:$0xff]  }
 0x185   :  { %5155 = vmatpush2.bf16.msra.mxu1 %v7865_v30  ;;  %5115 = vmatprep.subr.bf16.mxu0 %v7870_v31  ;;  %v7909_v30 = vld [vmem:[#allocation2 + $0x1664] ss:$16 sps:$4 sm:$0xff]   ;;  %v7904_v31 = vld [vmem:[#allocation2 + $0x1460] ss:$16 sps:$4 sm:$0xff]  }
 0x186   :  { %5156 = vmatprep.subr.bf16.mxu1 %v7873_v33  ;;  %v7907_v33 = vld [vmem:[#allocation2 + $0x1660] ss:$16 sps:$4 sm:$0xff]  }
 0x188   :  { %5116 = vmatpush2.bf16.msra.mxu0 %v7868_v34  ;;  %v7912_v34 = vld [vmem:[#allocation2 + $0x1444] ss:$16 sps:$4 sm:$0xff]  }
 0x189   :  { %5157 = vmatpush2.bf16.msra.mxu1 %v7871_v35  ;;  %5117 = vmatprep.subr.bf16.mxu0 %v7876_v36  ;;  %v7915_v35 = vld [vmem:[#allocation2 + $0x1644] ss:$16 sps:$4 sm:$0xff]   ;;  %v7910_v36 = vld [vmem:[#allocation2 + $0x1440] ss:$16 sps:$4 sm:$0xff]  }
 0x18a   :  { %5158 = vmatprep.subr.bf16.mxu1 %v7879_v38  ;;  %v7913_v38 = vld [vmem:[#allocation2 + $0x1640] ss:$16 sps:$4 sm:$0xff]  }
 0x18c   :  { %5118 = vmatpush2.bf16.msra.mxu0 %v7874_v39  ;;  %v7918_v39 = vld [vmem:[#allocation2 + $0x1424] ss:$16 sps:$4 sm:$0xff]  }
 0x18d   :  { %5159 = vmatpush2.bf16.msra.mxu1 %v7877_v41  ;;  %5169 = vmatprep.subr.bf16.mxu0 %v7882_v46  ;;  %v7921_v41 = vld [vmem:[#allocation2 + $0x1624] ss:$16 sps:$4 sm:$0xff]  }
 0x18e   :  { %5210 = vmatprep.subr.bf16.mxu1 %v7885_v47  ;;  %v7924_v46 = vld [vmem:[#allocation2 + $0x1404] ss:$16 sps:$4 sm:$0xff]  }
 0x18f   :  { %v4875_v0 = vpop.f32.mrf.mxu0  ;;  %5120 = vmatmul.mubr.bf16.vlgmr.msra.gmra.mxu0 %v8992_v56  ;;  %v7927_v47 = vld [vmem:[#allocation2 + $0x1604] ss:$16 sps:$4 sm:$0xff]  }
 0x190   :  { %v4916_v1 = vpop.f32.mrf.mxu1  ;;  %5161 = vmatmul.mubr.bf16.vlgmr.msra.gmra.mxu1 %v8994_v57  ;;  %v4876_v4 = vadd.f32 %v4875_v0, %v8974_v16  ;;  %5170 = vmatpush1.bf16.msra.mxu0 %v7880_v54  ;;  %v7930_v54 = vld [vmem:[#allocation2 + $0x15e4] ss:$16 sps:$4 sm:$0xff]   ;;  %v7934_v0 = vld [vmem:[#allocation2 + $0x15c0] ss:$16 sps:$4 sm:$0xff]  }
 0x191   :  { %5211 = vmatpush1.bf16.msra.mxu1 %v7883_v55  ;;  %v4877_v5 = vpop.f32.mrf.mxu0  ;;  %5171 = vmatprep.subr.bf16.mxu0 %v7888_v58  ;;  %v7933_v55 = vld [vmem:[#allocation2 + $0x17e4] ss:$16 sps:$4 sm:$0xff]   ;;  %v7928_v58 = vld [vmem:[#allocation2 + $0x15e0] ss:$16 sps:$4 sm:$0xff]  }
 0x192   :  { %v4918_v6 = vpop.f32.mrf.mxu1  ;;  %5212 = vmatprep.subr.bf16.mxu1 %v7891_v59  ;;  %v9003_v13 = vadd.f32 %v4916_v1, %v4876_v4  ;;  %v4878_v14 = vadd.f32 %v4877_v5, %v8976_v23  ;;  %5201 = vmatprep.mubr.bf16.mxu0 %v8996_v62  ;;  %v7898_v23 = vld [vmem:[#allocation2 + $0x1480] ss:$16 sps:$4 sm:$0xff]   ;;  %v7942_v4 = vld [vmem:[#allocation2 + $0x15a4] ss:$16 sps:$4 sm:$0xff]  }
 0x193   :  { %5242 = vmatprep.mubr.bf16.mxu1 %v8998_v63  ;;  %v4879_v18 = vpop.f32.mrf.mxu0  ;;  %v7931_v59 = vld [vmem:[#allocation2 + $0x17e0] ss:$16 sps:$4 sm:$0xff]   ;;  %v7945_v5 = vld [vmem:[#allocation2 + $0x17a4] ss:$16 sps:$4 sm:$0xff]  }
 0x194   :  { %v4920_v16 = vpop.f32.mrf.mxu1  ;;  %v9008_v19 = vadd.f32 %v4918_v6, %v4878_v14  ;;  %5172 = vmatpush1.bf16.msra.mxu0 %v7886_v60  ;;  %v7936_v60 = vld [vmem:[#allocation2 + $0x15c4] ss:$16 sps:$4 sm:$0xff]   ;;  %v7937_v1 = vld [vmem:[#allocation2 + $0x17c0] ss:$16 sps:$4 sm:$0xff]  }
 0x195   :  { %5213 = vmatpush1.bf16.msra.mxu1 %v7889_v61  ;;  %v4880_v22 = vpop.f32.mrf.mxu0  ;;  %5173 = vmatprep.subr.bf16.mxu0 %v7894_v7  ;;  %v7939_v61 = vld [vmem:[#allocation2 + $0x17c4] ss:$16 sps:$4 sm:$0xff]   ;;  %v7940_v6 = vld [vmem:[#allocation2 + $0x15a0] ss:$16 sps:$4 sm:$0xff]  }
 0x196   :  { %v4921_v24 = vpop.f32.mrf.mxu1  ;;  %5214 = vmatprep.subr.bf16.mxu1 %v7897_v12  ;;  %v7943_v7 = vld [vmem:[#allocation2 + $0x17a0] ss:$16 sps:$4 sm:$0xff]   ;;  %v7948_v12 = vld [vmem:[#allocation2 + $0x1584] ss:$16 sps:$4 sm:$0xff]  }
 0x197   :  { %v7951_v14 = vld [vmem:[#allocation2 + $0x1784] ss:$16 sps:$4 sm:$0xff]   ;;  %v7952_v22 = vld [vmem:[#allocation2 + $0x1560] ss:$16 sps:$4 sm:$0xff]  }
 0x198   :  { %5174 = vmatpush1.bf16.msra.mxu0 %v7892_v15  ;;  %v7946_v15 = vld [vmem:[#allocation2 + $0x1580] ss:$16 sps:$4 sm:$0xff]   ;;  %v7954_v18 = vld [vmem:[#allocation2 + $0x1564] ss:$16 sps:$4 sm:$0xff]  }
 0x199   :  { %5215 = vmatpush1.bf16.msra.mxu1 %v7895_v17  ;;  %5175 = vmatprep.subr.bf16.mxu0 %v7900_v25  ;;  %v7949_v17 = vld [vmem:[#allocation2 + $0x1780] ss:$16 sps:$4 sm:$0xff]   ;;  %v7957_v16 = vld [vmem:[#allocation2 + $0x1764] ss:$16 sps:$4 sm:$0xff]  }
 0x19a   :  { %5216 = vmatprep.subr.bf16.mxu1 %v7903_v26  ;;  %v7955_v24 = vld [vmem:[#allocation2 + $0x1760] ss:$16 sps:$4 sm:$0xff]   ;;  %v7960_v25 = vld [vmem:[#allocation2 + $0x1544] ss:$16 sps:$4 sm:$0xff]  }
 0x19b   :  { %v7963_v26 = vld [vmem:[#allocation2 + $0x1744] ss:$16 sps:$4 sm:$0xff]  }
 0x19c   :  { %5176 = vmatpush1.bf16.msra.mxu0 %v7898_v23  ;;  %v7958_v23 = vld [vmem:[#allocation2 + $0x1540] ss:$16 sps:$4 sm:$0xff]  }
 0x19d   :  { %5217 = vmatpush1.bf16.msra.mxu1 %v7901_v27  ;;  %5177 = vmatprep.subr.bf16.mxu0 %v7906_v28  ;;  %v7961_v27 = vld [vmem:[#allocation2 + $0x1740] ss:$16 sps:$4 sm:$0xff]   ;;  %v7966_v28 = vld [vmem:[#allocation2 + $0x1524] ss:$16 sps:$4 sm:$0xff]  }
 0x19e   :  { %5218 = vmatprep.subr.bf16.mxu1 %v7909_v30  ;;  %v7969_v30 = vld [vmem:[#allocation2 + $0x1724] ss:$16 sps:$4 sm:$0xff]  }
 0x1a0   :  { %5178 = vmatpush1.bf16.msra.mxu0 %v7904_v31  ;;  %v7964_v31 = vld [vmem:[#allocation2 + $0x1520] ss:$16 sps:$4 sm:$0xff]  }
 0x1a1   :  { %5219 = vmatpush1.bf16.msra.mxu1 %v7907_v33  ;;  %5179 = vmatprep.subr.bf16.mxu0 %v7912_v34  ;;  %v7967_v33 = vld [vmem:[#allocation2 + $0x1720] ss:$16 sps:$4 sm:$0xff]   ;;  %v7972_v34 = vld [vmem:[#allocation2 + $0x1504] ss:$16 sps:$4 sm:$0xff]  }
 0x1a2   :  { %5220 = vmatprep.subr.bf16.mxu1 %v7915_v35  ;;  %v7975_v35 = vld [vmem:[#allocation2 + $0x1704] ss:$16 sps:$4 sm:$0xff]  }
 0x1a4   :  { %5180 = vmatpush1.bf16.msra.mxu0 %v7910_v36  ;;  %v7970_v36 = vld [vmem:[#allocation2 + $0x1500] ss:$16 sps:$4 sm:$0xff]  }
 0x1a5   :  { %5221 = vmatpush1.bf16.msra.mxu1 %v7913_v38  ;;  %5181 = vmatprep.subr.bf16.mxu0 %v7918_v39  ;;  %v7973_v38 = vld [vmem:[#allocation2 + $0x1700] ss:$16 sps:$4 sm:$0xff]  }
 0x1a6   :  { %5222 = vmatprep.subr.bf16.mxu1 %v7921_v41  ;;  %v123_v39 = vld [vmem:[%s9132_s0 + $0xa0] sm:$0xff]  ;;  %v125_v41 = vld [vmem:[%s9132_s0 + $0xb0] sm:$0xff] }
 0x1a8   :  { %5182 = vmatpush1.bf16.msra.mxu0 %v7916_v44  ;;  %v7978_v44 = vld [vmem:[#allocation2 + $0xec] ss:$16 sps:$4 sm:$0xff]  }
 0x1a9   :  { %5223 = vmatpush1.bf16.msra.mxu1 %v7919_v45  ;;  %5183 = vmatprep.subr.bf16.mxu0 %v7924_v46  ;;  %v7981_v45 = vld [vmem:[#allocation2 + $0x2ec] ss:$16 sps:$4 sm:$0xff]   ;;  %v7976_v46 = vld [vmem:[#allocation2 + $0xe8] ss:$16 sps:$4 sm:$0xff]  }
 0x1aa   :  { %5224 = vmatprep.subr.bf16.mxu1 %v7927_v47  ;;  %v7979_v47 = vld [vmem:[#allocation2 + $0x2e8] ss:$16 sps:$4 sm:$0xff]  }
 0x1ac   :  { %5184 = vmatpush1.bf16.msra.mxu0 %v7922_v51  ;;  %v9016_v51 = vpack.c.bf16 %v123_v39, %v123_v39  ;;  %v8020_v39 = vld [vmem:[#allocation2 + $0xc] ss:$16 sps:$4 sm:$0xff]  }
 0x1ad   :  { %5225 = vmatpush1.bf16.msra.mxu1 %v7925_v53  ;;  %5185 = vmatprep.subr.bf16.mxu0 %v7930_v54  ;;  %v9018_v53 = vpack.c.bf16 %v125_v41, %v125_v41  ;;  %v7984_v54 = vld [vmem:[#allocation2 + $0xcc] ss:$16 sps:$4 sm:$0xff]  }
 0x1ae   :  { %5226 = vmatprep.subr.bf16.mxu1 %v7933_v55  ;;  %v7987_v55 = vld [vmem:[#allocation2 + $0x2cc] ss:$16 sps:$4 sm:$0xff]  }
 0x1af   :  { %v8023_v41 = vld [vmem:[#allocation2 + $0x20c] ss:$16 sps:$4 sm:$0xff]  }
 0x1b0   :  { %5186 = vmatpush2.bf16.msra.mxu0 %v7928_v58  ;;  %v7982_v58 = vld [vmem:[#allocation2 + $0xc8] ss:$16 sps:$4 sm:$0xff]  }
 0x1b1   :  { %5227 = vmatpush2.bf16.msra.mxu1 %v7931_v59  ;;  %5187 = vmatprep.subr.bf16.mxu0 %v7936_v60  ;;  %v7985_v59 = vld [vmem:[#allocation2 + $0x2c8] ss:$16 sps:$4 sm:$0xff]  }
 0x1b2   :  { %5228 = vmatprep.subr.bf16.mxu1 %v7939_v61 }
 0x1b4   :  { %5188 = vmatpush2.bf16.msra.mxu0 %v7934_v0 }
 0x1b5   :  { %5229 = vmatpush2.bf16.msra.mxu1 %v7937_v1  ;;  %5189 = vmatprep.subr.bf16.mxu0 %v7942_v4 }
 0x1b6   :  { %5230 = vmatprep.subr.bf16.mxu1 %v7945_v5  ;;  %v7990_v5 = vld [vmem:[#allocation2 + $0xac] ss:$16 sps:$4 sm:$0xff]  }
 0x1b8   :  { %5190 = vmatpush2.bf16.msra.mxu0 %v7940_v6  ;;  %v7993_v6 = vld [vmem:[#allocation2 + $0x2ac] ss:$16 sps:$4 sm:$0xff]  }
 0x1b9   :  { %5231 = vmatpush2.bf16.msra.mxu1 %v7943_v7  ;;  %5191 = vmatprep.subr.bf16.mxu0 %v7948_v12 }
 0x1ba   :  { %5232 = vmatprep.subr.bf16.mxu1 %v7951_v14  ;;  %v7988_v14 = vld [vmem:[#allocation2 + $0xa8] ss:$16 sps:$4 sm:$0xff]  }
 0x1bc   :  { %5192 = vmatpush2.bf16.msra.mxu0 %v7946_v15  ;;  %v7991_v15 = vld [vmem:[#allocation2 + $0x2a8] ss:$16 sps:$4 sm:$0xff]  }
 0x1bd   :  { %5233 = vmatpush2.bf16.msra.mxu1 %v7949_v17  ;;  %5193 = vmatprep.subr.bf16.mxu0 %v7954_v18 }
 0x1be   :  { %5234 = vmatprep.subr.bf16.mxu1 %v7957_v16 }
 0x1c0   :  { %5194 = vmatpush2.bf16.msra.mxu0 %v7952_v22 }
 0x1c1   :  { %5235 = vmatpush2.bf16.msra.mxu1 %v7955_v24  ;;  %5195 = vmatprep.subr.bf16.mxu0 %v7960_v25  ;;  %v7996_v24 = vld [vmem:[#allocation2 + $0x8c] ss:$16 sps:$4 sm:$0xff]  }
 0x1c2   :  { %5236 = vmatprep.subr.bf16.mxu1 %v7963_v26  ;;  %v7999_v25 = vld [vmem:[#allocation2 + $0x28c] ss:$16 sps:$4 sm:$0xff]   ;;  %v7997_v26 = vld [vmem:[#allocation2 + $0x288] ss:$16 sps:$4 sm:$0xff]  }
 0x1c4   :  { %5196 = vmatpush2.bf16.msra.mxu0 %v7958_v23  ;;  %v8000_v23 = vld [vmem:[#allocation2 + $0x68] ss:$16 sps:$4 sm:$0xff]  }
 0x1c5   :  { %5237 = vmatpush2.bf16.msra.mxu1 %v7961_v27  ;;  %5197 = vmatprep.subr.bf16.mxu0 %v7966_v28  ;;  %v8003_v27 = vld [vmem:[#allocation2 + $0x268] ss:$16 sps:$4 sm:$0xff]   ;;  %v8008_v28 = vld [vmem:[#allocation2 + $0x4c] ss:$16 sps:$4 sm:$0xff]  }
 0x1c6   :  { %5238 = vmatprep.subr.bf16.mxu1 %v7969_v30  ;;  %v8011_v30 = vld [vmem:[#allocation2 + $0x24c] ss:$16 sps:$4 sm:$0xff]  }
 0x1c8   :  { %5198 = vmatpush2.bf16.msra.mxu0 %v7964_v31  ;;  %v8006_v31 = vld [vmem:[#allocation2 + $0x48] ss:$16 sps:$4 sm:$0xff]  }
 0x1c9   :  { %5239 = vmatpush2.bf16.msra.mxu1 %v7967_v33  ;;  %5199 = vmatprep.subr.bf16.mxu0 %v7972_v34  ;;  %v8009_v33 = vld [vmem:[#allocation2 + $0x248] ss:$16 sps:$4 sm:$0xff]   ;;  %v8014_v34 = vld [vmem:[#allocation2 + $0x2c] ss:$16 sps:$4 sm:$0xff]  }
 0x1ca   :  { %5240 = vmatprep.subr.bf16.mxu1 %v7975_v35  ;;  %v8017_v35 = vld [vmem:[#allocation2 + $0x22c] ss:$16 sps:$4 sm:$0xff]  }
 0x1cc   :  { %5200 = vmatpush2.bf16.msra.mxu0 %v7970_v36  ;;  %v8012_v36 = vld [vmem:[#allocation2 + $0x28] ss:$16 sps:$4 sm:$0xff]  }
 0x1cd   :  { %5241 = vmatpush2.bf16.msra.mxu1 %v7973_v38  ;;  %5251 = vmatprep.subr.bf16.mxu0 %v7978_v44  ;;  %v8015_v38 = vld [vmem:[#allocation2 + $0x228] ss:$16 sps:$4 sm:$0xff]  }
 0x1ce   :  { %5292 = vmatprep.subr.bf16.mxu1 %v7981_v45  ;;  %v8018_v44 = vld [vmem:[#allocation2 + $0x8] ss:$16 sps:$4 sm:$0xff]  }
 0x1cf   :  { %v4957_v60 = vpop.f32.mrf.mxu0  ;;  %5202 = vmatmul.mubr.bf16.vlgmr.msra.gmra.mxu0 %v9016_v51  ;;  %v8021_v45 = vld [vmem:[#allocation2 + $0x208] ss:$16 sps:$4 sm:$0xff]  }
 0x1d0   :  { %v4998_v61 = vpop.f32.mrf.mxu1  ;;  %5243 = vmatmul.mubr.bf16.vlgmr.msra.gmra.mxu1 %v9018_v53  ;;  %v4958_v0 = vadd.f32 %v4957_v60, %v9003_v13  ;;  %5252 = vmatpush1.bf16.msra.mxu0 %v7976_v46  ;;  %v8026_v46 = vld [vmem:[#allocation2 + $0x1ec] ss:$16 sps:$4 sm:$0xff]   ;;  %v8030_v60 = vld [vmem:[#allocation2 + $0x1c8] ss:$16 sps:$4 sm:$0xff]  }
 0x1d1   :  { %5293 = vmatpush1.bf16.msra.mxu1 %v7979_v47  ;;  %v4959_v1 = vpop.f32.mrf.mxu0  ;;  %5253 = vmatprep.subr.bf16.mxu0 %v7984_v54  ;;  %v8029_v47 = vld [vmem:[#allocation2 + $0x3ec] ss:$16 sps:$4 sm:$0xff]   ;;  %v8024_v54 = vld [vmem:[#allocation2 + $0x1e8] ss:$16 sps:$4 sm:$0xff]  }
 0x1d2   :  { %v5000_v4 = vpop.f32.mrf.mxu1  ;;  %5294 = vmatprep.subr.bf16.mxu1 %v7987_v55  ;;  %v9023_v7 = vadd.f32 %v4998_v61, %v4958_v0  ;;  %v4960_v12 = vadd.f32 %v4959_v1, %v9008_v19  ;;  %5283 = vmatprep.mubr.bf16.mxu0 %v8871_v49  ;;  %v7994_v19 = vld [vmem:[#allocation2 + $0x88] ss:$16 sps:$4 sm:$0xff]   ;;  %v8002_v49 = vld [vmem:[#allocation2 + $0x6c] ss:$16 sps:$4 sm:$0xff]  }
 0x1d3   :  { %5324 = vmatprep.mubr.bf16.mxu1 %v8876_v52  ;;  %v4961_v17 = vpop.f32.mrf.mxu0  ;;  %v8005_v52 = vld [vmem:[#allocation2 + $0x26c] ss:$16 sps:$4 sm:$0xff]   ;;  %v8027_v55 = vld [vmem:[#allocation2 + $0x3e8] ss:$16 sps:$4 sm:$0xff]  }
 0x1d4   :  { %v5002_v13 = vpop.f32.mrf.mxu1  ;;  %v9028_v18 = vadd.f32 %v5000_v4, %v4960_v12  ;;  %5254 = vmatpush1.bf16.msra.mxu0 %v7982_v58  ;;  %v8032_v58 = vld [vmem:[#allocation2 + $0x1cc] ss:$16 sps:$4 sm:$0xff]   ;;  %v8033_v61 = vld [vmem:[#allocation2 + $0x3c8] ss:$16 sps:$4 sm:$0xff]  }
 0x1d5   :  { %5295 = vmatpush1.bf16.msra.mxu1 %v7985_v59  ;;  %v4962_v16 = vpop.f32.mrf.mxu0  ;;  %5255 = vmatprep.subr.bf16.mxu0 %v7990_v5  ;;  %v8035_v59 = vld [vmem:[#allocation2 + $0x3cc] ss:$16 sps:$4 sm:$0xff]   ;;  %v8036_v4 = vld [vmem:[#allocation2 + $0x1a8] ss:$16 sps:$4 sm:$0xff]  }
 0x1d6   :  { %v5003_v22 = vpop.f32.mrf.mxu1  ;;  %5296 = vmatprep.subr.bf16.mxu1 %v7993_v6  ;;  %v8038_v0 = vld [vmem:[#allocation2 + $0x1ac] ss:$16 sps:$4 sm:$0xff]   ;;  %v8039_v5 = vld [vmem:[#allocation2 + $0x3a8] ss:$16 sps:$4 sm:$0xff]  }
 0x1d7   :  { %v8041_v1 = vld [vmem:[#allocation2 + $0x3ac] ss:$16 sps:$4 sm:$0xff]   ;;  %v8048_v16 = vld [vmem:[#allocation2 + $0x168] ss:$16 sps:$4 sm:$0xff]  }
 0x1d8   :  { %5256 = vmatpush1.bf16.msra.mxu0 %v7988_v14  ;;  %v8044_v6 = vld [vmem:[#allocation2 + $0x18c] ss:$16 sps:$4 sm:$0xff]   ;;  %v8042_v14 = vld [vmem:[#allocation2 + $0x188] ss:$16 sps:$4 sm:$0xff]  }
 0x1d9   :  { %5297 = vmatpush1.bf16.msra.mxu1 %v7991_v15  ;;  %5257 = vmatprep.subr.bf16.mxu0 %v7996_v24  ;;  %v8047_v12 = vld [vmem:[#allocation2 + $0x38c] ss:$16 sps:$4 sm:$0xff]   ;;  %v8045_v15 = vld [vmem:[#allocation2 + $0x388] ss:$16 sps:$4 sm:$0xff]  }
 0x1da   :  { %5298 = vmatprep.subr.bf16.mxu1 %v7999_v25  ;;  %v8050_v17 = vld [vmem:[#allocation2 + $0x16c] ss:$16 sps:$4 sm:$0xff]   ;;  %v8051_v22 = vld [vmem:[#allocation2 + $0x368] ss:$16 sps:$4 sm:$0xff]  }
 0x1db   :  { %v8053_v13 = vld [vmem:[#allocation2 + $0x36c] ss:$16 sps:$4 sm:$0xff]  }
 0x1dc   :  { %5258 = vmatpush1.bf16.msra.mxu0 %v7994_v19  ;;  %v8056_v24 = vld [vmem:[#allocation2 + $0x14c] ss:$16 sps:$4 sm:$0xff]   ;;  %v8054_v19 = vld [vmem:[#allocation2 + $0x148] ss:$16 sps:$4 sm:$0xff]  }
 0x1dd   :  { %5299 = vmatpush1.bf16.msra.mxu1 %v7997_v26  ;;  %5259 = vmatprep.subr.bf16.mxu0 %v8002_v49  ;;  %v8059_v25 = vld [vmem:[#allocation2 + $0x34c] ss:$16 sps:$4 sm:$0xff]   ;;  %v8057_v26 = vld [vmem:[#allocation2 + $0x348] ss:$16 sps:$4 sm:$0xff]  }
 0x1de   :  { %5300 = vmatprep.subr.bf16.mxu1 %v8005_v52  ;;  %v8062_v49 = vld [vmem:[#allocation2 + $0x12c] ss:$16 sps:$4 sm:$0xff]  }
 0x1df   :  { %v8065_v52 = vld [vmem:[#allocation2 + $0x32c] ss:$16 sps:$4 sm:$0xff]  }
 0x1e0   :  { %5260 = vmatpush1.bf16.msra.mxu0 %v8000_v23  ;;  %v8060_v23 = vld [vmem:[#allocation2 + $0x128] ss:$16 sps:$4 sm:$0xff]  }
 0x1e1   :  { %5301 = vmatpush1.bf16.msra.mxu1 %v8003_v27  ;;  %5261 = vmatprep.subr.bf16.mxu0 %v8008_v28  ;;  %v8063_v27 = vld [vmem:[#allocation2 + $0x328] ss:$16 sps:$4 sm:$0xff]   ;;  %v8068_v28 = vld [vmem:[#allocation2 + $0x10c] ss:$16 sps:$4 sm:$0xff]  }
 0x1e2   :  { %5302 = vmatprep.subr.bf16.mxu1 %v8011_v30  ;;  %v8071_v30 = vld [vmem:[#allocation2 + $0x30c] ss:$16 sps:$4 sm:$0xff]  }
 0x1e4   :  { %5262 = vmatpush1.bf16.msra.mxu0 %v8006_v31  ;;  %v8066_v31 = vld [vmem:[#allocation2 + $0x108] ss:$16 sps:$4 sm:$0xff]  }
 0x1e5   :  { %5303 = vmatpush1.bf16.msra.mxu1 %v8009_v33  ;;  %5263 = vmatprep.subr.bf16.mxu0 %v8014_v34  ;;  %v8069_v33 = vld [vmem:[#allocation2 + $0x308] ss:$16 sps:$4 sm:$0xff]   ;;  %v8074_v34 = vld [vmem:[#allocation2 + $0x4ec] ss:$16 sps:$4 sm:$0xff]  }
 0x1e6   :  { %5304 = vmatprep.subr.bf16.mxu1 %v8017_v35  ;;  %v8077_v35 = vld [vmem:[#allocation2 + $0x6ec] ss:$16 sps:$4 sm:$0xff]  }
 0x1e8   :  { %5264 = vmatpush1.bf16.msra.mxu0 %v8012_v36  ;;  %v8072_v36 = vld [vmem:[#allocation2 + $0x4e8] ss:$16 sps:$4 sm:$0xff]  }
 0x1e9   :  { %5305 = vmatpush1.bf16.msra.mxu1 %v8015_v38  ;;  %5265 = vmatprep.subr.bf16.mxu0 %v8020_v39  ;;  %v8075_v38 = vld [vmem:[#allocation2 + $0x6e8] ss:$16 sps:$4 sm:$0xff]   ;;  %v8080_v39 = vld [vmem:[#allocation2 + $0x4cc] ss:$16 sps:$4 sm:$0xff]  }
 0x1ea   :  { %5306 = vmatprep.subr.bf16.mxu1 %v8023_v41  ;;  %v8083_v41 = vld [vmem:[#allocation2 + $0x6cc] ss:$16 sps:$4 sm:$0xff]  }
 0x1ec   :  { %5266 = vmatpush1.bf16.msra.mxu0 %v8018_v44  ;;  %v8078_v44 = vld [vmem:[#allocation2 + $0x4c8] ss:$16 sps:$4 sm:$0xff]  }
 0x1ed   :  { %5307 = vmatpush1.bf16.msra.mxu1 %v8021_v45  ;;  %5267 = vmatprep.subr.bf16.mxu0 %v8026_v46 }
 0x1ee   :  { %5308 = vmatprep.subr.bf16.mxu1 %v8029_v47  ;;  %v8081_v47 = vld [vmem:[#allocation2 + $0x6c8] ss:$16 sps:$4 sm:$0xff]  }
 0x1f0   :  { %5268 = vmatpush2.bf16.msra.mxu0 %v8024_v54 }
 0x1f1   :  { %5309 = vmatpush2.bf16.msra.mxu1 %v8027_v55  ;;  %5269 = vmatprep.subr.bf16.mxu0 %v8032_v58 }
 0x1f2   :  { %5310 = vmatprep.subr.bf16.mxu1 %v8035_v59  ;;  %v8086_v59 = vld [vmem:[#allocation2 + $0x4ac] ss:$16 sps:$4 sm:$0xff]  }
 0x1f4   :  { %5270 = vmatpush2.bf16.msra.mxu0 %v8030_v60  ;;  %v8089_v60 = vld [vmem:[#allocation2 + $0x6ac] ss:$16 sps:$4 sm:$0xff]  }
 0x1f5   :  { %5311 = vmatpush2.bf16.msra.mxu1 %v8033_v61  ;;  %5271 = vmatprep.subr.bf16.mxu0 %v8038_v0 }
 0x1f6   :  { %5312 = vmatprep.subr.bf16.mxu1 %v8041_v1  ;;  %v8084_v1 = vld [vmem:[#allocation2 + $0x4a8] ss:$16 sps:$4 sm:$0xff]  }
 0x1f8   :  { %5272 = vmatpush2.bf16.msra.mxu0 %v8036_v4  ;;  %v8087_v4 = vld [vmem:[#allocation2 + $0x6a8] ss:$16 sps:$4 sm:$0xff]  }
 0x1f9   :  { %5313 = vmatpush2.bf16.msra.mxu1 %v8039_v5  ;;  %5273 = vmatprep.subr.bf16.mxu0 %v8044_v6 }
 0x1fa   :  { %5314 = vmatprep.subr.bf16.mxu1 %v8047_v12  ;;  %v8092_v12 = vld [vmem:[#allocation2 + $0x48c] ss:$16 sps:$4 sm:$0xff]  }
 0x1fc   :  { %5274 = vmatpush2.bf16.msra.mxu0 %v8042_v14  ;;  %v8095_v14 = vld [vmem:[#allocation2 + $0x68c] ss:$16 sps:$4 sm:$0xff]  }
 0x1fd   :  { %5315 = vmatpush2.bf16.msra.mxu1 %v8045_v15  ;;  %5275 = vmatprep.subr.bf16.mxu0 %v8050_v17  ;;  %v8093_v15 = vld [vmem:[#allocation2 + $0x688] ss:$16 sps:$4 sm:$0xff]  }
 0x1fe   :  { %5316 = vmatprep.subr.bf16.mxu1 %v8053_v13  ;;  %v8096_v17 = vld [vmem:[#allocation2 + $0x468] ss:$16 sps:$4 sm:$0xff]  }
 0x1ff   :  { %v8099_v13 = vld [vmem:[#allocation2 + $0x668] ss:$16 sps:$4 sm:$0xff]  }
 0x200   :  { %5276 = vmatpush2.bf16.msra.mxu0 %v8048_v16  ;;  %v8104_v16 = vld [vmem:[#allocation2 + $0x44c] ss:$16 sps:$4 sm:$0xff]  }
 0x201   :  { %5317 = vmatpush2.bf16.msra.mxu1 %v8051_v22  ;;  %5277 = vmatprep.subr.bf16.mxu0 %v8056_v24  ;;  %v8107_v22 = vld [vmem:[#allocation2 + $0x64c] ss:$16 sps:$4 sm:$0xff]   ;;  %v8102_v24 = vld [vmem:[#allocation2 + $0x448] ss:$16 sps:$4 sm:$0xff]  }
 0x202   :  { %5318 = vmatprep.subr.bf16.mxu1 %v8059_v25  ;;  %v8105_v25 = vld [vmem:[#allocation2 + $0x648] ss:$16 sps:$4 sm:$0xff]  }
 0x204   :  { %5278 = vmatpush2.bf16.msra.mxu0 %v8054_v19  ;;  %v8110_v19 = vld [vmem:[#allocation2 + $0x42c] ss:$16 sps:$4 sm:$0xff]  }
 0x205   :  { %5319 = vmatpush2.bf16.msra.mxu1 %v8057_v26  ;;  %5279 = vmatprep.subr.bf16.mxu0 %v8062_v49  ;;  %v8113_v26 = vld [vmem:[#allocation2 + $0x62c] ss:$16 sps:$4 sm:$0xff]   ;;  %v8108_v49 = vld [vmem:[#allocation2 + $0x428] ss:$16 sps:$4 sm:$0xff]  }
 0x206   :  { %5320 = vmatprep.subr.bf16.mxu1 %v8065_v52  ;;  %v8111_v52 = vld [vmem:[#allocation2 + $0x628] ss:$16 sps:$4 sm:$0xff]  }
 0x208   :  { %5280 = vmatpush2.bf16.msra.mxu0 %v8060_v23  ;;  %v8116_v23 = vld [vmem:[#allocation2 + $0x40c] ss:$16 sps:$4 sm:$0xff]  }
 0x209   :  { %5321 = vmatpush2.bf16.msra.mxu1 %v8063_v27  ;;  %5281 = vmatprep.subr.bf16.mxu0 %v8068_v28  ;;  %v8119_v27 = vld [vmem:[#allocation2 + $0x60c] ss:$16 sps:$4 sm:$0xff]   ;;  %v8114_v28 = vld [vmem:[#allocation2 + $0x408] ss:$16 sps:$4 sm:$0xff]  }
 0x20a   :  { %5322 = vmatprep.subr.bf16.mxu1 %v8071_v30  ;;  %v8117_v30 = vld [vmem:[#allocation2 + $0x608] ss:$16 sps:$4 sm:$0xff]  }
 0x20c   :  { %5282 = vmatpush2.bf16.msra.mxu0 %v8066_v31  ;;  %v8122_v31 = vld [vmem:[#allocation2 + $0x5ec] ss:$16 sps:$4 sm:$0xff]  }
 0x20d   :  { %5323 = vmatpush2.bf16.msra.mxu1 %v8069_v33  ;;  %5333 = vmatprep.subr.bf16.mxu0 %v8074_v34  ;;  %v8125_v33 = vld [vmem:[#allocation2 + $0x7ec] ss:$16 sps:$4 sm:$0xff]   ;;  %v8120_v34 = vld [vmem:[#allocation2 + $0x5e8] ss:$16 sps:$4 sm:$0xff]  }
 0x20e   :  { %5374 = vmatprep.subr.bf16.mxu1 %v8077_v35  ;;  %v8123_v35 = vld [vmem:[#allocation2 + $0x7e8] ss:$16 sps:$4 sm:$0xff]  }
 0x20f   :  { %v5039_v45 = vpop.f32.mrf.mxu0  ;;  %5284 = vmatmul.mubr.bf16.vlgmr.msra.gmra.mxu0 %v8886_v8 }
 0x210   :  { %v5080_v46 = vpop.f32.mrf.mxu1  ;;  %5325 = vmatmul.mubr.bf16.vlgmr.msra.gmra.mxu1 %v8888_v9  ;;  %v5040_v54 = vadd.f32 %v5039_v45, %v9023_v7  ;;  %5334 = vmatpush1.bf16.msra.mxu0 %v8072_v36  ;;  %v8128_v36 = vld [vmem:[#allocation2 + $0x5cc] ss:$16 sps:$4 sm:$0xff]  }
 0x211   :  { %5375 = vmatpush1.bf16.msra.mxu1 %v8075_v38  ;;  %v5041_v55 = vpop.f32.mrf.mxu0  ;;  %5335 = vmatprep.subr.bf16.mxu0 %v8080_v39  ;;  %v8131_v38 = vld [vmem:[#allocation2 + $0x7cc] ss:$16 sps:$4 sm:$0xff]   ;;  %v8126_v39 = vld [vmem:[#allocation2 + $0x5c8] ss:$16 sps:$4 sm:$0xff]  }
 0x212   :  { %v5082_v58 = vpop.f32.mrf.mxu1  ;;  %5376 = vmatprep.subr.bf16.mxu1 %v8083_v41  ;;  %v9033_v61 = vadd.f32 %v5080_v46, %v5040_v54  ;;  %v5042_v0 = vadd.f32 %v5041_v55, %v9028_v18  ;;  %5365 = vmatprep.mubr.bf16.mxu0 %v8895_v37  ;;  %v8090_v18 = vld [vmem:[#allocation2 + $0x488] ss:$16 sps:$4 sm:$0xff]   ;;  %v8098_v37 = vld [vmem:[#allocation2 + $0x46c] ss:$16 sps:$4 sm:$0xff]  }
 0x213   :  { %5406 = vmatprep.mubr.bf16.mxu1 %v8900_v40  ;;  %v5043_v8 = vpop.f32.mrf.mxu0  ;;  %v8101_v40 = vld [vmem:[#allocation2 + $0x66c] ss:$16 sps:$4 sm:$0xff]   ;;  %v8129_v41 = vld [vmem:[#allocation2 + $0x7c8] ss:$16 sps:$4 sm:$0xff]  }
 0x214   :  { %v5084_v9 = vpop.f32.mrf.mxu1  ;;  %v9038_v7 = vadd.f32 %v5082_v58, %v5042_v0  ;;  %5336 = vmatpush1.bf16.msra.mxu0 %v8078_v44  ;;  %v8134_v44 = vld [vmem:[#allocation2 + $0x5ac] ss:$16 sps:$4 sm:$0xff]   ;;  %v8132_v46 = vld [vmem:[#allocation2 + $0x5a8] ss:$16 sps:$4 sm:$0xff]  }
 0x215   :  { %5377 = vmatpush1.bf16.msra.mxu1 %v8081_v47  ;;  %v5044_v5 = vpop.f32.mrf.mxu0  ;;  %5337 = vmatprep.subr.bf16.mxu0 %v8086_v59  ;;  %v8137_v45 = vld [vmem:[#allocation2 + $0x7ac] ss:$16 sps:$4 sm:$0xff]   ;;  %v8135_v47 = vld [vmem:[#allocation2 + $0x7a8] ss:$16 sps:$4 sm:$0xff]  }
 0x216   :  { %v5085_v6 = vpop.f32.mrf.mxu1  ;;  %5378 = vmatprep.subr.bf16.mxu1 %v8089_v60  ;;  %v8140_v54 = vld [vmem:[#allocation2 + $0x58c] ss:$16 sps:$4 sm:$0xff]   ;;  %v8138_v58 = vld [vmem:[#allocation2 + $0x588] ss:$16 sps:$4 sm:$0xff]  }
 0x217   :  { %v8143_v55 = vld [vmem:[#allocation2 + $0x78c] ss:$16 sps:$4 sm:$0xff]   ;;  %v8141_v59 = vld [vmem:[#allocation2 + $0x788] ss:$16 sps:$4 sm:$0xff]  }
 0x218   :  { %5338 = vmatpush1.bf16.msra.mxu0 %v8084_v1  ;;  %v8146_v60 = vld [vmem:[#allocation2 + $0x56c] ss:$16 sps:$4 sm:$0xff]   ;;  %v8144_v1 = vld [vmem:[#allocation2 + $0x568] ss:$16 sps:$4 sm:$0xff]  }
 0x219   :  { %5379 = vmatpush1.bf16.msra.mxu1 %v8087_v4  ;;  %5339 = vmatprep.subr.bf16.mxu0 %v8092_v12  ;;  %v8149_v0 = vld [vmem:[#allocation2 + $0x76c] ss:$16 sps:$4 sm:$0xff]   ;;  %v8147_v4 = vld [vmem:[#allocation2 + $0x768] ss:$16 sps:$4 sm:$0xff]  }
 0x21a   :  { %5380 = vmatprep.subr.bf16.mxu1 %v8095_v14  ;;  %v8152_v8 = vld [vmem:[#allocation2 + $0x54c] ss:$16 sps:$4 sm:$0xff]   ;;  %v8150_v5 = vld [vmem:[#allocation2 + $0x548] ss:$16 sps:$4 sm:$0xff]  }
 0x21b   :  { %v8155_v9 = vld [vmem:[#allocation2 + $0x74c] ss:$16 sps:$4 sm:$0xff]   ;;  %v8153_v6 = vld [vmem:[#allocation2 + $0x748] ss:$16 sps:$4 sm:$0xff]  }
 0x21c   :  { %5340 = vmatpush1.bf16.msra.mxu0 %v8090_v18  ;;  %v8158_v12 = vld [vmem:[#allocation2 + $0x52c] ss:$16 sps:$4 sm:$0xff]   ;;  %v8156_v18 = vld [vmem:[#allocation2 + $0x528] ss:$16 sps:$4 sm:$0xff]  }
 0x21d   :  { %5381 = vmatpush1.bf16.msra.mxu1 %v8093_v15  ;;  %5341 = vmatprep.subr.bf16.mxu0 %v8098_v37  ;;  %v8161_v14 = vld [vmem:[#allocation2 + $0x72c] ss:$16 sps:$4 sm:$0xff]   ;;  %v8159_v15 = vld [vmem:[#allocation2 + $0x728] ss:$16 sps:$4 sm:$0xff]  }
 0x21e   :  { %5382 = vmatprep.subr.bf16.mxu1 %v8101_v40  ;;  %v8164_v37 = vld [vmem:[#allocation2 + $0x50c] ss:$16 sps:$4 sm:$0xff]  }
 0x21f   :  { %v8167_v40 = vld [vmem:[#allocation2 + $0x70c] ss:$16 sps:$4 sm:$0xff]  }
 0x220   :  { %5342 = vmatpush1.bf16.msra.mxu0 %v8096_v17  ;;  %v8162_v17 = vld [vmem:[#allocation2 + $0x508] ss:$16 sps:$4 sm:$0xff]  }
 0x221   :  { %5383 = vmatpush1.bf16.msra.mxu1 %v8099_v13  ;;  %5343 = vmatprep.subr.bf16.mxu0 %v8104_v16  ;;  %v8165_v13 = vld [vmem:[#allocation2 + $0x708] ss:$16 sps:$4 sm:$0xff]   ;;  %v8170_v16 = vld [vmem:[#allocation2 + $0x8ec] ss:$16 sps:$4 sm:$0xff]  }
 0x222   :  { %5384 = vmatprep.subr.bf16.mxu1 %v8107_v22  ;;  %v8173_v22 = vld [vmem:[#allocation2 + $0xaec] ss:$16 sps:$4 sm:$0xff]  }
 0x224   :  { %5344 = vmatpush1.bf16.msra.mxu0 %v8102_v24  ;;  %v8168_v24 = vld [vmem:[#allocation2 + $0x8e8] ss:$16 sps:$4 sm:$0xff]  }
 0x225   :  { %5385 = vmatpush1.bf16.msra.mxu1 %v8105_v25  ;;  %5345 = vmatprep.subr.bf16.mxu0 %v8110_v19  ;;  %v8171_v25 = vld [vmem:[#allocation2 + $0xae8] ss:$16 sps:$4 sm:$0xff]   ;;  %v8176_v19 = vld [vmem:[#allocation2 + $0x8cc] ss:$16 sps:$4 sm:$0xff]  }
 0x226   :  { %5386 = vmatprep.subr.bf16.mxu1 %v8113_v26  ;;  %v8179_v26 = vld [vmem:[#allocation2 + $0xacc] ss:$16 sps:$4 sm:$0xff]  }
 0x228   :  { %5346 = vmatpush1.bf16.msra.mxu0 %v8108_v49 }
 0x229   :  { %5387 = vmatpush1.bf16.msra.mxu1 %v8111_v52  ;;  %5347 = vmatprep.subr.bf16.mxu0 %v8116_v23 }
 0x22a   :  { %5388 = vmatprep.subr.bf16.mxu1 %v8119_v27  ;;  %v8174_v27 = vld [vmem:[#allocation2 + $0x8c8] ss:$16 sps:$4 sm:$0xff]  }
 0x22c   :  { %5348 = vmatpush1.bf16.msra.mxu0 %v8114_v28  ;;  %v8177_v28 = vld [vmem:[#allocation2 + $0xac8] ss:$16 sps:$4 sm:$0xff]  }
 0x22d   :  { %5389 = vmatpush1.bf16.msra.mxu1 %v8117_v30  ;;  %5349 = vmatprep.subr.bf16.mxu0 %v8122_v31 }
 0x22e   :  { %5390 = vmatprep.subr.bf16.mxu1 %v8125_v33  ;;  %v8182_v33 = vld [vmem:[#allocation2 + $0x8ac] ss:$16 sps:$4 sm:$0xff]  }
 0x230   :  { %5350 = vmatpush2.bf16.msra.mxu0 %v8120_v34  ;;  %v8185_v34 = vld [vmem:[#allocation2 + $0xaac] ss:$16 sps:$4 sm:$0xff]  }
 0x231   :  { %5391 = vmatpush2.bf16.msra.mxu1 %v8123_v35  ;;  %5351 = vmatprep.subr.bf16.mxu0 %v8128_v36 }
 0x232   :  { %5392 = vmatprep.subr.bf16.mxu1 %v8131_v38  ;;  %v8180_v38 = vld [vmem:[#allocation2 + $0x8a8] ss:$16 sps:$4 sm:$0xff]  }
 0x234   :  { %5352 = vmatpush2.bf16.msra.mxu0 %v8126_v39  ;;  %v8183_v39 = vld [vmem:[#allocation2 + $0xaa8] ss:$16 sps:$4 sm:$0xff]  }
 0x235   :  { %5393 = vmatpush2.bf16.msra.mxu1 %v8129_v41  ;;  %5353 = vmatprep.subr.bf16.mxu0 %v8134_v44 }
 0x236   :  { %5394 = vmatprep.subr.bf16.mxu1 %v8137_v45  ;;  %v8188_v45 = vld [vmem:[#allocation2 + $0x88c] ss:$16 sps:$4 sm:$0xff]  }
 0x238   :  { %5354 = vmatpush2.bf16.msra.mxu0 %v8132_v46  ;;  %v8191_v46 = vld [vmem:[#allocation2 + $0xa8c] ss:$16 sps:$4 sm:$0xff]  }
 0x239   :  { %5395 = vmatpush2.bf16.msra.mxu1 %v8135_v47  ;;  %5355 = vmatprep.subr.bf16.mxu0 %v8140_v54  ;;  %v8197_v47 = vld [vmem:[#allocation2 + $0xa6c] ss:$16 sps:$4 sm:$0xff]   ;;  %v8192_v54 = vld [vmem:[#allocation2 + $0x868] ss:$16 sps:$4 sm:$0xff]  }
 0x23a   :  { %5396 = vmatprep.subr.bf16.mxu1 %v8143_v55  ;;  %v8195_v55 = vld [vmem:[#allocation2 + $0xa68] ss:$16 sps:$4 sm:$0xff]  }
 0x23c   :  { %5356 = vmatpush2.bf16.msra.mxu0 %v8138_v58  ;;  %v8200_v58 = vld [vmem:[#allocation2 + $0x84c] ss:$16 sps:$4 sm:$0xff]  }
 0x23d   :  { %5397 = vmatpush2.bf16.msra.mxu1 %v8141_v59  ;;  %5357 = vmatprep.subr.bf16.mxu0 %v8146_v60  ;;  %v8203_v59 = vld [vmem:[#allocation2 + $0xa4c] ss:$16 sps:$4 sm:$0xff]   ;;  %v8198_v60 = vld [vmem:[#allocation2 + $0x848] ss:$16 sps:$4 sm:$0xff]  }
 0x23e   :  { %5398 = vmatprep.subr.bf16.mxu1 %v8149_v0  ;;  %v8201_v0 = vld [vmem:[#allocation2 + $0xa48] ss:$16 sps:$4 sm:$0xff]  }
 0x240   :  { %5358 = vmatpush2.bf16.msra.mxu0 %v8144_v1  ;;  %v8206_v1 = vld [vmem:[#allocation2 + $0x82c] ss:$16 sps:$4 sm:$0xff]  }
 0x241   :  { %5399 = vmatpush2.bf16.msra.mxu1 %v8147_v4  ;;  %5359 = vmatprep.subr.bf16.mxu0 %v8152_v8  ;;  %v8209_v4 = vld [vmem:[#allocation2 + $0xa2c] ss:$16 sps:$4 sm:$0xff]   ;;  %v8204_v8 = vld [vmem:[#allocation2 + $0x828] ss:$16 sps:$4 sm:$0xff]  }
 0x242   :  { %5400 = vmatprep.subr.bf16.mxu1 %v8155_v9  ;;  %v8207_v9 = vld [vmem:[#allocation2 + $0xa28] ss:$16 sps:$4 sm:$0xff]  }
 0x244   :  { %5360 = vmatpush2.bf16.msra.mxu0 %v8150_v5  ;;  %v8212_v5 = vld [vmem:[#allocation2 + $0x80c] ss:$16 sps:$4 sm:$0xff]  }
 0x245   :  { %5401 = vmatpush2.bf16.msra.mxu1 %v8153_v6  ;;  %5361 = vmatprep.subr.bf16.mxu0 %v8158_v12  ;;  %v8215_v6 = vld [vmem:[#allocation2 + $0xa0c] ss:$16 sps:$4 sm:$0xff]   ;;  %v8210_v12 = vld [vmem:[#allocation2 + $0x808] ss:$16 sps:$4 sm:$0xff]  }
 0x246   :  { %5402 = vmatprep.subr.bf16.mxu1 %v8161_v14  ;;  %v8213_v14 = vld [vmem:[#allocation2 + $0xa08] ss:$16 sps:$4 sm:$0xff]  }
 0x248   :  { %5362 = vmatpush2.bf16.msra.mxu0 %v8156_v18  ;;  %v8218_v18 = vld [vmem:[#allocation2 + $0x9ec] ss:$16 sps:$4 sm:$0xff]  }
 0x249   :  { %5403 = vmatpush2.bf16.msra.mxu1 %v8159_v15  ;;  %5363 = vmatprep.subr.bf16.mxu0 %v8164_v37  ;;  %v8221_v15 = vld [vmem:[#allocation2 + $0xbec] ss:$16 sps:$4 sm:$0xff]   ;;  %v8216_v37 = vld [vmem:[#allocation2 + $0x9e8] ss:$16 sps:$4 sm:$0xff]  }
 0x24a   :  { %5404 = vmatprep.subr.bf16.mxu1 %v8167_v40  ;;  %v8219_v40 = vld [vmem:[#allocation2 + $0xbe8] ss:$16 sps:$4 sm:$0xff]  }
 0x24c   :  { %5364 = vmatpush2.bf16.msra.mxu0 %v8162_v17  ;;  %v8224_v17 = vld [vmem:[#allocation2 + $0x9cc] ss:$16 sps:$4 sm:$0xff]  }
 0x24d   :  { %5405 = vmatpush2.bf16.msra.mxu1 %v8165_v13  ;;  %5415 = vmatprep.subr.bf16.mxu0 %v8170_v16  ;;  %v8227_v13 = vld [vmem:[#allocation2 + $0xbcc] ss:$16 sps:$4 sm:$0xff]   ;;  %v8222_v16 = vld [vmem:[#allocation2 + $0x9c8] ss:$16 sps:$4 sm:$0xff]  }
 0x24e   :  { %5456 = vmatprep.subr.bf16.mxu1 %v8173_v22  ;;  %v8225_v22 = vld [vmem:[#allocation2 + $0xbc8] ss:$16 sps:$4 sm:$0xff]  }
 0x24f   :  { %v5121_v49 = vpop.f32.mrf.mxu0  ;;  %5366 = vmatmul.mubr.bf16.vlgmr.msra.gmra.mxu0 %v8910_v20 }
 0x250   :  { %v5162_v52 = vpop.f32.mrf.mxu1  ;;  %5407 = vmatmul.mubr.bf16.vlgmr.msra.gmra.mxu1 %v8912_v21  ;;  %v5122_v23 = vadd.f32 %v5121_v49, %v9033_v61  ;;  %5416 = vmatpush1.bf16.msra.mxu0 %v8168_v24  ;;  %v8230_v24 = vld [vmem:[#allocation2 + $0x9ac] ss:$16 sps:$4 sm:$0xff]  }
 0x251   :  { %5457 = vmatpush1.bf16.msra.mxu1 %v8171_v25  ;;  %v5123_v30 = vpop.f32.mrf.mxu0  ;;  %5417 = vmatprep.subr.bf16.mxu0 %v8176_v19  ;;  %v8233_v25 = vld [vmem:[#allocation2 + $0xbac] ss:$16 sps:$4 sm:$0xff]   ;;  %v8228_v19 = vld [vmem:[#allocation2 + $0x9a8] ss:$16 sps:$4 sm:$0xff]  }
 0x252   :  { %v5164_v31 = vpop.f32.mrf.mxu1  ;;  %5458 = vmatprep.subr.bf16.mxu1 %v8179_v26  ;;  %v9043_v35 = vadd.f32 %v5162_v52, %v5122_v23  ;;  %v5124_v36 = vadd.f32 %v5123_v30, %v9038_v7  ;;  %5447 = vmatprep.mubr.bf16.mxu0 %v8919_v29  ;;  %v8186_v7 = vld [vmem:[#allocation2 + $0x888] ss:$16 sps:$4 sm:$0xff]   ;;  %v8236_v49 = vld [vmem:[#allocation2 + $0x98c] ss:$16 sps:$4 sm:$0xff]  }
 0x253   :  { %5488 = vmatprep.mubr.bf16.mxu1 %v8924_v32  ;;  %v5125_v20 = vpop.f32.mrf.mxu0  ;;  %v8189_v29 = vld [vmem:[#allocation2 + $0xa88] ss:$16 sps:$4 sm:$0xff]   ;;  %v8194_v32 = vld [vmem:[#allocation2 + $0x86c] ss:$16 sps:$4 sm:$0xff]  }
 0x254   :  { %v5166_v21 = vpop.f32.mrf.mxu1  ;;  %v9048_v61 = vadd.f32 %v5164_v31, %v5124_v36  ;;  %5418 = vmatpush1.bf16.msra.mxu0 %v8174_v27  ;;  %v8231_v26 = vld [vmem:[#allocation2 + $0xba8] ss:$16 sps:$4 sm:$0xff]   ;;  %v8239_v52 = vld [vmem:[#allocation2 + $0xb8c] ss:$16 sps:$4 sm:$0xff]  }
 0x255   :  { %5459 = vmatpush1.bf16.msra.mxu1 %v8177_v28  ;;  %v5126_v41 = vpop.f32.mrf.mxu0  ;;  %5419 = vmatprep.subr.bf16.mxu0 %v8182_v33  ;;  %v8234_v23 = vld [vmem:[#allocation2 + $0x988] ss:$16 sps:$4 sm:$0xff]   ;;  %v8242_v28 = vld [vmem:[#allocation2 + $0x96c] ss:$16 sps:$4 sm:$0xff]  }
 0x256   :  { %v5167_v44 = vpop.f32.mrf.mxu1  ;;  %5460 = vmatprep.subr.bf16.mxu1 %v8185_v34  ;;  %v8237_v27 = vld [vmem:[#allocation2 + $0xb88] ss:$16 sps:$4 sm:$0xff]   ;;  %v8245_v30 = vld [vmem:[#allocation2 + $0xb6c] ss:$16 sps:$4 sm:$0xff]  }
 0x257   :  { %v8240_v31 = vld [vmem:[#allocation2 + $0x968] ss:$16 sps:$4 sm:$0xff]   ;;  %v8248_v34 = vld [vmem:[#allocation2 + $0x94c] ss:$16 sps:$4 sm:$0xff]  }
 0x258   :  { %5420 = vmatpush1.bf16.msra.mxu0 %v8180_v38  ;;  %v8243_v33 = vld [vmem:[#allocation2 + $0xb68] ss:$16 sps:$4 sm:$0xff]   ;;  %v8251_v36 = vld [vmem:[#allocation2 + $0xb4c] ss:$16 sps:$4 sm:$0xff]  }
 0x259   :  { %5461 = vmatpush1.bf16.msra.mxu1 %v8183_v39  ;;  %5421 = vmatprep.subr.bf16.mxu0 %v8188_v45  ;;  %v8246_v20 = vld [vmem:[#allocation2 + $0x948] ss:$16 sps:$4 sm:$0xff]   ;;  %v8254_v38 = vld [vmem:[#allocation2 + $0x92c] ss:$16 sps:$4 sm:$0xff]  }
 0x25a   :  { %5462 = vmatprep.subr.bf16.mxu1 %v8191_v46  ;;  %v8249_v21 = vld [vmem:[#allocation2 + $0xb48] ss:$16 sps:$4 sm:$0xff]   ;;  %v8257_v39 = vld [vmem:[#allocation2 + $0xb2c] ss:$16 sps:$4 sm:$0xff]  }
 0x25b   :  { %v8252_v41 = vld [vmem:[#allocation2 + $0x928] ss:$16 sps:$4 sm:$0xff]   ;;  %v8260_v45 = vld [vmem:[#allocation2 + $0x90c] ss:$16 sps:$4 sm:$0xff]  }
 0x25c   :  { %5422 = vmatpush1.bf16.msra.mxu0 %v8186_v7  ;;  %v8255_v44 = vld [vmem:[#allocation2 + $0xb28] ss:$16 sps:$4 sm:$0xff]   ;;  %v8263_v46 = vld [vmem:[#allocation2 + $0xb0c] ss:$16 sps:$4 sm:$0xff]  }
 0x25d   :  { %5463 = vmatpush1.bf16.msra.mxu1 %v8189_v29  ;;  %5423 = vmatprep.subr.bf16.mxu0 %v8194_v32  ;;  %v8258_v7 = vld [vmem:[#allocation2 + $0x908] ss:$16 sps:$4 sm:$0xff]   ;;  %v8266_v32 = vld [vmem:[#allocation2 + $0xcec] ss:$16 sps:$4 sm:$0xff]  }
 0x25e   :  { %5464 = vmatprep.subr.bf16.mxu1 %v8197_v47  ;;  %v8261_v29 = vld [vmem:[#allocation2 + $0xb08] ss:$16 sps:$4 sm:$0xff]   ;;  %v8269_v47 = vld [vmem:[#allocation2 + $0xeec] ss:$16 sps:$4 sm:$0xff]  }
 0x260   :  { %5424 = vmatpush1.bf16.msra.mxu0 %v8192_v54  ;;  %v8264_v54 = vld [vmem:[#allocation2 + $0xce8] ss:$16 sps:$4 sm:$0xff]  }
 0x261   :  { %5465 = vmatpush1.bf16.msra.mxu1 %v8195_v55  ;;  %5425 = vmatprep.subr.bf16.mxu0 %v8200_v58  ;;  %v8267_v55 = vld [vmem:[#allocation2 + $0xee8] ss:$16 sps:$4 sm:$0xff]   ;;  %v8272_v58 = vld [vmem:[#allocation2 + $0xccc] ss:$16 sps:$4 sm:$0xff]  }
 0x262   :  { %5466 = vmatprep.subr.bf16.mxu1 %v8203_v59  ;;  %v8275_v59 = vld [vmem:[#allocation2 + $0xecc] ss:$16 sps:$4 sm:$0xff]  }
 0x264   :  { %5426 = vmatpush1.bf16.msra.mxu0 %v8198_v60 }
 0x265   :  { %5467 = vmatpush1.bf16.msra.mxu1 %v8201_v0  ;;  %5427 = vmatprep.subr.bf16.mxu0 %v8206_v1 }
 0x266   :  { %5468 = vmatprep.subr.bf16.mxu1 %v8209_v4  ;;  %v8270_v4 = vld [vmem:[#allocation2 + $0xcc8] ss:$16 sps:$4 sm:$0xff]  }
 0x268   :  { %5428 = vmatpush1.bf16.msra.mxu0 %v8204_v8  ;;  %v8273_v8 = vld [vmem:[#allocation2 + $0xec8] ss:$16 sps:$4 sm:$0xff]  }
 0x269   :  { %5469 = vmatpush1.bf16.msra.mxu1 %v8207_v9  ;;  %5429 = vmatprep.subr.bf16.mxu0 %v8212_v5 }
 0x26a   :  { %5470 = vmatprep.subr.bf16.mxu1 %v8215_v6  ;;  %v8278_v6 = vld [vmem:[#allocation2 + $0xcac] ss:$16 sps:$4 sm:$0xff]  }
 0x26c   :  { %5430 = vmatpush1.bf16.msra.mxu0 %v8210_v12  ;;  %v8281_v12 = vld [vmem:[#allocation2 + $0xeac] ss:$16 sps:$4 sm:$0xff]  }
 0x26d   :  { %5471 = vmatpush1.bf16.msra.mxu1 %v8213_v14  ;;  %5431 = vmatprep.subr.bf16.mxu0 %v8218_v18 }
 0x26e   :  { %5472 = vmatprep.subr.bf16.mxu1 %v8221_v15  ;;  %v8276_v15 = vld [vmem:[#allocation2 + $0xca8] ss:$16 sps:$4 sm:$0xff]  }
 0x270   :  { %5432 = vmatpush2.bf16.msra.mxu0 %v8216_v37  ;;  %v8279_v37 = vld [vmem:[#allocation2 + $0xea8] ss:$16 sps:$4 sm:$0xff]  }
 0x271   :  { %5473 = vmatpush2.bf16.msra.mxu1 %v8219_v40  ;;  %5433 = vmatprep.subr.bf16.mxu0 %v8224_v17 }
 0x272   :  { %5474 = vmatprep.subr.bf16.mxu1 %v8227_v13  ;;  %v8284_v13 = vld [vmem:[#allocation2 + $0xc8c] ss:$16 sps:$4 sm:$0xff]  }
 0x274   :  { %5434 = vmatpush2.bf16.msra.mxu0 %v8222_v16  ;;  %v8287_v16 = vld [vmem:[#allocation2 + $0xe8c] ss:$16 sps:$4 sm:$0xff]  }
 0x275   :  { %5475 = vmatpush2.bf16.msra.mxu1 %v8225_v22  ;;  %5435 = vmatprep.subr.bf16.mxu0 %v8230_v24  ;;  %v8293_v22 = vld [vmem:[#allocation2 + $0xe6c] ss:$16 sps:$4 sm:$0xff]   ;;  %v8288_v24 = vld [vmem:[#allocation2 + $0xc68] ss:$16 sps:$4 sm:$0xff]  }
 0x276   :  { %5476 = vmatprep.subr.bf16.mxu1 %v8233_v25  ;;  %v8291_v25 = vld [vmem:[#allocation2 + $0xe68] ss:$16 sps:$4 sm:$0xff]  }
 0x278   :  { %5436 = vmatpush2.bf16.msra.mxu0 %v8228_v19  ;;  %v8296_v19 = vld [vmem:[#allocation2 + $0xc4c] ss:$16 sps:$4 sm:$0xff]  }
 0x279   :  { %5477 = vmatpush2.bf16.msra.mxu1 %v8231_v26  ;;  %5437 = vmatprep.subr.bf16.mxu0 %v8236_v49  ;;  %v8299_v26 = vld [vmem:[#allocation2 + $0xe4c] ss:$16 sps:$4 sm:$0xff]   ;;  %v8294_v49 = vld [vmem:[#allocation2 + $0xc48] ss:$16 sps:$4 sm:$0xff]  }
 0x27a   :  { %5478 = vmatprep.subr.bf16.mxu1 %v8239_v52  ;;  %v8297_v52 = vld [vmem:[#allocation2 + $0xe48] ss:$16 sps:$4 sm:$0xff]  }
 0x27c   :  { %5438 = vmatpush2.bf16.msra.mxu0 %v8234_v23  ;;  %v8302_v23 = vld [vmem:[#allocation2 + $0xc2c] ss:$16 sps:$4 sm:$0xff]  }
 0x27d   :  { %5479 = vmatpush2.bf16.msra.mxu1 %v8237_v27  ;;  %5439 = vmatprep.subr.bf16.mxu0 %v8242_v28  ;;  %v8305_v27 = vld [vmem:[#allocation2 + $0xe2c] ss:$16 sps:$4 sm:$0xff]   ;;  %v8300_v28 = vld [vmem:[#allocation2 + $0xc28] ss:$16 sps:$4 sm:$0xff]  }
 0x27e   :  { %5480 = vmatprep.subr.bf16.mxu1 %v8245_v30  ;;  %v8303_v30 = vld [vmem:[#allocation2 + $0xe28] ss:$16 sps:$4 sm:$0xff]  }
 0x280   :  { %5440 = vmatpush2.bf16.msra.mxu0 %v8240_v31  ;;  %v8308_v31 = vld [vmem:[#allocation2 + $0xc0c] ss:$16 sps:$4 sm:$0xff]  }
 0x281   :  { %5481 = vmatpush2.bf16.msra.mxu1 %v8243_v33  ;;  %5441 = vmatprep.subr.bf16.mxu0 %v8248_v34  ;;  %v8311_v33 = vld [vmem:[#allocation2 + $0xe0c] ss:$16 sps:$4 sm:$0xff]   ;;  %v8306_v34 = vld [vmem:[#allocation2 + $0xc08] ss:$16 sps:$4 sm:$0xff]  }
 0x282   :  { %5482 = vmatprep.subr.bf16.mxu1 %v8251_v36  ;;  %v8309_v36 = vld [vmem:[#allocation2 + $0xe08] ss:$16 sps:$4 sm:$0xff]  }
 0x284   :  { %5442 = vmatpush2.bf16.msra.mxu0 %v8246_v20  ;;  %v8314_v20 = vld [vmem:[#allocation2 + $0xdec] ss:$16 sps:$4 sm:$0xff]  }
 0x285   :  { %5483 = vmatpush2.bf16.msra.mxu1 %v8249_v21  ;;  %5443 = vmatprep.subr.bf16.mxu0 %v8254_v38  ;;  %v8317_v21 = vld [vmem:[#allocation2 + $0xfec] ss:$16 sps:$4 sm:$0xff]   ;;  %v8312_v38 = vld [vmem:[#allocation2 + $0xde8] ss:$16 sps:$4 sm:$0xff]  }
 0x286   :  { %5484 = vmatprep.subr.bf16.mxu1 %v8257_v39  ;;  %v8315_v39 = vld [vmem:[#allocation2 + $0xfe8] ss:$16 sps:$4 sm:$0xff]  }
 0x288   :  { %5444 = vmatpush2.bf16.msra.mxu0 %v8252_v41  ;;  %v8320_v41 = vld [vmem:[#allocation2 + $0xdcc] ss:$16 sps:$4 sm:$0xff]  }
 0x289   :  { %5485 = vmatpush2.bf16.msra.mxu1 %v8255_v44  ;;  %5445 = vmatprep.subr.bf16.mxu0 %v8260_v45  ;;  %v8323_v44 = vld [vmem:[#allocation2 + $0xfcc] ss:$16 sps:$4 sm:$0xff]   ;;  %v8318_v45 = vld [vmem:[#allocation2 + $0xdc8] ss:$16 sps:$4 sm:$0xff]  }
 0x28a   :  { %5486 = vmatprep.subr.bf16.mxu1 %v8263_v46  ;;  %v8321_v46 = vld [vmem:[#allocation2 + $0xfc8] ss:$16 sps:$4 sm:$0xff]  }
 0x28c   :  { %5446 = vmatpush2.bf16.msra.mxu0 %v8258_v7  ;;  %v8326_v7 = vld [vmem:[#allocation2 + $0xdac] ss:$16 sps:$4 sm:$0xff]  }
 0x28d   :  { %5487 = vmatpush2.bf16.msra.mxu1 %v8261_v29  ;;  %5497 = vmatprep.subr.bf16.mxu0 %v8266_v32  ;;  %v8329_v29 = vld [vmem:[#allocation2 + $0xfac] ss:$16 sps:$4 sm:$0xff]   ;;  %v8324_v32 = vld [vmem:[#allocation2 + $0xda8] ss:$16 sps:$4 sm:$0xff]  }
 0x28e   :  { %5538 = vmatprep.subr.bf16.mxu1 %v8269_v47  ;;  %v8327_v47 = vld [vmem:[#allocation2 + $0xfa8] ss:$16 sps:$4 sm:$0xff]  }
 0x28f   :  { %v5203_v60 = vpop.f32.mrf.mxu0  ;;  %5448 = vmatmul.mubr.bf16.vlgmr.msra.gmra.mxu0 %v8934_v42 }
 0x290   :  { %v5244_v0 = vpop.f32.mrf.mxu1  ;;  %5489 = vmatmul.mubr.bf16.vlgmr.msra.gmra.mxu1 %v8936_v43  ;;  %v5204_v1 = vadd.f32 %v5203_v60, %v9043_v35  ;;  %5498 = vmatpush1.bf16.msra.mxu0 %v8264_v54  ;;  %v8332_v54 = vld [vmem:[#allocation2 + $0xd8c] ss:$16 sps:$4 sm:$0xff]  }
 0x291   :  { %5539 = vmatpush1.bf16.msra.mxu1 %v8267_v55  ;;  %v5205_v9 = vpop.f32.mrf.mxu0  ;;  %5499 = vmatprep.subr.bf16.mxu0 %v8272_v58  ;;  %v8335_v55 = vld [vmem:[#allocation2 + $0xf8c] ss:$16 sps:$4 sm:$0xff]   ;;  %v8330_v58 = vld [vmem:[#allocation2 + $0xd88] ss:$16 sps:$4 sm:$0xff]  }
 0x292   :  { %v5246_v5 = vpop.f32.mrf.mxu1  ;;  %5540 = vmatprep.subr.bf16.mxu1 %v8275_v59  ;;  %v9053_v14 = vadd.f32 %v5244_v0, %v5204_v1  ;;  %v5206_v18 = vadd.f32 %v5205_v9, %v9048_v61  ;;  %5529 = vmatprep.mubr.bf16.mxu0 %v8944_v48  ;;  %v8282_v61 = vld [vmem:[#allocation2 + $0xc88] ss:$16 sps:$4 sm:$0xff]   ;;  %v8338_v60 = vld [vmem:[#allocation2 + $0xd6c] ss:$16 sps:$4 sm:$0xff]  }
 0x293   :  { %5570 = vmatprep.mubr.bf16.mxu1 %v8946_v50  ;;  %v5207_v42 = vpop.f32.mrf.mxu0  ;;  %v8285_v48 = vld [vmem:[#allocation2 + $0xe88] ss:$16 sps:$4 sm:$0xff]   ;;  %v8290_v50 = vld [vmem:[#allocation2 + $0xc6c] ss:$16 sps:$4 sm:$0xff]  }
 0x294   :  { %v5248_v43 = vpop.f32.mrf.mxu1  ;;  %v9058_v35 = vadd.f32 %v5246_v5, %v5206_v18  ;;  %5500 = vmatpush1.bf16.msra.mxu0 %v8270_v4  ;;  %v8333_v59 = vld [vmem:[#allocation2 + $0xf88] ss:$16 sps:$4 sm:$0xff]   ;;  %v8341_v0 = vld [vmem:[#allocation2 + $0xf6c] ss:$16 sps:$4 sm:$0xff]  }
 0x295   :  { %5541 = vmatpush1.bf16.msra.mxu1 %v8273_v8  ;;  %v5208_v40 = vpop.f32.mrf.mxu0  ;;  %5501 = vmatprep.subr.bf16.mxu0 %v8278_v6  ;;  %v8336_v1 = vld [vmem:[#allocation2 + $0xd68] ss:$16 sps:$4 sm:$0xff]   ;;  %v8344_v8 = vld [vmem:[#allocation2 + $0xd4c] ss:$16 sps:$4 sm:$0xff]  }
 0x296   :  { %v5249_v17 = vpop.f32.mrf.mxu1  ;;  %5542 = vmatprep.subr.bf16.mxu1 %v8281_v12  ;;  %v8339_v4 = vld [vmem:[#allocation2 + $0xf68] ss:$16 sps:$4 sm:$0xff]   ;;  %v8347_v9 = vld [vmem:[#allocation2 + $0xf4c] ss:$16 sps:$4 sm:$0xff]  }
 0x297   :  { %v8342_v5 = vld [vmem:[#allocation2 + $0xd48] ss:$16 sps:$4 sm:$0xff]   ;;  %v8350_v12 = vld [vmem:[#allocation2 + $0xd2c] ss:$16 sps:$4 sm:$0xff]  }
 0x298   :  { %5502 = vmatpush1.bf16.msra.mxu0 %v8276_v15  ;;  %v8345_v6 = vld [vmem:[#allocation2 + $0xf48] ss:$16 sps:$4 sm:$0xff]   ;;  %v8353_v18 = vld [vmem:[#allocation2 + $0xf2c] ss:$16 sps:$4 sm:$0xff]  }
 0x299   :  { %5543 = vmatpush1.bf16.msra.mxu1 %v8279_v37  ;;  %5503 = vmatprep.subr.bf16.mxu0 %v8284_v13  ;;  %v8348_v42 = vld [vmem:[#allocation2 + $0xd28] ss:$16 sps:$4 sm:$0xff]   ;;  %v8356_v15 = vld [vmem:[#allocation2 + $0xd0c] ss:$16 sps:$4 sm:$0xff]  }
 0x29a   :  { %5544 = vmatprep.subr.bf16.mxu1 %v8287_v16  ;;  %v8351_v43 = vld [vmem:[#allocation2 + $0xf28] ss:$16 sps:$4 sm:$0xff]   ;;  %v8359_v37 = vld [vmem:[#allocation2 + $0xf0c] ss:$16 sps:$4 sm:$0xff]  }
 0x29b   :  { %v8354_v40 = vld [vmem:[#allocation2 + $0xd08] ss:$16 sps:$4 sm:$0xff]   ;;  %v8362_v13 = vld [vmem:[#allocation2 + $0x10ec] ss:$16 sps:$4 sm:$0xff]  }
 0x29c   :  { %5504 = vmatpush1.bf16.msra.mxu0 %v8282_v61  ;;  %v8357_v17 = vld [vmem:[#allocation2 + $0xf08] ss:$16 sps:$4 sm:$0xff]   ;;  %v8365_v16 = vld [vmem:[#allocation2 + $0x12ec] ss:$16 sps:$4 sm:$0xff]  }
 0x29d   :  { %5545 = vmatpush1.bf16.msra.mxu1 %v8285_v48  ;;  %5505 = vmatprep.subr.bf16.mxu0 %v8290_v50  ;;  %v8360_v61 = vld [vmem:[#allocation2 + $0x10e8] ss:$16 sps:$4 sm:$0xff]   ;;  %v8368_v50 = vld [vmem:[#allocation2 + $0x10cc] ss:$16 sps:$4 sm:$0xff]  }
 0x29e   :  { %5546 = vmatprep.subr.bf16.mxu1 %v8293_v22  ;;  %v8363_v48 = vld [vmem:[#allocation2 + $0x12e8] ss:$16 sps:$4 sm:$0xff]   ;;  %v8371_v22 = vld [vmem:[#allocation2 + $0x12cc] ss:$16 sps:$4 sm:$0xff]  }
 0x2a0   :  { %5506 = vmatpush1.bf16.msra.mxu0 %v8288_v24 }
 0x2a1   :  { %5547 = vmatpush1.bf16.msra.mxu1 %v8291_v25  ;;  %5507 = vmatprep.subr.bf16.mxu0 %v8296_v19 }
 0x2a2   :  { %5548 = vmatprep.subr.bf16.mxu1 %v8299_v26  ;;  %v8366_v26 = vld [vmem:[#allocation2 + $0x10c8] ss:$16 sps:$4 sm:$0xff]  }
 0x2a4   :  { %5508 = vmatpush1.bf16.msra.mxu0 %v8294_v49  ;;  %v8369_v49 = vld [vmem:[#allocation2 + $0x12c8] ss:$16 sps:$4 sm:$0xff]  }
 0x2a5   :  { %5549 = vmatpush1.bf16.msra.mxu1 %v8297_v52  ;;  %5509 = vmatprep.subr.bf16.mxu0 %v8302_v23 }
 0x2a6   :  { %5550 = vmatprep.subr.bf16.mxu1 %v8305_v27  ;;  %v8374_v27 = vld [vmem:[#allocation2 + $0x10ac] ss:$16 sps:$4 sm:$0xff]  }
 0x2a8   :  { %5510 = vmatpush1.bf16.msra.mxu0 %v8300_v28  ;;  %v8377_v28 = vld [vmem:[#allocation2 + $0x12ac] ss:$16 sps:$4 sm:$0xff]  }
 0x2a9   :  { %5551 = vmatpush1.bf16.msra.mxu1 %v8303_v30  ;;  %5511 = vmatprep.subr.bf16.mxu0 %v8308_v31  ;;  %v8372_v31 = vld [vmem:[#allocation2 + $0x10a8] ss:$16 sps:$4 sm:$0xff]  }
 0x2aa   :  { %5552 = vmatprep.subr.bf16.mxu1 %v8311_v33  ;;  %v8375_v33 = vld [vmem:[#allocation2 + $0x12a8] ss:$16 sps:$4 sm:$0xff]  }
 0x2ac   :  { %5512 = vmatpush1.bf16.msra.mxu0 %v8306_v34 }
 0x2ad   :  { %5553 = vmatpush1.bf16.msra.mxu1 %v8309_v36  ;;  %5513 = vmatprep.subr.bf16.mxu0 %v8314_v20  ;;  %v8380_v20 = vld [vmem:[#allocation2 + $0x108c] ss:$16 sps:$4 sm:$0xff]  }
 0x2ae   :  { %5554 = vmatprep.subr.bf16.mxu1 %v8317_v21  ;;  %v8383_v21 = vld [vmem:[#allocation2 + $0x128c] ss:$16 sps:$4 sm:$0xff]  }
 0x2b0   :  { %5514 = vmatpush2.bf16.msra.mxu0 %v8312_v38  ;;  %v8378_v38 = vld [vmem:[#allocation2 + $0x1088] ss:$16 sps:$4 sm:$0xff]  }
 0x2b1   :  { %5555 = vmatpush2.bf16.msra.mxu1 %v8315_v39  ;;  %5515 = vmatprep.subr.bf16.mxu0 %v8320_v41  ;;  %v8381_v39 = vld [vmem:[#allocation2 + $0x1288] ss:$16 sps:$4 sm:$0xff]  }
 0x2b2   :  { %5556 = vmatprep.subr.bf16.mxu1 %v8323_v44  ;;  %v8384_v41 = vld [vmem:[#allocation2 + $0x1068] ss:$16 sps:$4 sm:$0xff]  }
 0x2b3   :  { %v8387_v44 = vld [vmem:[#allocation2 + $0x1268] ss:$16 sps:$4 sm:$0xff]  }
 0x2b4   :  { %5516 = vmatpush2.bf16.msra.mxu0 %v8318_v45  ;;  %v8392_v45 = vld [vmem:[#allocation2 + $0x104c] ss:$16 sps:$4 sm:$0xff]  }
 0x2b5   :  { %5557 = vmatpush2.bf16.msra.mxu1 %v8321_v46  ;;  %5517 = vmatprep.subr.bf16.mxu0 %v8326_v7  ;;  %v8395_v46 = vld [vmem:[#allocation2 + $0x124c] ss:$16 sps:$4 sm:$0xff]   ;;  %v8390_v7 = vld [vmem:[#allocation2 + $0x1048] ss:$16 sps:$4 sm:$0xff]  }
 0x2b6   :  { %5558 = vmatprep.subr.bf16.mxu1 %v8329_v29  ;;  %v8393_v29 = vld [vmem:[#allocation2 + $0x1248] ss:$16 sps:$4 sm:$0xff]  }
 0x2b8   :  { %5518 = vmatpush2.bf16.msra.mxu0 %v8324_v32  ;;  %v8398_v32 = vld [vmem:[#allocation2 + $0x102c] ss:$16 sps:$4 sm:$0xff]  }
 0x2b9   :  { %5559 = vmatpush2.bf16.msra.mxu1 %v8327_v47  ;;  %5519 = vmatprep.subr.bf16.mxu0 %v8332_v54  ;;  %v8401_v47 = vld [vmem:[#allocation2 + $0x122c] ss:$16 sps:$4 sm:$0xff]   ;;  %v8396_v54 = vld [vmem:[#allocation2 + $0x1028] ss:$16 sps:$4 sm:$0xff]  }
 0x2ba   :  { %5560 = vmatprep.subr.bf16.mxu1 %v8335_v55  ;;  %v8399_v55 = vld [vmem:[#allocation2 + $0x1228] ss:$16 sps:$4 sm:$0xff]  }
 0x2bc   :  { %5520 = vmatpush2.bf16.msra.mxu0 %v8330_v58  ;;  %v8404_v58 = vld [vmem:[#allocation2 + $0x100c] ss:$16 sps:$4 sm:$0xff]  }
 0x2bd   :  { %5561 = vmatpush2.bf16.msra.mxu1 %v8333_v59  ;;  %5521 = vmatprep.subr.bf16.mxu0 %v8338_v60  ;;  %v8407_v59 = vld [vmem:[#allocation2 + $0x120c] ss:$16 sps:$4 sm:$0xff]   ;;  %v8402_v60 = vld [vmem:[#allocation2 + $0x1008] ss:$16 sps:$4 sm:$0xff]  }
 0x2be   :  { %5562 = vmatprep.subr.bf16.mxu1 %v8341_v0  ;;  %v8405_v0 = vld [vmem:[#allocation2 + $0x1208] ss:$16 sps:$4 sm:$0xff]  }
 0x2c0   :  { %5522 = vmatpush2.bf16.msra.mxu0 %v8336_v1  ;;  %v8410_v1 = vld [vmem:[#allocation2 + $0x11ec] ss:$16 sps:$4 sm:$0xff]  }
 0x2c1   :  { %5563 = vmatpush2.bf16.msra.mxu1 %v8339_v4  ;;  %5523 = vmatprep.subr.bf16.mxu0 %v8344_v8  ;;  %v8413_v4 = vld [vmem:[#allocation2 + $0x13ec] ss:$16 sps:$4 sm:$0xff]   ;;  %v8408_v8 = vld [vmem:[#allocation2 + $0x11e8] ss:$16 sps:$4 sm:$0xff]  }
 0x2c2   :  { %5564 = vmatprep.subr.bf16.mxu1 %v8347_v9  ;;  %v8411_v9 = vld [vmem:[#allocation2 + $0x13e8] ss:$16 sps:$4 sm:$0xff]  }
 0x2c4   :  { %5524 = vmatpush2.bf16.msra.mxu0 %v8342_v5  ;;  %v8416_v5 = vld [vmem:[#allocation2 + $0x11cc] ss:$16 sps:$4 sm:$0xff]  }
 0x2c5   :  { %5565 = vmatpush2.bf16.msra.mxu1 %v8345_v6  ;;  %5525 = vmatprep.subr.bf16.mxu0 %v8350_v12  ;;  %v8419_v6 = vld [vmem:[#allocation2 + $0x13cc] ss:$16 sps:$4 sm:$0xff]   ;;  %v8414_v12 = vld [vmem:[#allocation2 + $0x11c8] ss:$16 sps:$4 sm:$0xff]  }
 0x2c6   :  { %5566 = vmatprep.subr.bf16.mxu1 %v8353_v18  ;;  %v8417_v18 = vld [vmem:[#allocation2 + $0x13c8] ss:$16 sps:$4 sm:$0xff]  }
 0x2c8   :  { %5526 = vmatpush2.bf16.msra.mxu0 %v8348_v42  ;;  %v8422_v42 = vld [vmem:[#allocation2 + $0x11ac] ss:$16 sps:$4 sm:$0xff]  }
 0x2c9   :  { %5567 = vmatpush2.bf16.msra.mxu1 %v8351_v43  ;;  %5527 = vmatprep.subr.bf16.mxu0 %v8356_v15  ;;  %v8425_v43 = vld [vmem:[#allocation2 + $0x13ac] ss:$16 sps:$4 sm:$0xff]   ;;  %v8420_v15 = vld [vmem:[#allocation2 + $0x11a8] ss:$16 sps:$4 sm:$0xff]  }
 0x2ca   :  { %5568 = vmatprep.subr.bf16.mxu1 %v8359_v37  ;;  %v8423_v37 = vld [vmem:[#allocation2 + $0x13a8] ss:$16 sps:$4 sm:$0xff]  }
 0x2cc   :  { %5528 = vmatpush2.bf16.msra.mxu0 %v8354_v40  ;;  %v8428_v40 = vld [vmem:[#allocation2 + $0x118c] ss:$16 sps:$4 sm:$0xff]  }
 0x2cd   :  { %5569 = vmatpush2.bf16.msra.mxu1 %v8357_v17  ;;  %5579 = vmatprep.subr.bf16.mxu0 %v8362_v13  ;;  %v8431_v17 = vld [vmem:[#allocation2 + $0x138c] ss:$16 sps:$4 sm:$0xff]   ;;  %v8426_v13 = vld [vmem:[#allocation2 + $0x1188] ss:$16 sps:$4 sm:$0xff]  }
 0x2ce   :  { %5620 = vmatprep.subr.bf16.mxu1 %v8365_v16  ;;  %v8429_v16 = vld [vmem:[#allocation2 + $0x1388] ss:$16 sps:$4 sm:$0xff]  }
 0x2cf   :  { %v5285_v24 = vpop.f32.mrf.mxu0  ;;  %5530 = vmatmul.mubr.bf16.vlgmr.msra.gmra.mxu0 %v8958_v2 }
 0x2d0   :  { %v5326_v25 = vpop.f32.mrf.mxu1  ;;  %5571 = vmatmul.mubr.bf16.vlgmr.msra.gmra.mxu1 %v8960_v3  ;;  %5580 = vmatpush1.bf16.msra.mxu0 %v8360_v61  ;;  %v8434_v61 = vld [vmem:[#allocation2 + $0x116c] ss:$16 sps:$4 sm:$0xff]  }
 0x2d1   :  { %v9062_v19 = vadd.f32 %v5326_v25, %v5285_v24  ;;  %5621 = vmatpush1.bf16.msra.mxu1 %v8363_v48  ;;  %v5287_v52 = vpop.f32.mrf.mxu0  ;;  %5581 = vmatprep.subr.bf16.mxu0 %v8368_v50  ;;  %v8437_v48 = vld [vmem:[#allocation2 + $0x136c] ss:$16 sps:$4 sm:$0xff]   ;;  %v8432_v50 = vld [vmem:[#allocation2 + $0x1168] ss:$16 sps:$4 sm:$0xff]  }
 0x2d2   :  { %v5328_v23 = vpop.f32.mrf.mxu1  ;;  %5622 = vmatprep.subr.bf16.mxu1 %v8371_v22  ;;  %5611 = vmatprep.mubr.bf16.mxu0 %v8968_v10  ;;  %v8386_v10 = vld [vmem:[#allocation2 + $0x106c] ss:$16 sps:$4 sm:$0xff]   ;;  %v8435_v22 = vld [vmem:[#allocation2 + $0x1368] ss:$16 sps:$4 sm:$0xff]  }
 0x2d3   :  { %v9064_v30 = vadd.f32 %v5328_v23, %v5287_v52  ;;  %5652 = vmatprep.mubr.bf16.mxu1 %v8970_v11  ;;  %v5289_v2 = vpop.f32.mrf.mxu0  ;;  %v8389_v11 = vld [vmem:[#allocation2 + $0x126c] ss:$16 sps:$4 sm:$0xff]  }
 0x2d4   :  { %v5330_v3 = vpop.f32.mrf.mxu1  ;;  %5582 = vmatpush1.bf16.msra.mxu0 %v8366_v26  ;;  %v8440_v24 = vld [vmem:[#allocation2 + $0x114c] ss:$16 sps:$4 sm:$0xff]   ;;  %v8438_v26 = vld [vmem:[#allocation2 + $0x1148] ss:$16 sps:$4 sm:$0xff]  }
 0x2d5   :  { %5623 = vmatpush1.bf16.msra.mxu1 %v8369_v49  ;;  %v5290_v34 = vpop.f32.mrf.mxu0  ;;  %5583 = vmatprep.subr.bf16.mxu0 %v8374_v27  ;;  %v8443_v25 = vld [vmem:[#allocation2 + $0x134c] ss:$16 sps:$4 sm:$0xff]   ;;  %v8441_v49 = vld [vmem:[#allocation2 + $0x1348] ss:$16 sps:$4 sm:$0xff]  }
 0x2d6   :  { %v5331_v36 = vpop.f32.mrf.mxu1  ;;  %5624 = vmatprep.subr.bf16.mxu1 %v8377_v28  ;;  %v8446_v52 = vld [vmem:[#allocation2 + $0x112c] ss:$16 sps:$4 sm:$0xff]   ;;  %v8444_v27 = vld [vmem:[#allocation2 + $0x1128] ss:$16 sps:$4 sm:$0xff]  }
 0x2d7   :  { %v8449_v23 = vld [vmem:[#allocation2 + $0x132c] ss:$16 sps:$4 sm:$0xff]   ;;  %v8447_v28 = vld [vmem:[#allocation2 + $0x1328] ss:$16 sps:$4 sm:$0xff]  }
 0x2d8   :  { %5584 = vmatpush1.bf16.msra.mxu0 %v8372_v31  ;;  %v8452_v2 = vld [vmem:[#allocation2 + $0x110c] ss:$16 sps:$4 sm:$0xff]   ;;  %v8450_v31 = vld [vmem:[#allocation2 + $0x1108] ss:$16 sps:$4 sm:$0xff]  }
 0x2d9   :  { %5625 = vmatpush1.bf16.msra.mxu1 %v8375_v33  ;;  %5585 = vmatprep.subr.bf16.mxu0 %v8380_v20  ;;  %v8455_v3 = vld [vmem:[#allocation2 + $0x130c] ss:$16 sps:$4 sm:$0xff]   ;;  %v8453_v33 = vld [vmem:[#allocation2 + $0x1308] ss:$16 sps:$4 sm:$0xff]  }
 0x2da   :  { %5626 = vmatprep.subr.bf16.mxu1 %v8383_v21  ;;  %v8458_v34 = vld [vmem:[#allocation2 + $0x14ec] ss:$16 sps:$4 sm:$0xff]   ;;  %v8456_v20 = vld [vmem:[#allocation2 + $0x14e8] ss:$16 sps:$4 sm:$0xff]  }
 0x2db   :  { %v8461_v36 = vld [vmem:[#allocation2 + $0x16ec] ss:$16 sps:$4 sm:$0xff]   ;;  %v8459_v21 = vld [vmem:[#allocation2 + $0x16e8] ss:$16 sps:$4 sm:$0xff]  }
 0x2dc   :  { %5586 = vmatpush1.bf16.msra.mxu0 %v8378_v38  ;;  %v8464_v38 = vld [vmem:[#allocation2 + $0x14cc] ss:$16 sps:$4 sm:$0xff]  }
 0x2dd   :  { %5627 = vmatpush1.bf16.msra.mxu1 %v8381_v39  ;;  %5587 = vmatprep.subr.bf16.mxu0 %v8386_v10  ;;  %v8467_v39 = vld [vmem:[#allocation2 + $0x16cc] ss:$16 sps:$4 sm:$0xff]  }
 0x2de   :  { %5628 = vmatprep.subr.bf16.mxu1 %v8389_v11 }
 0x2e0   :  { %5588 = vmatpush1.bf16.msra.mxu0 %v8384_v41 }
 0x2e1   :  { %5629 = vmatpush1.bf16.msra.mxu1 %v8387_v44  ;;  %5589 = vmatprep.subr.bf16.mxu0 %v8392_v45  ;;  %v8462_v44 = vld [vmem:[#allocation2 + $0x14c8] ss:$16 sps:$4 sm:$0xff]  }
 0x2e2   :  { %5630 = vmatprep.subr.bf16.mxu1 %v8395_v46  ;;  %v8465_v45 = vld [vmem:[#allocation2 + $0x16c8] ss:$16 sps:$4 sm:$0xff]  }
 0x2e4   :  { %5590 = vmatpush1.bf16.msra.mxu0 %v8390_v7 }
 0x2e5   :  { %5631 = vmatpush1.bf16.msra.mxu1 %v8393_v29  ;;  %5591 = vmatprep.subr.bf16.mxu0 %v8398_v32  ;;  %v8470_v29 = vld [vmem:[#allocation2 + $0x14ac] ss:$16 sps:$4 sm:$0xff]  }
 0x2e6   :  { %5632 = vmatprep.subr.bf16.mxu1 %v8401_v47  ;;  %v8473_v32 = vld [vmem:[#allocation2 + $0x16ac] ss:$16 sps:$4 sm:$0xff]  }
 0x2e8   :  { %5592 = vmatpush1.bf16.msra.mxu0 %v8396_v54 }
 0x2e9   :  { %5633 = vmatpush1.bf16.msra.mxu1 %v8399_v55  ;;  %5593 = vmatprep.subr.bf16.mxu0 %v8404_v58  ;;  %v8468_v55 = vld [vmem:[#allocation2 + $0x14a8] ss:$16 sps:$4 sm:$0xff]  }
 0x2ea   :  { %5634 = vmatprep.subr.bf16.mxu1 %v8407_v59  ;;  %v8471_v58 = vld [vmem:[#allocation2 + $0x16a8] ss:$16 sps:$4 sm:$0xff]  }
 0x2ec   :  { %5594 = vmatpush1.bf16.msra.mxu0 %v8402_v60 }
 0x2ed   :  { %5635 = vmatpush1.bf16.msra.mxu1 %v8405_v0  ;;  %5595 = vmatprep.subr.bf16.mxu0 %v8410_v1  ;;  %v8476_v0 = vld [vmem:[#allocation2 + $0x148c] ss:$16 sps:$4 sm:$0xff]  }
 0x2ee   :  { %5636 = vmatprep.subr.bf16.mxu1 %v8413_v4  ;;  %v8479_v1 = vld [vmem:[#allocation2 + $0x168c] ss:$16 sps:$4 sm:$0xff]  }
 0x2ef   :  { %v8485_v4 = vld [vmem:[#allocation2 + $0x166c] ss:$16 sps:$4 sm:$0xff]  }
 0x2f0   :  { %5596 = vmatpush2.bf16.msra.mxu0 %v8408_v8  ;;  %v8480_v8 = vld [vmem:[#allocation2 + $0x1468] ss:$16 sps:$4 sm:$0xff]  }
 0x2f1   :  { %5637 = vmatpush2.bf16.msra.mxu1 %v8411_v9  ;;  %5597 = vmatprep.subr.bf16.mxu0 %v8416_v5  ;;  %v8483_v9 = vld [vmem:[#allocation2 + $0x1668] ss:$16 sps:$4 sm:$0xff]   ;;  %v8488_v5 = vld [vmem:[#allocation2 + $0x144c] ss:$16 sps:$4 sm:$0xff]  }
 0x2f2   :  { %5638 = vmatprep.subr.bf16.mxu1 %v8419_v6  ;;  %v8491_v6 = vld [vmem:[#allocation2 + $0x164c] ss:$16 sps:$4 sm:$0xff]  }
 0x2f4   :  { %5598 = vmatpush2.bf16.msra.mxu0 %v8414_v12  ;;  %v8486_v12 = vld [vmem:[#allocation2 + $0x1448] ss:$16 sps:$4 sm:$0xff]  }
 0x2f5   :  { %5639 = vmatpush2.bf16.msra.mxu1 %v8417_v18  ;;  %5599 = vmatprep.subr.bf16.mxu0 %v8422_v42  ;;  %v8489_v18 = vld [vmem:[#allocation2 + $0x1648] ss:$16 sps:$4 sm:$0xff]   ;;  %v8494_v42 = vld [vmem:[#allocation2 + $0x142c] ss:$16 sps:$4 sm:$0xff]  }
 0x2f6   :  { %5640 = vmatprep.subr.bf16.mxu1 %v8425_v43  ;;  %v8497_v43 = vld [vmem:[#allocation2 + $0x162c] ss:$16 sps:$4 sm:$0xff]  }
 0x2f8   :  { %5600 = vmatpush2.bf16.msra.mxu0 %v8420_v15  ;;  %v8492_v15 = vld [vmem:[#allocation2 + $0x1428] ss:$16 sps:$4 sm:$0xff]  }
 0x2f9   :  { %5641 = vmatpush2.bf16.msra.mxu1 %v8423_v37  ;;  %5601 = vmatprep.subr.bf16.mxu0 %v8428_v40  ;;  %v8495_v37 = vld [vmem:[#allocation2 + $0x1628] ss:$16 sps:$4 sm:$0xff]   ;;  %v8500_v40 = vld [vmem:[#allocation2 + $0x140c] ss:$16 sps:$4 sm:$0xff]  }
 0x2fa   :  { %5642 = vmatprep.subr.bf16.mxu1 %v8431_v17  ;;  %v8503_v17 = vld [vmem:[#allocation2 + $0x160c] ss:$16 sps:$4 sm:$0xff]  }
 0x2fc   :  { %5602 = vmatpush2.bf16.msra.mxu0 %v8426_v13  ;;  %v8498_v13 = vld [vmem:[#allocation2 + $0x1408] ss:$16 sps:$4 sm:$0xff]  }
 0x2fd   :  { %5643 = vmatpush2.bf16.msra.mxu1 %v8429_v16  ;;  %5603 = vmatprep.subr.bf16.mxu0 %v8434_v61  ;;  %v8501_v16 = vld [vmem:[#allocation2 + $0x1608] ss:$16 sps:$4 sm:$0xff]   ;;  %v8506_v61 = vld [vmem:[#allocation2 + $0x15ec] ss:$16 sps:$4 sm:$0xff]  }
 0x2fe   :  { %5644 = vmatprep.subr.bf16.mxu1 %v8437_v48  ;;  %v8509_v48 = vld [vmem:[#allocation2 + $0x17ec] ss:$16 sps:$4 sm:$0xff]  }
 0x300   :  { %5604 = vmatpush2.bf16.msra.mxu0 %v8432_v50  ;;  %v8504_v50 = vld [vmem:[#allocation2 + $0x15e8] ss:$16 sps:$4 sm:$0xff]  }
 0x301   :  { %5645 = vmatpush2.bf16.msra.mxu1 %v8435_v22  ;;  %5605 = vmatprep.subr.bf16.mxu0 %v8440_v24  ;;  %v8507_v22 = vld [vmem:[#allocation2 + $0x17e8] ss:$16 sps:$4 sm:$0xff]   ;;  %v8512_v24 = vld [vmem:[#allocation2 + $0x15cc] ss:$16 sps:$4 sm:$0xff]  }
 0x302   :  { %5646 = vmatprep.subr.bf16.mxu1 %v8443_v25  ;;  %v8515_v25 = vld [vmem:[#allocation2 + $0x17cc] ss:$16 sps:$4 sm:$0xff]  }
 0x304   :  { %5606 = vmatpush2.bf16.msra.mxu0 %v8438_v26  ;;  %v8510_v26 = vld [vmem:[#allocation2 + $0x15c8] ss:$16 sps:$4 sm:$0xff]  }
 0x305   :  { %5647 = vmatpush2.bf16.msra.mxu1 %v8441_v49  ;;  %5607 = vmatprep.subr.bf16.mxu0 %v8446_v52  ;;  %v8513_v49 = vld [vmem:[#allocation2 + $0x17c8] ss:$16 sps:$4 sm:$0xff]   ;;  %v8518_v52 = vld [vmem:[#allocation2 + $0x15ac] ss:$16 sps:$4 sm:$0xff]  }
 0x306   :  { %5648 = vmatprep.subr.bf16.mxu1 %v8449_v23  ;;  %v8521_v23 = vld [vmem:[#allocation2 + $0x17ac] ss:$16 sps:$4 sm:$0xff]  }
 0x308   :  { %5608 = vmatpush2.bf16.msra.mxu0 %v8444_v27  ;;  %v8808_v27 = vmov 1966171168  }
 0x309   :  { %5649 = vmatpush2.bf16.msra.mxu1 %v8447_v28  ;;  %5609 = vmatprep.subr.bf16.mxu0 %v8452_v2  ;;  %v5758_v28 = vunpack.c.l.s4 %v8808_v27  ;;  %v5760_v2 = vlaneseq  ;;  %v8608_v27 = vld [vmem:[#allocation6 + $0x154] ss:$8 sps:$4 sm:$0xff]  }
 0x30a   :  { %5650 = vmatprep.subr.bf16.mxu1 %v8455_v3  ;;  %v8516_v3 = vld [vmem:[#allocation2 + $0x15a8] ss:$16 sps:$4 sm:$0xff]  }
 0x30c   :  { %5610 = vmatpush2.bf16.msra.mxu0 %v8450_v31  ;;  %v8519_v31 = vld [vmem:[#allocation2 + $0x17a8] ss:$16 sps:$4 sm:$0xff]  }
 0x30d   :  { %5651 = vmatpush2.bf16.msra.mxu1 %v8453_v33  ;;  %5661 = vmatprep.subr.bf16.mxu0 %v8458_v34  ;;  %v8524_v33 = vld [vmem:[#allocation2 + $0x158c] ss:$16 sps:$4 sm:$0xff]  }
 0x30e   :  { %5702 = vmatprep.subr.bf16.mxu1 %v8461_v36  ;;  %v8527_v34 = vld [vmem:[#allocation2 + $0x178c] ss:$16 sps:$4 sm:$0xff]   ;;  %v9078_v36 = vld.sshfl [vmem:[#allocation4] sm:$0x33 pattern:$0x75316420] }
 0x30f   :  { %v5367_v10 = vpop.f32.mrf.mxu0  ;;  %5612 = vmatmul.mubr.bf16.vlgmr.msra.gmra.mxu0 %v8992_v56 }
 0x310   :  { %v5408_v11 = vpop.f32.mrf.mxu1  ;;  %5653 = vmatmul.mubr.bf16.vlgmr.msra.gmra.mxu1 %v8994_v57  ;;  %v5368_v41 = vadd.f32 %v5367_v10, %v9062_v19  ;;  %5662 = vmatpush1.bf16.msra.mxu0 %v8456_v20  ;;  %v5759_v20 = vunpack.c.0.s8 %v5758_v28  ;;  %v8530_v10 = vld [vmem:[#allocation2 + $0x156c] ss:$16 sps:$4 sm:$0xff]  }
 0x311   :  { %5703 = vmatpush1.bf16.msra.mxu1 %v8459_v21  ;;  %v5369_v46 = vpop.f32.mrf.mxu0  ;;  %5663 = vmatprep.subr.bf16.mxu0 %v8464_v38  ;;  %v5761_v21 = vshrl.u32 %v5760_v2, 7  ;;  %v8522_v38 = vld [vmem:[#allocation2 + $0x1588] ss:$16 sps:$4 sm:$0xff]   ;;  %v8564_v28 = vld [vmem:[#allocation6 + $0x30] ss:$8 sps:$4 sm:$0xff]  }
 0x312   :  { %v5410_v7 = vpop.f32.mrf.mxu1  ;;  %5704 = vmatprep.subr.bf16.mxu1 %v8467_v39  ;;  %v9071_v47 = vadd.f32 %v5408_v11, %v5368_v41  ;;  %v5370_v54 = vadd.f32 %v5369_v46, %v9064_v30  ;;  %5693 = vmatprep.mubr.bf16.mxu0 %v8996_v62  ;;  %v8474_v30 = vld [vmem:[#allocation2 + $0x1488] ss:$16 sps:$4 sm:$0xff]   ;;  %v8533_v11 = vld [vmem:[#allocation2 + $0x176c] ss:$16 sps:$4 sm:$0xff]   ;;  %v5756_v41 = vcombine.high %v9078_v36, %v9078_v36 }
 0x313   :  { %5734 = vmatprep.mubr.bf16.mxu1 %v8998_v63  ;;  %v5371_v56 = vpop.f32.mrf.mxu0  ;;  %v8477_v62 = vld [vmem:[#allocation2 + $0x1688] ss:$16 sps:$4 sm:$0xff]   ;;  %v8482_v63 = vld [vmem:[#allocation2 + $0x146c] ss:$16 sps:$4 sm:$0xff]  }
 0x314   :  { %v5412_v57 = vpop.f32.mrf.mxu1  ;;  %v9076_v19 = vadd.f32 %v5410_v7, %v5370_v54  ;;  %5664 = vmatpush1.bf16.msra.mxu0 %v8462_v44  ;;  %v8525_v39 = vld [vmem:[#allocation2 + $0x1788] ss:$16 sps:$4 sm:$0xff]   ;;  %v9082_v44 = vsub.s32 %v5759_v20, %v5761_v21  ;;  %v8536_v7 = vld [vmem:[#allocation2 + $0x154c] ss:$16 sps:$4 sm:$0xff]  }
 0x315   :  { %5705 = vmatpush1.bf16.msra.mxu1 %v8465_v45  ;;  %v5372_v59 = vpop.f32.mrf.mxu0  ;;  %5665 = vmatprep.subr.bf16.mxu0 %v8470_v29  ;;  %v8528_v45 = vld [vmem:[#allocation2 + $0x1568] ss:$16 sps:$4 sm:$0xff]   ;;  %v8539_v29 = vld [vmem:[#allocation2 + $0x174c] ss:$16 sps:$4 sm:$0xff]  }
 0x316   :  { %v5413_v60 = vpop.f32.mrf.mxu1  ;;  %5706 = vmatprep.subr.bf16.mxu1 %v8473_v32  ;;  %v8531_v46 = vld [vmem:[#allocation2 + $0x1768] ss:$16 sps:$4 sm:$0xff]   ;;  %v9085_v32 = vrot.slane %v5756_v41, %v9082_v44  ;;  %v8542_v57 = vld [vmem:[#allocation2 + $0x152c] ss:$16 sps:$4 sm:$0xff]   ;;  %v9089_v59 = vsub.s32 0, %v5761_v21 }
 0x317   :  { %v8534_v54 = vld [vmem:[#allocation2 + $0x1548] ss:$16 sps:$4 sm:$0xff]   ;;  %v8606_v2 = vld [vmem:[#allocation6 + $0x150] ss:$8 sps:$4 sm:$0xff]   ;;  %v8573_v41 = vld [vmem:[#allocation6] ss:$8 sps:$4 sm:$0xff]  }
 0x318   :  { %5666 = vmatpush1.bf16.msra.mxu0 %v8468_v55  ;;  %v8537_v56 = vld [vmem:[#allocation2 + $0x1748] ss:$16 sps:$4 sm:$0xff]   ;;  %v8545_v55 = vld [vmem:[#allocation2 + $0x172c] ss:$16 sps:$4 sm:$0xff]  }
 0x319   :  { %5707 = vmatpush1.bf16.msra.mxu1 %v8471_v58  ;;  %5667 = vmatprep.subr.bf16.mxu0 %v8476_v0  ;;  %v5781_v58 = vpack.i.b16 %v9085_v32, %v9085_v32  ;;  %v8540_v60 = vld [vmem:[#allocation2 + $0x1528] ss:$16 sps:$4 sm:$0xff]  }
 0x31a   :  { %5708 = vmatprep.subr.bf16.mxu1 %v8479_v1  ;;  %v8543_v0 = vld [vmem:[#allocation2 + $0x1728] ss:$16 sps:$4 sm:$0xff]   ;;  %v8548_v1 = vld [vmem:[#allocation2 + $0x150c] ss:$16 sps:$4 sm:$0xff]  }
 0x31b   :  { %v8572_v20 = vld [vmem:[#allocation6 + $0x14] ss:$8 sps:$4 sm:$0xff]  }
 0x31c   :  { %5668 = vmatpush1.bf16.msra.mxu0 %v8474_v30  ;;  %v8551_v30 = vld [vmem:[#allocation2 + $0x170c] ss:$16 sps:$4 sm:$0xff]   ;;  %v8614_v21 = vld [vmem:[#allocation6 + $0x134] ss:$8 sps:$4 sm:$0xff]  }
 0x31d   :  { %5709 = vmatpush1.bf16.msra.mxu1 %v8477_v62  ;;  %5669 = vmatprep.subr.bf16.mxu0 %v8482_v63  ;;  %v5744_v62 = vpack.c.bf16 %v9058_v35, %v9058_v35  ;;  %v5786_v63 = vrot.slane %v5781_v58, %v9089_v59  ;;  %v8621_v58 = vld [vmem:[#allocation6 + $0x100] ss:$8 sps:$4 sm:$0xff]  }
 0x31e   :  { %5710 = vmatprep.subr.bf16.mxu1 %v8485_v4  ;;  %v8546_v4 = vld [vmem:[#allocation2 + $0x1508] ss:$16 sps:$4 sm:$0xff]  }
 0x320   :  { %5670 = vmatpush1.bf16.msra.mxu0 %v8480_v8  ;;  %v8549_v8 = vld [vmem:[#allocation2 + $0x1708] ss:$16 sps:$4 sm:$0xff]  }
 0x321   :  { %5711 = vmatpush1.bf16.msra.mxu1 %v8483_v9  ;;  %5671 = vmatprep.subr.bf16.mxu0 %v8488_v5  ;;  %v8554_v9 = vld [vmem:[#allocation6 + $0x74] ss:$8 sps:$4 sm:$0xff]   ;;  %v5802_v5 = vadd.bf16 %v5786_v63, %v5744_v62  ;;  %v8587_v62 = vld [vmem:[#allocation6 + $0xc4] ss:$8 sps:$4 sm:$0xff]  }
 0x322   :  { %5712 = vmatprep.subr.bf16.mxu1 %v8491_v6  ;;  %v8552_v6 = vld [vmem:[#allocation6 + $0x70] ss:$8 sps:$4 sm:$0xff]   ;;  %v8629_v63 = vld [vmem:[#allocation6 + $0x1e4] ss:$8 sps:$4 sm:$0xff]  }
 0x324   :  { %5672 = vmatpush1.bf16.msra.mxu0 %v8486_v12  ;;  %v8557_v12 = vld [vmem:[#allocation6 + $0x64] ss:$8 sps:$4 sm:$0xff]  }
 0x325   :  { %5713 = vmatpush1.bf16.msra.mxu1 %v8489_v18  ;;  %5673 = vmatprep.subr.bf16.mxu0 %v8494_v42  ;;  %v8809_v18 = vmov 0  }
 0x326   :  { %5714 = vmatprep.subr.bf16.mxu1 %v8497_v43  ;;  %v5806_v42 = vmax.bf16 %v8809_v18, %v5802_v5  ;;  %v8632_v5 = vld [vmem:[#allocation6 + $0x1d4] ss:$8 sps:$4 sm:$0xff]  }
 0x328   :  { %5674 = vmatpush1.bf16.msra.mxu0 %v8492_v15 }
 0x329   :  { %5715 = vmatpush1.bf16.msra.mxu1 %v8495_v37  ;;  %5675 = vmatprep.subr.bf16.mxu0 %v8500_v40  ;;  %v8555_v37 = vld [vmem:[#allocation6 + $0x60] ss:$8 sps:$4 sm:$0xff]  }
 0x32a   :  { %5716 = vmatprep.subr.bf16.mxu1 %v8503_v17 }
 0x32c   :  { %5676 = vmatpush1.bf16.msra.mxu0 %v8498_v13  ;;  %v8560_v13 = vld [vmem:[#allocation6 + $0x54] ss:$8 sps:$4 sm:$0xff]  }
 0x32d   :  { %5717 = vmatpush1.bf16.msra.mxu1 %v8501_v16  ;;  %5677 = vmatprep.subr.bf16.mxu0 %v8506_v61 }
 0x32e   :  { %5718 = vmatprep.subr.bf16.mxu1 %v8509_v48 }
 0x330   :  { %5678 = vmatpush2.bf16.msra.mxu0 %v8504_v50 }
 0x331   :  { %5719 = vmatpush2.bf16.msra.mxu1 %v8507_v22  ;;  %5679 = vmatprep.subr.bf16.mxu0 %v8512_v24 }
 0x332   :  { %5720 = vmatprep.subr.bf16.mxu1 %v8515_v25  ;;  %v8600_v25 = vld [vmem:[#allocation6 + $0x170] ss:$8 sps:$4 sm:$0xff]  }
 0x334   :  { %5680 = vmatpush2.bf16.msra.mxu0 %v8510_v26  ;;  %v8602_v26 = vld [vmem:[#allocation6 + $0x174] ss:$8 sps:$4 sm:$0xff]  }
 0x335   :  { %5721 = vmatpush2.bf16.msra.mxu1 %v8513_v49  ;;  %5681 = vmatprep.subr.bf16.mxu0 %v8518_v52  ;;  %v8605_v49 = vld [vmem:[#allocation6 + $0x164] ss:$8 sps:$4 sm:$0xff]   ;;  %v8561_v52 = vld [vmem:[#allocation6 + $0x40] ss:$8 sps:$4 sm:$0xff]  }
 0x336   :  { %5722 = vmatprep.subr.bf16.mxu1 %v8521_v23  ;;  %v8603_v23 = vld [vmem:[#allocation6 + $0x160] ss:$8 sps:$4 sm:$0xff]  }
 0x338   :  { %5682 = vmatpush2.bf16.msra.mxu0 %v8516_v3  ;;  %v8569_v3 = vld [vmem:[#allocation6 + $0x24] ss:$8 sps:$4 sm:$0xff]  }
 0x339   :  { %5723 = vmatpush2.bf16.msra.mxu1 %v8519_v31  ;;  %5683 = vmatprep.subr.bf16.mxu0 %v8524_v33  ;;  %v8611_v31 = vld [vmem:[#allocation6 + $0x144] ss:$8 sps:$4 sm:$0xff]   ;;  %v8567_v33 = vld [vmem:[#allocation6 + $0x20] ss:$8 sps:$4 sm:$0xff]  }
 0x33a   :  { %5724 = vmatprep.subr.bf16.mxu1 %v8527_v34  ;;  %v8609_v34 = vld [vmem:[#allocation6 + $0x140] ss:$8 sps:$4 sm:$0xff]  }
 0x33c   :  { %5684 = vmatpush2.bf16.msra.mxu0 %v8522_v38  ;;  %v8570_v38 = vld [vmem:[#allocation6 + $0x10] ss:$8 sps:$4 sm:$0xff]  }
 0x33d   :  { %5725 = vmatpush2.bf16.msra.mxu1 %v8525_v39  ;;  %5685 = vmatprep.subr.bf16.mxu0 %v8530_v10  ;;  %v8612_v39 = vld [vmem:[#allocation6 + $0x130] ss:$8 sps:$4 sm:$0xff]   ;;  %v8575_v10 = vld [vmem:[#allocation6 + $0x4] ss:$8 sps:$4 sm:$0xff]  }
 0x33e   :  { %5726 = vmatprep.subr.bf16.mxu1 %v8533_v11  ;;  %v8617_v11 = vld [vmem:[#allocation6 + $0x124] ss:$8 sps:$4 sm:$0xff]  }
 0x340   :  { %5686 = vmatpush2.bf16.msra.mxu0 %v8528_v45  ;;  %v8615_v45 = vld [vmem:[#allocation6 + $0x120] ss:$8 sps:$4 sm:$0xff]  }
 0x341   :  { %5727 = vmatpush2.bf16.msra.mxu1 %v8531_v46  ;;  %5687 = vmatprep.subr.bf16.mxu0 %v8536_v7  ;;  %v8578_v46 = vld [vmem:[#allocation6 + $0xf4] ss:$8 sps:$4 sm:$0xff]  }
 0x342   :  { %5728 = vmatprep.subr.bf16.mxu1 %v8539_v29  ;;  %v8620_v7 = vld [vmem:[#allocation6 + $0x114] ss:$8 sps:$4 sm:$0xff]   ;;  %v8576_v29 = vld [vmem:[#allocation6 + $0xf0] ss:$8 sps:$4 sm:$0xff]  }
 0x344   :  { %5688 = vmatpush2.bf16.msra.mxu0 %v8534_v54  ;;  %v8618_v54 = vld [vmem:[#allocation6 + $0x110] ss:$8 sps:$4 sm:$0xff]  }
 0x345   :  { %5729 = vmatpush2.bf16.msra.mxu1 %v8537_v56  ;;  %5689 = vmatprep.subr.bf16.mxu0 %v8542_v57  ;;  %v8581_v56 = vld [vmem:[#allocation6 + $0xe4] ss:$8 sps:$4 sm:$0xff]  }
 0x346   :  { %5730 = vmatprep.subr.bf16.mxu1 %v8545_v55  ;;  %v8623_v57 = vld [vmem:[#allocation6 + $0x104] ss:$8 sps:$4 sm:$0xff]   ;;  %v8579_v55 = vld [vmem:[#allocation6 + $0xe0] ss:$8 sps:$4 sm:$0xff]  }
 0x348   :  { %5690 = vmatpush2.bf16.msra.mxu0 %v8540_v60  ;;  %v8584_v60 = vld [vmem:[#allocation6 + $0xd4] ss:$8 sps:$4 sm:$0xff]  }
 0x349   :  { %5731 = vmatpush2.bf16.msra.mxu1 %v8543_v0  ;;  %5691 = vmatprep.subr.bf16.mxu0 %v8548_v1  ;;  %v8626_v0 = vld [vmem:[#allocation6 + $0x1f4] ss:$8 sps:$4 sm:$0xff]   ;;  %v8582_v1 = vld [vmem:[#allocation6 + $0xd0] ss:$8 sps:$4 sm:$0xff]  }
 0x34a   :  { %5732 = vmatprep.subr.bf16.mxu1 %v8551_v30  ;;  %v8624_v30 = vld [vmem:[#allocation6 + $0x1f0] ss:$8 sps:$4 sm:$0xff]  }
 0x34c   :  { %5692 = vmatpush2.bf16.msra.mxu0 %v8546_v4  ;;  %v8585_v4 = vld [vmem:[#allocation6 + $0xc0] ss:$8 sps:$4 sm:$0xff]  }
 0x34d   :  { %5733 = vmatpush2.bf16.msra.mxu1 %v8549_v8  ;;  %6193 = vmatprep.subr.bf16.mxu0 %v8554_v9  ;;  %v8627_v8 = vld [vmem:[#allocation6 + $0x1e0] ss:$8 sps:$4 sm:$0xff]   ;;  %v8590_v9 = vld [vmem:[#allocation6 + $0xb4] ss:$8 sps:$4 sm:$0xff]  }
 0x34e   :  { %6234 = vmatprep.subr.bf16.mxu1 %v8602_v26 }
 0x34f   :  { %v5449_v43 = vpop.f32.mrf.mxu0  ;;  %5694 = vmatmul.mubr.bf16.vlgmr.msra.gmra.mxu0 %v9016_v51  ;;  %v8558_v51 = vld [vmem:[#allocation6 + $0x50] ss:$8 sps:$4 sm:$0xff]  }
 0x350   :  { %v5490_v35 = vpop.f32.mrf.mxu1  ;;  %5735 = vmatmul.mubr.bf16.vlgmr.msra.gmra.mxu1 %v9018_v53  ;;  %v5450_v15 = vadd.f32 %v5449_v43, %v9071_v47  ;;  %6194 = vmatpush1.bf16.msra.mxu0 %v8552_v6  ;;  %v8563_v47 = vld [vmem:[#allocation6 + $0x44] ss:$8 sps:$4 sm:$0xff]   ;;  %v8588_v6 = vld [vmem:[#allocation6 + $0xb0] ss:$8 sps:$4 sm:$0xff]  }
 0x351   :  { %6225 = vmatprep.mubr.bf16.mxu0 %v5806_v42  ;;  %v5451_v40 = vpop.f32.mrf.mxu0  ;;  %6195 = vmatprep.subr.bf16.mxu0 %v8557_v12  ;;  %v8630_v12 = vld [vmem:[#allocation6 + $0x1d0] ss:$8 sps:$4 sm:$0xff]   ;;  %v9105_v42 = vrot.slane %v9078_v36, %v9082_v44  ;;  %v8593_v43 = vld [vmem:[#allocation6 + $0xa4] ss:$8 sps:$4 sm:$0xff]  }
 0x352   :  { %v5492_v17 = vpop.f32.mrf.mxu1  ;;  %v9098_v16 = vadd.f32 %v5490_v35, %v5450_v15  ;;  %v5452_v61 = vadd.f32 %v5451_v40, %v9076_v19  ;;  %6235 = vmatpush1.bf16.msra.mxu1 %v8600_v25  ;;  %v8566_v19 = vld [vmem:[#allocation6 + $0x34] ss:$8 sps:$4 sm:$0xff]   ;;  %v8635_v35 = vld [vmem:[#allocation6 + $0x1c4] ss:$8 sps:$4 sm:$0xff]   ;;  %v8591_v15 = vld [vmem:[#allocation6 + $0xa0] ss:$8 sps:$4 sm:$0xff]  }
 0x353   :  { %v5453_v48 = vpop.f32.mrf.mxu0  ;;  %6236 = vmatprep.subr.bf16.mxu1 %v8605_v49  ;;  %v5774_v40 = vpack.i.b16 %v9105_v42, %v9105_v42  ;;  %v8636_v36 = vld [vmem:[#allocation6 + $0x1b0] ss:$8 sps:$4 sm:$0xff]   ;;  %v8641_v49 = vld [vmem:[#allocation6 + $0x1a4] ss:$8 sps:$4 sm:$0xff]  }
 0x354   :  { %v5494_v50 = vpop.f32.mrf.mxu1  ;;  %v9101_v22 = vadd.f32 %v5492_v17, %v5452_v61  ;;  %6196 = vmatpush1.bf16.msra.mxu0 %v8555_v37  ;;  %v8633_v37 = vld [vmem:[#allocation6 + $0x1c0] ss:$8 sps:$4 sm:$0xff]   ;;  %v8596_v17 = vld [vmem:[#allocation6 + $0x94] ss:$8 sps:$4 sm:$0xff]   ;;  %v8594_v61 = vld [vmem:[#allocation6 + $0x90] ss:$8 sps:$4 sm:$0xff]   ;;  %v5743_v48 = vpack.c.bf16 %v9053_v14, %v9053_v14 }
 0x355   :  { %v5454_v53 = vpop.f32.mrf.mxu0  ;;  %6197 = vmatprep.subr.bf16.mxu0 %v8560_v13  ;;  %v8638_v13 = vld [vmem:[#allocation6 + $0x1b4] ss:$8 sps:$4 sm:$0xff]   ;;  %v5779_v50 = vrot.slane %v5774_v40, %v9089_v59  ;;  %v8639_v14 = vld [vmem:[#allocation6 + $0x1a0] ss:$8 sps:$4 sm:$0xff]  }
 0x356   :  { %v5495_v24 = vpop.f32.mrf.mxu1  ;;  %6237 = vmatpush1.bf16.msra.mxu1 %v8603_v23  ;;  %v8597_v53 = vld [vmem:[#allocation6 + $0x80] ss:$8 sps:$4 sm:$0xff]  }
 0x357   :  { %6238 = vmatprep.subr.bf16.mxu1 %v8608_v27  ;;  %v5801_v24 = vadd.bf16 %v5779_v50, %v5743_v48 }
 0x358   :  { %6198 = vmatpush1.bf16.msra.mxu0 %v8558_v51  ;;  %v8599_v51 = vld [vmem:[#allocation6 + $0x84] ss:$8 sps:$4 sm:$0xff]  }
 0x359   :  { %6199 = vmatprep.subr.bf16.mxu0 %v8563_v47  ;;  %v5805_v47 = vmax.bf16 %v8809_v18, %v5801_v24 }
 0x35a   :  { %6239 = vmatpush1.bf16.msra.mxu1 %v8606_v2 }
 0x35b   :  { %6240 = vmatprep.subr.bf16.mxu1 %v8611_v31  ;;  %v8644_v31 = vld [vmem:[#allocation6 + $0x194] ss:$8 sps:$4 sm:$0xff]  }
 0x35c   :  { %6200 = vmatpush1.bf16.msra.mxu0 %v8561_v52 }
 0x35d   :  { %6201 = vmatprep.subr.bf16.mxu0 %v8566_v19 }
 0x35e   :  { %6241 = vmatpush1.bf16.msra.mxu1 %v8609_v34  ;;  %v8642_v34 = vld [vmem:[#allocation6 + $0x190] ss:$8 sps:$4 sm:$0xff]  }
 0x35f   :  { %6242 = vmatprep.subr.bf16.mxu1 %v8614_v21 }
 0x360   :  { %6202 = vmatpush1.bf16.msra.mxu0 %v8564_v28 }
 0x361   :  { %6203 = vmatprep.subr.bf16.mxu0 %v8569_v3 }
 0x362   :  { %6243 = vmatpush1.bf16.msra.mxu1 %v8612_v39  ;;  %v8645_v39 = vld [vmem:[#allocation6 + $0x180] ss:$8 sps:$4 sm:$0xff]  }
 0x363   :  { %6244 = vmatprep.subr.bf16.mxu1 %v8617_v11 }
 0x364   :  { %6204 = vmatpush1.bf16.msra.mxu0 %v8567_v33 }
 0x365   :  { %6205 = vmatprep.subr.bf16.mxu0 %v8572_v20 }
 0x366   :  { %6245 = vmatpush1.bf16.msra.mxu1 %v8615_v45 }
 0x367   :  { %6246 = vmatprep.subr.bf16.mxu1 %v8620_v7 }
 0x368   :  { %6206 = vmatpush1.bf16.msra.mxu0 %v8570_v38  ;;  %v8647_v38 = vld [vmem:[#allocation6 + $0x184] ss:$8 sps:$4 sm:$0xff]  }
 0x369   :  { %6207 = vmatprep.subr.bf16.mxu0 %v8575_v10 }
 0x36a   :  { %6247 = vmatpush1.bf16.msra.mxu1 %v8618_v54 }
 0x36b   :  { %6248 = vmatprep.subr.bf16.mxu1 %v8623_v57  ;;  %v8649_v57 = vld [vmem:[#allocation9 + $0x38] sm:$0xff]  }
 0x36c   :  { %6208 = vmatpush1.bf16.msra.mxu0 %v8573_v41 }
 0x36d   :  { %6209 = vmatprep.subr.bf16.mxu0 %v8578_v46 }
 0x36e   :  { %6249 = vmatpush1.bf16.msra.mxu1 %v8621_v58  ;;  %v8651_v58 = vld [vmem:[#allocation9 + $0x30] sm:$0xff]  }
 0x36f   :  { %6250 = vmatprep.subr.bf16.mxu1 %v8626_v0  ;;  %v8653_v0 = vld [vmem:[#allocation9 + $0x28] sm:$0xff]  }
 0x370   :  { %6210 = vmatpush2.bf16.msra.mxu0 %v8576_v29 }
 0x371   :  { %6211 = vmatprep.subr.bf16.mxu0 %v8581_v56  ;;  %v8648_v56 = vld [vmem:[#allocation9 + $0x78] sm:$0xff]  }
 0x372   :  { %6251 = vmatpush2.bf16.msra.mxu1 %v8624_v30  ;;  %v8655_v30 = vld [vmem:[#allocation9 + $0x20] sm:$0xff]  }
 0x373   :  { %6252 = vmatprep.subr.bf16.mxu1 %v8629_v63  ;;  %v8657_v63 = vld [vmem:[#allocation9 + $0x18] sm:$0xff]  }
 0x374   :  { %6212 = vmatpush2.bf16.msra.mxu0 %v8579_v55  ;;  %v8650_v55 = vld [vmem:[#allocation9 + $0x70] sm:$0xff]  }
 0x375   :  { %6213 = vmatprep.subr.bf16.mxu0 %v8584_v60  ;;  %v8652_v60 = vld [vmem:[#allocation9 + $0x68] sm:$0xff]  }
 0x376   :  { %6253 = vmatpush2.bf16.msra.mxu1 %v8627_v8 }
 0x377   :  { %6254 = vmatprep.subr.bf16.mxu1 %v8632_v5 }
 0x378   :  { %6214 = vmatpush2.bf16.msra.mxu0 %v8582_v1  ;;  %v8654_v1 = vld [vmem:[#allocation9 + $0x60] sm:$0xff]  }
 0x379   :  { %6215 = vmatprep.subr.bf16.mxu0 %v8587_v62  ;;  %v8656_v62 = vld [vmem:[#allocation9 + $0x58] sm:$0xff]  }
 0x37a   :  { %6255 = vmatpush2.bf16.msra.mxu1 %v8630_v12 }
 0x37b   :  { %6256 = vmatprep.subr.bf16.mxu1 %v8635_v35 }
 0x37c   :  { %6216 = vmatpush2.bf16.msra.mxu0 %v8585_v4  ;;  %v5771_v4 = vcombine.high %v9105_v42, %v9105_v42 }
 0x37d   :  { %6217 = vmatprep.subr.bf16.mxu0 %v8590_v9  ;;  %v5772_v9 = vcombine.high %v9085_v32, %v9085_v32 }
 0x37e   :  { %6257 = vmatpush2.bf16.msra.mxu1 %v8633_v37  ;;  %v5788_v12 = vpack.i.b16 %v5771_v4, %v5771_v4 }
 0x37f   :  { %6258 = vmatprep.subr.bf16.mxu1 %v8638_v13 }
 0x380   :  { %6218 = vmatpush2.bf16.msra.mxu0 %v8588_v6 }
 0x381   :  { %6219 = vmatprep.subr.bf16.mxu0 %v8593_v43 }
 0x382   :  { %6259 = vmatpush2.bf16.msra.mxu1 %v8636_v36 }
 0x383   :  { %6260 = vmatprep.subr.bf16.mxu1 %v8641_v49 }
 0x384   :  { %6220 = vmatpush2.bf16.msra.mxu0 %v8591_v15  ;;  %v5795_v15 = vpack.i.b16 %v5772_v9, %v5772_v9 }
 0x385   :  { %6221 = vmatprep.subr.bf16.mxu0 %v8596_v17 }
 0x386   :  { %6261 = vmatpush2.bf16.msra.mxu1 %v8639_v14 }
 0x387   :  { %6262 = vmatprep.subr.bf16.mxu1 %v8644_v31  ;;  %v8662_v31 = vld [vmem:[#allocation9 + $0x40] sm:$0xff]  }
 0x388   :  { %6222 = vmatpush2.bf16.msra.mxu0 %v8594_v61  ;;  %v5793_v61 = vrot.slane %v5788_v12, %v9089_v59 }
 0x389   :  { %6223 = vmatprep.subr.bf16.mxu0 %v8599_v51  ;;  %v5800_v51 = vrot.slane %v5795_v15, %v9089_v59 }
 0x38a   :  { %6263 = vmatpush2.bf16.msra.mxu1 %v8642_v34  ;;  %v7346_v34 = vld.sshfl [vmem:[#allocation7] sm:$0x11 pattern:$0x75316420] }
 0x38b   :  { %6264 = vmatprep.subr.bf16.mxu1 %v8647_v38 }
 0x38c   :  { %6224 = vmatpush2.bf16.msra.mxu0 %v8597_v53 }
 0x38d   :  { %7364 = vmatprep.subr.bf16.mxu0 %v8648_v56 }
 0x38e   :  { %6265 = vmatpush2.bf16.msra.mxu1 %v8645_v39 }
 0x38f   :  { %v5531_v25 = vpop.f32.mrf.mxu0  ;;  %6226 = vmatmul.mubr.bf16.vlgmr.msra.gmra.mxu0 %v5805_v47 }
 0x390   :  { %v5572_v26 = vpop.f32.mrf.mxu1  ;;  %v5532_v52 = vadd.f32 %v5531_v25, %v9098_v16  ;;  %7365 = vmatpush3.bf16.msra.mxu0 %v8649_v57 }
 0x391   :  { %v5533_v23 = vpop.f32.mrf.mxu0  ;;  %7366 = vmatprep.subr.bf16.mxu0 %v8650_v55 }
 0x392   :  { %v5574_v19 = vpop.f32.mrf.mxu1  ;;  %v5573_v27 = vadd.f32 %v5572_v26, %v5532_v52  ;;  %v5534_v28 = vadd.f32 %v5533_v23, %v9101_v22 }
 0x393   :  { %v5535_v2 = vpop.f32.mrf.mxu0 }
 0x394   :  { %v5576_v3 = vpop.f32.mrf.mxu1  ;;  %v5575_v33 = vadd.f32 %v5574_v19, %v5534_v28  ;;  %7367 = vmatpush3.bf16.msra.mxu0 %v8651_v58  ;;  %v8659_v28 = vld [vmem:[#allocation9 + $0x10] sm:$0xff]   ;;  %v8660_v2 = vld [vmem:[#allocation9 + $0x48] sm:$0xff]  }
 0x395   :  { %v5536_v20 = vpop.f32.mrf.mxu0  ;;  %7368 = vmatprep.subr.bf16.mxu0 %v8652_v60  ;;  %v8661_v3 = vld [vmem:[#allocation9 + $0x8] sm:$0xff]  }
 0x396   :  { %v5577_v21 = vpop.f32.mrf.mxu1  ;;  %v6286_v20 = vcombine.high %v7346_v34, %v7346_v34 }
 0x397   :  { %v6293_v21 = vrot.slane %v7346_v34, %v9082_v44 }
 0x398   :  { %7369 = vmatpush3.bf16.msra.mxu0 %v8653_v0  ;;  %v6300_v38 = vrot.slane %v6286_v20, %v9082_v44 }
 0x399   :  { %7370 = vmatprep.subr.bf16.mxu0 %v8654_v1  ;;  %v6302_v39 = vpack.i.b16 %v6293_v21, %v6293_v21  ;;  %v7347_v1 = vld [vmem:[#allocation10] ss:$0 sm:$0xff] }
 0x39c   :  { %7371 = vmatpush3.bf16.msra.mxu0 %v8655_v30 }
 0x39d   :  { %7372 = vmatprep.subr.bf16.mxu0 %v8656_v62 }
 0x3a0   :  { %7373 = vmatpush3.bf16.msra.mxu0 %v8657_v63 }
 0x3cf   :  { %v5613_v16 = vpop.f32.mrf.mxu0 }
 0x3d0   :  { %v5654_v10 = vpop.f32.mrf.mxu1  ;;  %v5614_v11 = vadd.f32 %v5613_v16, %v5573_v27  ;;  %v8658_v27 = vld [vmem:[#allocation9 + $0x50] sm:$0xff]   ;;  %v6309_v16 = vpack.i.b16 %v6300_v38, %v6300_v38 }
 0x3d1   :  { %v5615_v41 = vpop.f32.mrf.mxu0  ;;  %7374 = vmatprep.subr.bf16.mxu0 %v8658_v27 }
 0x3d2   :  { %v5656_v45 = vpop.f32.mrf.mxu1  ;;  %v5655_v22 = vadd.f32 %v5654_v10, %v5614_v11  ;;  %v5616_v8 = vadd.f32 %v5615_v41, %v5575_v33  ;;  %7375 = vmatpush3.bf16.msra.mxu0 %v8659_v28  ;;  %v8663_v33 = vld [vmem:[#allocation9] sm:$0xff]   ;;  %v6307_v41 = vrot.slane %v6302_v39, %v9089_v59 }
 0x3d3   :  { %v5617_v46 = vpop.f32.mrf.mxu0  ;;  %7376 = vmatprep.subr.bf16.mxu0 %v8660_v2 }
 0x3d4   :  { %v5658_v7 = vpop.f32.mrf.mxu1  ;;  %v5657_v43 = vadd.f32 %v5656_v45, %v5616_v8 }
 0x3d5   :  { %v5618_v29 = vpop.f32.mrf.mxu0  ;;  %v6314_v7 = vrot.slane %v6309_v16, %v9089_v59 }
 0x3d6   :  { %v5659_v54 = vpop.f32.mrf.mxu1  ;;  %7377 = vmatpush3.bf16.msra.mxu0 %v8661_v3 }
 0x3d7   :  { %7378 = vmatprep.subr.bf16.mxu0 %v8662_v31 }
 0x3da   :  { %7379 = vmatpush3.bf16.msra.mxu0 %v8663_v33 }
 0x40f   :  { %v5695_v5 = vpop.f32.mrf.mxu0 }
 0x410   :  { %v5736_v6 = vpop.f32.mrf.mxu1  ;;  %v5696_v35 = vadd.f32 %v5695_v5, %v5655_v22 }
 0x411   :  { %v5697_v37 = vpop.f32.mrf.mxu0 }
 0x412   :  { %v5738_v40 = vpop.f32.mrf.mxu1  ;;  %v5737_v17 = vadd.f32 %v5736_v6, %v5696_v35  ;;  %v5698_v13 = vadd.f32 %v5697_v37, %v5657_v43 }
 0x413   :  { %v5699_v36 = vpop.f32.mrf.mxu0 }
 0x414   :  { %v5740_v48 = vpop.f32.mrf.mxu1  ;;  %v5745_v50 = vpack.c.bf16 %v5737_v17, %v5737_v17  ;;  %v5739_v42 = vadd.f32 %v5738_v40, %v5698_v13 }
 0x415   :  { %v5700_v53 = vpop.f32.mrf.mxu0 }
 0x416   :  { %v5741_v32 = vpop.f32.mrf.mxu1  ;;  %v5746_v24 = vpack.c.bf16 %v5739_v42, %v5739_v42  ;;  %v5803_v47 = vadd.bf16 %v5793_v61, %v5745_v50 }
 0x418   :  { %v5804_v25 = vadd.bf16 %v5800_v51, %v5746_v24  ;;  %v5807_v49 = vmax.bf16 %v8809_v18, %v5803_v47 }
 0x41a   :  { %v5808_v26 = vmax.bf16 %v8809_v18, %v5804_v25 }
 0x41c   :  { %6266 = vmatprep.mubr.bf16.mxu1 %v5808_v26 }
 0x41d   :  { %6267 = vmatmul.mubr.bf16.vlgmr.msra.gmra.mxu1 %v5807_v49 }
 0x44f   :  { %v6227_v52 = vpop.f32.mrf.mxu0 }
 0x451   :  { %v6229_v14 = vpop.f32.mrf.mxu0 }
 0x453   :  { %v6231_v23 = vpop.f32.mrf.mxu0 }
 0x455   :  { %v6232_v19 = vpop.f32.mrf.mxu0 }
 0x4dd   :  { %v6268_v10 = vpop.f32.mrf.mxu1 }
 0x4de   :  { %v6269_v11 = vadd.f32 %v6268_v10, %v6227_v52 }
 0x4df   :  { %v6270_v45 = vpop.f32.mrf.mxu1 }
 0x4e0   :  { %v6275_v22 = vpack.c.bf16 %v6269_v11, %v6269_v11  ;;  %v6271_v46 = vadd.f32 %v6270_v45, %v6229_v14 }
 0x4e1   :  { %v6272_v29 = vpop.f32.mrf.mxu1 }
 0x4e2   :  { %v6276_v54 = vpack.c.bf16 %v6271_v46, %v6271_v46  ;;  %v6315_v56 = vadd.bf16 %v6307_v41, %v6275_v22 }
 0x4e3   :  { %v6273_v57 = vpop.f32.mrf.mxu1 }
 0x4e4   :  { %v6316_v55 = vadd.bf16 %v6314_v7, %v6276_v54  ;;  %v6317_v44 = vmax.bf16 %v8809_v18, %v6315_v56 }
 0x4e6   :  { %v6318_v58 = vmax.bf16 %v8809_v18, %v6316_v55 }
 0x4e8   :  { %6486 = vmatprep.mubr.bf16.mxu0 %v6318_v58 }
 0x4e9   :  { %6487 = vmatmul.mubr.bf16.vlgmr.msra.gmra.mxu0 %v6317_v44 }
 0x5a9   :  { %v7380_v60 = vpop.f32.mrf.mxu0 }
 0x5ab   :  { %v7381_v0 = vpop.f32.mrf.mxu0 }
 0x5ac   :  { %v7382_v30 = vadd.f32 %v7381_v0, %v7380_v60 }
 0x5ad   :  { %v7383_v62 = vpop.f32.mrf.mxu0 }
 0x5ae   :  { %v6489_v63 = vadd.f32 %v7382_v30, %v7347_v1 }
 0x5af   :  { %v7384_v4 = vpop.f32.mrf.mxu0 }
 0x5b0   :  { %6494 = vmax.xlane.f32.xlu0 %v6489_v63 }
 0x639   :  { %v6495_v59 = vpop.xlane.xlu0 %6494 }
 0x63a   :  { %v6496_v8 = vsub.f32 %v6489_v63, %v6495_v59 }
 0x63c   :  { %v6497_v9 = vmul.f32 1.442695, %v6496_v8 }
 0x63e   :  { %8664 = vpow2.f32 %v6497_v9 }
 0x64b   :  { %v8665_v5 = vpop.eup %8664 }
 0x64c   :  { %6499 = vadd.xlane.f32.xlu0 %v8665_v5 }
 0x6d5   :  { %v6500_v6 = vpop.xlane.xlu0 %6499 }
 0x6d6   :  { %8666 = vlog2.f32 %v6500_v6 }
 0x6e3   :  { %v8667_v12 = vpop.eup %8666 }
 0x6e4   :  { %v6502_v18 = vmul.f32 0.6931472, %v8667_v12 }
 0x6e6   :  { %v6503_v43 = vsub.f32 %v6496_v8, %v6502_v18 }
 0x6e8   :  { %6504 = vst [vmem:[%s9139_s7] sm:$0xff] %v6503_v43 }
 0x6e9   :  { %6509 = vsyncpa [#allocation3], 1 }
 0x6ea   :  { %6510 = vsyncpa [#allocation5], 1 }
 0x6eb   :  { %6511 = vsyncpa [#allocation8], 1 }
 0x6ec   :  { %6512 = vsyncpa [#allocation11], 1 }

</bundles_post_ra>
